<compile_context>
chip_gen: v5e
topology: v5e:2x2
jax: 0.10.0
libtpu: 0.0.40
codegen_flags: <defaults>
</compile_context>

<pallas_src>
import functools
import math

import numpy as np
import jax
import jax.numpy as jnp
from jax.experimental import pallas as pl
from jax.experimental.pallas import tpu as pltpu

_INV_LN2 = 1.0 / math.log(2.0)


# ----------------------------------------------------------------------------
# Pallas kernels
# ----------------------------------------------------------------------------
def _tapconv_kernel(*refs, plan, n_src, relu, m):
    """3x3 conv / sub-pixel deconv as a sum of per-tap matmuls (all in one invocation).

    refs = (x_0..x_{S-1}, w_0..w_{S-1}, bias, out)
      x_s  : (1, P_s, Cin_s, L_s)  bf16  -- flat (row-major, padded) spatial on lanes
      w_s  : (T_s, Cout, Cin_s)    bf16  -- one (Cout, Cin_s) matrix per tap
      bias : (G, Cout, 1)          f32
      out  : (1, G, Cout, m)
    plan : static tuple of (src, phase, flat_offset, w_index, group).
    The whole reduction happens inside one kernel call, so accumulation is f32 in vregs
    (no scratch, no K grid axis).  Multiple sources == weight-split concat elimination.
    """
    x_refs = refs[:n_src]
    w_refs = refs[n_src:2 * n_src]
    b_ref = refs[2 * n_src]
    o_ref = refs[2 * n_src + 1]

    acc = {}
    for (s, p, off, wi, g) in plan:
        xs = x_refs[s][0, p, :, off:off + m]                 # (Cin_s, m) bf16, lane-dense
        wt = w_refs[s][wi]                                   # (Cout, Cin_s) bf16
        c = jnp.dot(wt, xs, preferred_element_type=jnp.float32)   # MXU, f32 accumulate
        acc[g] = c if g not in acc else acc[g] + c

    for g, a in acc.items():
        a = a + b_ref[g]                                     # (Cout, m) + (Cout, 1)
        if relu:
            a = jnp.maximum(a, 0.0)
        o_ref[0, g] = a.astype(o_ref.dtype)


def _gauss_cdf(z):
    # TODO(synk): tanh approximation of the Gaussian CDF (EUP tanh instead of erf).
    c = 0.7978845608028654  # sqrt(2/pi)
    return 0.5 * (1.0 + jnp.tanh(c * (z + 0.044715 * z * z * z)))


def _quant_rate_prior_kernel(x_ref, med_ref, sc_ref, q_ref, rate_ref):
    """q = round(x - median) + median ; rate = -log2 P(q) under per-channel N(median, scale)."""
    x = x_ref[0]                                             # (C, L) f32, spatial on lanes
    med = med_ref[...]                                       # (C, 1)
    inv_s = pl.reciprocal(sc_ref[...], approx=True)          # EUP reciprocal, ~free slot
    # TODO(synk): floor(d+0.5) differs from torch.round (half-to-even) at exact ties.
    r = jnp.floor(x - med + 0.5)
    lik = _gauss_cdf((r + 0.5) * inv_s) - _gauss_cdf((r - 0.5) * inv_s)
    q_ref[0] = r + med
    rate_ref[0] = -jnp.log(jnp.maximum(lik, 1e-9)) * _INV_LN2


def _quant_rate_cond_kernel(x_ref, dist_ref, q_ref, rate_ref, *, c):
    """Fused: split dist -> (mean, raw), softplus scale, quantize x around mean, rate."""
    x = x_ref[0]                                             # (C, L)
    mean = dist_ref[0, :c, :]
    raw = dist_ref[0, c:, :]
    # TODO(synk): NormalDistribution scale parameterization assumed softplus(raw) + eps.
    scale = jnp.maximum(raw, 0.0) + jnp.log(1.0 + jnp.exp(-jnp.abs(raw))) + 1e-6
    inv_s = pl.reciprocal(scale, approx=True)
    r = jnp.floor(x - mean + 0.5)
    lik = _gauss_cdf((r + 0.5) * inv_s) - _gauss_cdf((r - 0.5) * inv_s)
    q_ref[0] = r + mean
    rate_ref[0] = -jnp.log(jnp.maximum(lik, 1e-9)) * _INV_LN2


# ----------------------------------------------------------------------------
# Conv wrappers (Pallas plumbing)
# ----------------------------------------------------------------------------
def _cost(sources, weights, bias, out_bytes, m, plan):
    n = sources[0].shape[0]
    flops = 0
    for (si, _p, _o, _w, _g) in plan:
        _t, co, ci = weights[si].shape
        flops += 2 * int(ci) * int(co) * int(m)
    flops *= int(n)
    nbytes = int(out_bytes)
    for a in list(sources) + list(weights) + [bias]:
        sz = 1
        for d in a.shape:
            sz *= int(d)
        nbytes += sz * np.dtype(a.dtype).itemsize
    return pl.CostEstimate(flops=int(flops), transcendentals=0, bytes_accessed=int(nbytes))


def _tap_conv_call(sources, weights, bias, *, plan, m, groups, cout, relu, out_dtype):
    n = sources[0].shape[0]
    in_specs = [pl.BlockSpec((1,) + tuple(s.shape[1:]), lambda i: (i, 0, 0, 0)) for s in sources]
    in_specs += [pl.BlockSpec(tuple(w.shape), lambda i: (0, 0, 0)) for w in weights]
    in_specs.append(pl.BlockSpec(tuple(bias.shape), lambda i: (0, 0, 0)))
    out_bytes = n * groups * cout * m * np.dtype(out_dtype).itemsize
    return pl.pallas_call(
        functools.partial(_tapconv_kernel, plan=tuple(plan), n_src=len(sources),
                          relu=relu, m=m),
        out_shape=jax.ShapeDtypeStruct((n, groups, cout, m), out_dtype),
        grid=(n,),
        in_specs=in_specs,
        out_specs=pl.BlockSpec((1, groups, cout, m), lambda i: (i, 0, 0, 0)),
        compiler_params=pltpu.CompilerParams(
            dimension_semantics=("parallel",),          # batch splits across v7x's 2 TCs
            vmem_limit_bytes=32 * 1024 * 1024),
        cost_estimate=_cost(sources, weights, bias, out_bytes, m, plan),
    )(*sources, *weights, bias)


def _prep_s1(x):
    """stride-1 / pad-1 conv input: pad (1,2)x(1,1) (extra guard row) and flatten spatial."""
    n, c, h, w = x.shape
    xp = jnp.pad(x, ((0, 0), (0, 0), (1, 2), (1, 1))).astype(jnp.bfloat16)
    wp = w + 2
    return xp.reshape(n, 1, c, (h + 3) * wp), wp, h, w


def _prep_s2(x):
    """stride-2 / pad-1 conv input: 4-phase space-to-depth so tap slices are contiguous."""
    n, c, h, w = x.shape
    ho, wo = h // 2, w // 2
    xp = jnp.pad(x, ((0, 0), (0, 0), (1, 3), (1, 1))).astype(jnp.bfloat16)   # (h+4, w+2)
    phases = [xp[:, :, a::2, b::2] for a in (0, 1) for b in (0, 1)]          # (n,c,ho+2,wo+1)
    xph = jnp.stack(phases, axis=1)
    wph = wo + 1
    return xph.reshape(n, 4, c, (ho + 2) * wph), wph, ho, wo


def _prep_deconv(x):
    """sub-pixel deconv input: pad bottom/right by (2,1) (incl. guard row) and flatten."""
    n, c, h, w = x.shape
    xp = jnp.pad(x, ((0, 0), (0, 0), (0, 2), (0, 1))).astype(jnp.bfloat16)
    wp = w + 1
    return xp.reshape(n, 1, c, (h + 2) * wp), wp, h, w


def conv3x3(xs, ws, b, *, stride, relu, out_dtype):
    """k=3, pad=1 conv over the channel concatenation of `xs`, weights pre-split per
    source (`ws`) so the concat never touches HBM."""
    cout = ws[0].shape[-1]
    n = xs[0].shape[0]
    sources = []
    for x in xs:
        src, wph, ho, wo = _prep_s1(x) if stride == 1 else _prep_s2(x)
        sources.append(src)
    plan = []
    for si in range(len(xs)):
        for dy in range(3):
            for dx in range(3):
                if stride == 1:
                    p, off = 0, dy * wph + dx
                else:
                    p, off = (dy & 1) * 2 + (dx & 1), (dy >> 1) * wph + (dx >> 1)
                plan.append((si, p, off, dy * 3 + dx, 0))
    weights = [jnp.transpose(w, (0, 1, 3, 2)).reshape(9, cout, w.shape[2]).astype(jnp.bfloat16)
               for w in ws]
    bias = b.reshape(1, cout, 1).astype(jnp.float32)
    m = ho * wph
    out = _tap_conv_call(sources, weights, bias, plan=plan, m=m,
                         groups=1, cout=cout, relu=relu, out_dtype=out_dtype)
    # drop the (wph - wo) junk columns produced by the flat-spatial tap layout
    return out.reshape(n, cout, ho, wph)[..., :wo]


_DECONV_PHASE_TAPS = (
    ((1, 1, 0, 0),),                                            # output phase (0,0)
    ((1, 0, 0, 0), (1, 2, 0, 1)),                               # output phase (0,1)
    ((0, 1, 0, 0), (2, 1, 1, 0)),                               # output phase (1,0)
    ((0, 0, 0, 0), (0, 2, 0, 1), (2, 0, 1, 0), (2, 2, 1, 1)),   # output phase (1,1)
)


def deconv3x3_x2(xs, ws, b, *, relu, out_dtype):
    """ConvTranspose2d(k=3, s=2, p=1, output_padding=1) == 2x upsample via sub-pixel
    decomposition: 4 phase outputs (grouped as output channels) from the un-upsampled
    input, then depth-to-space.  ~4x fewer MACs than zero-insertion.

    # TODO(synk): weights are taken directly in equivalent-conv (KH,KW,Cin,Cout) layout;
    # real PyTorch ConvTranspose2d weights would need a spatial flip / transpose first.
    """
    cout = ws[0].shape[-1]
    n, _, h, w = xs[0].shape
    sources = []
    for x in xs:
        src, wp, _, _ = _prep_deconv(x)
        sources.append(src)
    order = [(dy, dx) for taps in _DECONV_PHASE_TAPS for (dy, dx, _, _) in taps]
    plan = []
    for si in range(len(xs)):
        k = 0
        for ph, taps in enumerate(_DECONV_PHASE_TAPS):
            for (_dy, _dx, rs, cs) in taps:
                plan.append((si, 0, rs * wp + cs, k, ph))
                k += 1
    weights = [jnp.stack([jnp.transpose(wt[dy, dx]) for (dy, dx) in order]).astype(jnp.bfloat16)
               for wt in ws]
    bias = jnp.tile(b.reshape(1, cout, 1), (4, 1, 1)).astype(jnp.float32)
    m = h * wp
    out = _tap_conv_call(sources, weights, bias, plan=plan, m=m,
                         groups=4, cout=cout, relu=relu, out_dtype=out_dtype)
    # depth-to-space: (n, py, px, c, i, j) -> (n, c, 2i+py, 2j+px), dropping the junk column
    o = out.reshape(n, 2, 2, cout, h, wp)[..., :w]
    o = jnp.transpose(o, (0, 3, 4, 1, 5, 2)).reshape(n, cout, 2 * h, 2 * w)
    return o


# ----------------------------------------------------------------------------
# Quantize + rate wrappers
# ----------------------------------------------------------------------------
def quantize_rate_prior(x, medians, scales):
    """Per-channel Gaussian prior (simplified FlexiblePrior): no full-size broadcasts."""
    n, c, h, w = x.shape
    xf = x.reshape(n, c, h * w).astype(jnp.float32)
    med = medians.reshape(c, 1).astype(jnp.float32)
    sc = scales.reshape(c, 1).astype(jnp.float32)
    q, rate = pl.pallas_call(
        _quant_rate_prior_kernel,
        out_shape=(jax.ShapeDtypeStruct((n, c, h * w), jnp.float32),
                   jax.ShapeDtypeStruct((n, c, h * w), jnp.float32)),
        grid=(n,),
        in_specs=[pl.BlockSpec((1, c, h * w), lambda i: (i, 0, 0)),
                  pl.BlockSpec((c, 1), lambda i: (0, 0)),
                  pl.BlockSpec((c, 1), lambda i: (0, 0))],
        out_specs=(pl.BlockSpec((1, c, h * w), lambda i: (i, 0, 0)),
                   pl.BlockSpec((1, c, h * w), lambda i: (i, 0, 0))),
        compiler_params=pltpu.CompilerParams(dimension_semantics=("parallel",)),
    )(xf, med, sc)
    return q.reshape(n, c, h, w), rate.reshape(n, c, h, w)


def quantize_rate_cond(x, dist):
    """Quantize latent around the predicted mean; softplus scale head fused in-kernel."""
    n, c, h, w = x.shape
    xf = x.reshape(n, c, h * w).astype(jnp.float32)
    df = dist.reshape(n, 2 * c, h * w).astype(jnp.float32)
    q, rate = pl.pallas_call(
        functools.partial(_quant_rate_cond_kernel, c=c),
        out_shape=(jax.ShapeDtypeStruct((n, c, h * w), jnp.float32),
                   jax.ShapeDtypeStruct((n, c, h * w), jnp.float32)),
        grid=(n,),
        in_specs=[pl.BlockSpec((1, c, h * w), lambda i: (i, 0, 0)),
                  pl.BlockSpec((1, 2 * c, h * w), lambda i: (i, 0, 0))],
        out_specs=(pl.BlockSpec((1, c, h * w), lambda i: (i, 0, 0)),
                   pl.BlockSpec((1, c, h * w), lambda i: (i, 0, 0))),
        compiler_params=pltpu.CompilerParams(dimension_semantics=("parallel",)),
    )(xf, df)
    return q.reshape(n, c, h, w), rate.reshape(n, c, h, w)


# ----------------------------------------------------------------------------
# Parameters (deterministic synthetic init)
# ----------------------------------------------------------------------------
def _init_conv(key, kh, kw, cin, cout):
    kw_, kb_ = jax.random.split(key)
    fan_in = kh * kw * cin
    w = jax.random.normal(kw_, (kh, kw, cin, cout), jnp.float32) / math.sqrt(fan_in)
    b = 0.01 * jax.random.normal(kb_, (cout,), jnp.float32)
    return {"w": w, "b": b}


def init_cond_model_params(key, input_dim, mid_dim, latent_dim,
                           hyper_mid_dim, hyper_latent_dim, output_dim):
    keys = jax.random.split(key, 10)
    # TODO(synk): exact sub-module depths/kernel sizes of BaseEncoder/HyperEncoder/etc. are
    # not given; a standard 2-layer k=3 architecture per block is assumed.
    return {
        "enc1": _init_conv(keys[0], 3, 3, input_dim, mid_dim),                       # s2 + relu
        "enc2": _init_conv(keys[1], 3, 3, mid_dim, latent_dim),                      # s2
        "henc1": _init_conv(keys[2], 3, 3, latent_dim, hyper_mid_dim),               # s1 + relu
        "henc2": _init_conv(keys[3], 3, 3, hyper_mid_dim, hyper_latent_dim),         # s2
        "hdec1": _init_conv(keys[4], 3, 3, 2 * hyper_latent_dim, hyper_mid_dim),     # deconv x2
        "hdec2": _init_conv(keys[5], 3, 3, hyper_mid_dim + latent_dim, 2 * latent_dim),
        "dec1": _init_conv(keys[6], 3, 3, 2 * latent_dim, mid_dim),                  # deconv x2
        "dec2": _init_conv(keys[7], 3, 3, mid_dim, output_dim),                      # deconv x2
        # TODO(synk): FlexiblePrior's learned cumulative replaced by per-channel Gaussian.
        "prior_medians": jnp.zeros((hyper_latent_dim,), jnp.float32),
        "prior_scales": jnp.ones((hyper_latent_dim,), jnp.float32),
    }


# ----------------------------------------------------------------------------
# CondModel forward (eval mode), NCHW in / NCHW out
# ----------------------------------------------------------------------------
def cond_model_forward(params, x, additional_latent, additional_hyper_latent):
    x = x.astype(jnp.float32)
    B, _, H, W = x.shape

    # ---- base encoder ----
    h = conv3x3([x], [params["enc1"]["w"]], params["enc1"]["b"],
                stride=2, relu=True, out_dtype=jnp.bfloat16)
    latent = conv3x3([h], [params["enc2"]["w"]], params["enc2"]["b"],
                     stride=2, relu=False, out_dtype=jnp.float32)

    # ---- hyper encoder ----
    h = conv3x3([latent], [params["henc1"]["w"]], params["henc1"]["b"],
                stride=1, relu=True, out_dtype=jnp.bfloat16)
    hyper_latent = conv3x3([h], [params["henc2"]["w"]], params["henc2"]["b"],
                           stride=2, relu=False, out_dtype=jnp.float32)

    # ---- quantize hyper latent around prior medians + rate under the prior ----
    q_hyper_latent, hyper_rate = quantize_rate_prior(
        hyper_latent, params["prior_medians"], params["prior_scales"])

    # ---- hyper conditional decoder (concats done via weight-split accumulation) ----
    w = params["hdec1"]["w"]
    c0 = q_hyper_latent.shape[1]
    h = deconv3x3_x2([q_hyper_latent, additional_hyper_latent],
                     [w[:, :, :c0, :], w[:, :, c0:, :]], params["hdec1"]["b"],
                     relu=True, out_dtype=jnp.bfloat16)
    w = params["hdec2"]["w"]
    c0 = h.shape[1]
    dist = conv3x3([h, additional_latent],
                   [w[:, :, :c0, :], w[:, :, c0:, :]], params["hdec2"]["b"],
                   stride=1, relu=False, out_dtype=jnp.float32)

    # ---- quantize latent around predicted mean + rate under N(mean, scale) ----
    q_latent, cond_rate = quantize_rate_cond(latent, dist)

    # ---- base decoder (dec_add_latent=True: weight-split concat of additional latent) ----
    w = params["dec1"]["w"]
    c0 = q_latent.shape[1]
    d = deconv3x3_x2([q_latent, additional_latent],
                     [w[:, :, :c0, :], w[:, :, c0:, :]], params["dec1"]["b"],
                     relu=True, out_dtype=jnp.bfloat16)
    output = deconv3x3_x2([d], [params["dec2"]["w"]], params["dec2"]["b"],
                          relu=False, out_dtype=jnp.float32)

    # ---- bpp / bpp_map ----
    bpp = (jnp.sum(hyper_rate) + jnp.sum(cond_rate)) / (B * H * W)
    Hl, Wl = cond_rate.shape[2], cond_rate.shape[3]
    Hh, Wh = hyper_rate.shape[2], hyper_rate.shape[3]
    # TODO(synk): `resize` assumed to be bilinear interpolation on the spatial dims.
    resized_hyper_rate = jax.image.resize(
        hyper_rate, (B, hyper_rate.shape[1], Hl, Wl), method="bilinear")
    resized_hyper_rate = resized_hyper_rate * (Hh * Wh) / (Hl * Wl)
    bpp_map = jnp.sum(resized_hyper_rate, axis=1) + jnp.sum(cond_rate, axis=1)  # (B, Hl, Wl)

    return {
        "output": output,                 # (B, output_dim, H, W)
        "bpp": bpp,
        "q_latent": q_latent,             # (B, latent_dim, H/4, W/4)
        "q_hyper_latent": q_hyper_latent, # (B, hyper_latent_dim, H/8, W/8)
        "bpp_map": bpp_map,               # (B, H/4, W/4)
    }


# ----------------------------------------------------------------------------
if __name__ == "__main__":
    input_dim, mid_dim, latent_dim = 3, 32, 16
    hyper_mid_dim, hyper_latent_dim, output_dim = 16, 8, 3
    B, H, W = 2, 16, 16
    Hl, Wl = H // 4, W // 4          # latent spatial (4, 4)
    Hh, Wh = Hl // 2, Wl // 2        # hyper spatial  (2, 2)

    root = jax.random.PRNGKey(0)
    kparam, kx, kal, kah = jax.random.split(root, 4)
    params = init_cond_model_params(
        kparam, input_dim, mid_dim, latent_dim,
        hyper_mid_dim, hyper_latent_dim, output_dim)

    x = jax.random.normal(kx, (B, input_dim, H, W), jnp.float32)
    additional_latent = jax.random.normal(kal, (B, latent_dim, Hl, Wl), jnp.float32)
    additional_hyper_latent = jax.random.normal(kah, (B, hyper_latent_dim, Hh, Wh), jnp.float32)

    fwd = jax.jit(cond_model_forward)
    out = fwd(params, x, additional_latent, additional_hyper_latent)
    jax.block_until_ready(out)

    assert out["output"].shape == (B, output_dim, H, W)
    assert out["q_latent"].shape == (B, latent_dim, Hl, Wl)
    assert out["q_hyper_latent"].shape == (B, hyper_latent_dim, Hh, Wh)
    assert out["bpp_map"].shape == (B, Hl, Wl)
    assert out["bpp"].shape == ()
    assert bool(jnp.isfinite(out["bpp"]))
    print("KERNEL_OK")
</pallas_src>

<mosaic_0001>
module attributes {stable_mosaic.version = 11 : i64} {
  func.func @_tapconv_kernel(%arg0: i32, %arg1: memref<1x4x3x90xbf16, #tpu.memory_space<vmem>>, %arg2: memref<9x32x3xbf16, #tpu.memory_space<vmem>>, %arg3: memref<1x32x1xf32, #tpu.memory_space<vmem>>, %arg4: memref<1x1x32x72xbf16, #tpu.memory_space<vmem>>) attributes {dimension_semantics = [#tpu.dimension_semantics<parallel>], iteration_bounds = array<i64: 2>, scalar_prefetch = 0 : i64, scratch_operands = 0 : i64, tpu.core_type = #tpu.core_type<tc>, window_params = [{transform_indices = @transform_0, window_bounds = array<i64: 1, 4, 3, 90>}, {pipeline_mode = #tpu.pipeline_mode<synchronous>, transform_indices = @transform_1, window_bounds = array<i64: 9, 32, 3>}, {pipeline_mode = #tpu.pipeline_mode<synchronous>, transform_indices = @transform_2, window_bounds = array<i64: 1, 32, 1>}, {transform_indices = @transform_3, window_bounds = array<i64: 1, 1, 32, 72>}]} {
    %c0 = arith.constant 0 : index
    %c0_0 = arith.constant 0 : index
    %c0_1 = arith.constant 0 : index
    %c0_2 = arith.constant 0 : index
    %0 = vector.load %arg1[%c0, %c0_0, %c0_1, %c0_2] : memref<1x4x3x90xbf16, #tpu.memory_space<vmem>>, vector<1x1x3x72xbf16>
    %1 = vector.shape_cast %0 : vector<1x1x3x72xbf16> to vector<3x72xbf16>
    %c0_3 = arith.constant 0 : index
    %c0_4 = arith.constant 0 : index
    %c0_5 = arith.constant 0 : index
    %2 = vector.load %arg2[%c0_3, %c0_4, %c0_5] : memref<9x32x3xbf16, #tpu.memory_space<vmem>>, vector<1x32x3xbf16>
    %3 = vector.shape_cast %2 : vector<1x32x3xbf16> to vector<32x3xbf16>
    %cst = arith.constant dense<0.000000e+00> : vector<32x72xf32>
    %4 = tpu.matmul %3, %1, %cst {dimension_numbers = #tpu.dot_dimension_numbers<[1], [0], [0], [1], [0, 0, 1, 1], [], []>} : vector<32x3xbf16>, vector<3x72xbf16>, vector<32x72xf32> -> vector<32x72xf32>
    %c0_6 = arith.constant 0 : index
    %c1 = arith.constant 1 : index
    %c0_7 = arith.constant 0 : index
    %c0_8 = arith.constant 0 : index
    %5 = vector.load %arg1[%c0_6, %c1, %c0_7, %c0_8] : memref<1x4x3x90xbf16, #tpu.memory_space<vmem>>, vector<1x1x3x72xbf16>
    %6 = vector.shape_cast %5 : vector<1x1x3x72xbf16> to vector<3x72xbf16>
    %c1_9 = arith.constant 1 : index
    %c0_10 = arith.constant 0 : index
    %c0_11 = arith.constant 0 : index
    %7 = vector.load %arg2[%c1_9, %c0_10, %c0_11] : memref<9x32x3xbf16, #tpu.memory_space<vmem>>, vector<1x32x3xbf16>
    %8 = vector.shape_cast %7 : vector<1x32x3xbf16> to vector<32x3xbf16>
    %cst_12 = arith.constant dense<0.000000e+00> : vector<32x72xf32>
    %9 = tpu.matmul %8, %6, %cst_12 {dimension_numbers = #tpu.dot_dimension_numbers<[1], [0], [0], [1], [0, 0, 1, 1], [], []>} : vector<32x3xbf16>, vector<3x72xbf16>, vector<32x72xf32> -> vector<32x72xf32>
    %10 = arith.addf %4, %9 : vector<32x72xf32>
    %c0_13 = arith.constant 0 : index
    %c0_14 = arith.constant 0 : index
    %c0_15 = arith.constant 0 : index
    %c1_16 = arith.constant 1 : index
    %11 = vector.load %arg1[%c0_13, %c0_14, %c0_15, %c1_16] : memref<1x4x3x90xbf16, #tpu.memory_space<vmem>>, vector<1x1x3x72xbf16>
    %12 = vector.shape_cast %11 : vector<1x1x3x72xbf16> to vector<3x72xbf16>
    %c2 = arith.constant 2 : index
    %c0_17 = arith.constant 0 : index
    %c0_18 = arith.constant 0 : index
    %13 = vector.load %arg2[%c2, %c0_17, %c0_18] : memref<9x32x3xbf16, #tpu.memory_space<vmem>>, vector<1x32x3xbf16>
    %14 = vector.shape_cast %13 : vector<1x32x3xbf16> to vector<32x3xbf16>
    %cst_19 = arith.constant dense<0.000000e+00> : vector<32x72xf32>
    %15 = tpu.matmul %14, %12, %cst_19 {dimension_numbers = #tpu.dot_dimension_numbers<[1], [0], [0], [1], [0, 0, 1, 1], [], []>} : vector<32x3xbf16>, vector<3x72xbf16>, vector<32x72xf32> -> vector<32x72xf32>
    %16 = arith.addf %10, %15 : vector<32x72xf32>
    %c0_20 = arith.constant 0 : index
    %c2_21 = arith.constant 2 : index
    %c0_22 = arith.constant 0 : index
    %c0_23 = arith.constant 0 : index
    %17 = vector.load %arg1[%c0_20, %c2_21, %c0_22, %c0_23] : memref<1x4x3x90xbf16, #tpu.memory_space<vmem>>, vector<1x1x3x72xbf16>
    %18 = vector.shape_cast %17 : vector<1x1x3x72xbf16> to vector<3x72xbf16>
    %c3 = arith.constant 3 : index
    %c0_24 = arith.constant 0 : index
    %c0_25 = arith.constant 0 : index
    %19 = vector.load %arg2[%c3, %c0_24, %c0_25] : memref<9x32x3xbf16, #tpu.memory_space<vmem>>, vector<1x32x3xbf16>
    %20 = vector.shape_cast %19 : vector<1x32x3xbf16> to vector<32x3xbf16>
    %cst_26 = arith.constant dense<0.000000e+00> : vector<32x72xf32>
    %21 = tpu.matmul %20, %18, %cst_26 {dimension_numbers = #tpu.dot_dimension_numbers<[1], [0], [0], [1], [0, 0, 1, 1], [], []>} : vector<32x3xbf16>, vector<3x72xbf16>, vector<32x72xf32> -> vector<32x72xf32>
    %22 = arith.addf %16, %21 : vector<32x72xf32>
    %c0_27 = arith.constant 0 : index
    %c3_28 = arith.constant 3 : index
    %c0_29 = arith.constant 0 : index
    %c0_30 = arith.constant 0 : index
    %23 = vector.load %arg1[%c0_27, %c3_28, %c0_29, %c0_30] : memref<1x4x3x90xbf16, #tpu.memory_space<vmem>>, vector<1x1x3x72xbf16>
    %24 = vector.shape_cast %23 : vector<1x1x3x72xbf16> to vector<3x72xbf16>
    %c4 = arith.constant 4 : index
    %c0_31 = arith.constant 0 : index
    %c0_32 = arith.constant 0 : index
    %25 = vector.load %arg2[%c4, %c0_31, %c0_32] : memref<9x32x3xbf16, #tpu.memory_space<vmem>>, vector<1x32x3xbf16>
    %26 = vector.shape_cast %25 : vector<1x32x3xbf16> to vector<32x3xbf16>
    %cst_33 = arith.constant dense<0.000000e+00> : vector<32x72xf32>
    %27 = tpu.matmul %26, %24, %cst_33 {dimension_numbers = #tpu.dot_dimension_numbers<[1], [0], [0], [1], [0, 0, 1, 1], [], []>} : vector<32x3xbf16>, vector<3x72xbf16>, vector<32x72xf32> -> vector<32x72xf32>
    %28 = arith.addf %22, %27 : vector<32x72xf32>
    %c0_34 = arith.constant 0 : index
    %c2_35 = arith.constant 2 : index
    %c0_36 = arith.constant 0 : index
    %c1_37 = arith.constant 1 : index
    %29 = vector.load %arg1[%c0_34, %c2_35, %c0_36, %c1_37] : memref<1x4x3x90xbf16, #tpu.memory_space<vmem>>, vector<1x1x3x72xbf16>
    %30 = vector.shape_cast %29 : vector<1x1x3x72xbf16> to vector<3x72xbf16>
    %c5 = arith.constant 5 : index
    %c0_38 = arith.constant 0 : index
    %c0_39 = arith.constant 0 : index
    %31 = vector.load %arg2[%c5, %c0_38, %c0_39] : memref<9x32x3xbf16, #tpu.memory_space<vmem>>, vector<1x32x3xbf16>
    %32 = vector.shape_cast %31 : vector<1x32x3xbf16> to vector<32x3xbf16>
    %cst_40 = arith.constant dense<0.000000e+00> : vector<32x72xf32>
    %33 = tpu.matmul %32, %30, %cst_40 {dimension_numbers = #tpu.dot_dimension_numbers<[1], [0], [0], [1], [0, 0, 1, 1], [], []>} : vector<32x3xbf16>, vector<3x72xbf16>, vector<32x72xf32> -> vector<32x72xf32>
    %34 = arith.addf %28, %33 : vector<32x72xf32>
    %c0_41 = arith.constant 0 : index
    %c0_42 = arith.constant 0 : index
    %c0_43 = arith.constant 0 : index
    %c9 = arith.constant 9 : index
    %35 = vector.load %arg1[%c0_41, %c0_42, %c0_43, %c9] : memref<1x4x3x90xbf16, #tpu.memory_space<vmem>>, vector<1x1x3x72xbf16>
    %36 = vector.shape_cast %35 : vector<1x1x3x72xbf16> to vector<3x72xbf16>
    %c6 = arith.constant 6 : index
    %c0_44 = arith.constant 0 : index
    %c0_45 = arith.constant 0 : index
    %37 = vector.load %arg2[%c6, %c0_44, %c0_45] : memref<9x32x3xbf16, #tpu.memory_space<vmem>>, vector<1x32x3xbf16>
    %38 = vector.shape_cast %37 : vector<1x32x3xbf16> to vector<32x3xbf16>
    %cst_46 = arith.constant dense<0.000000e+00> : vector<32x72xf32>
    %39 = tpu.matmul %38, %36, %cst_46 {dimension_numbers = #tpu.dot_dimension_numbers<[1], [0], [0], [1], [0, 0, 1, 1], [], []>} : vector<32x3xbf16>, vector<3x72xbf16>, vector<32x72xf32> -> vector<32x72xf32>
    %40 = arith.addf %34, %39 : vector<32x72xf32>
    %c0_47 = arith.constant 0 : index
    %c1_48 = arith.constant 1 : index
    %c0_49 = arith.constant 0 : index
    %c9_50 = arith.constant 9 : index
    %41 = vector.load %arg1[%c0_47, %c1_48, %c0_49, %c9_50] : memref<1x4x3x90xbf16, #tpu.memory_space<vmem>>, vector<1x1x3x72xbf16>
    %42 = vector.shape_cast %41 : vector<1x1x3x72xbf16> to vector<3x72xbf16>
    %c7 = arith.constant 7 : index
    %c0_51 = arith.constant 0 : index
    %c0_52 = arith.constant 0 : index
    %43 = vector.load %arg2[%c7, %c0_51, %c0_52] : memref<9x32x3xbf16, #tpu.memory_space<vmem>>, vector<1x32x3xbf16>
    %44 = vector.shape_cast %43 : vector<1x32x3xbf16> to vector<32x3xbf16>
    %cst_53 = arith.constant dense<0.000000e+00> : vector<32x72xf32>
    %45 = tpu.matmul %44, %42, %cst_53 {dimension_numbers = #tpu.dot_dimension_numbers<[1], [0], [0], [1], [0, 0, 1, 1], [], []>} : vector<32x3xbf16>, vector<3x72xbf16>, vector<32x72xf32> -> vector<32x72xf32>
    %46 = arith.addf %40, %45 : vector<32x72xf32>
    %c0_54 = arith.constant 0 : index
    %c0_55 = arith.constant 0 : index
    %c0_56 = arith.constant 0 : index
    %c10 = arith.constant 10 : index
    %47 = vector.load %arg1[%c0_54, %c0_55, %c0_56, %c10] : memref<1x4x3x90xbf16, #tpu.memory_space<vmem>>, vector<1x1x3x72xbf16>
    %48 = vector.shape_cast %47 : vector<1x1x3x72xbf16> to vector<3x72xbf16>
    %c8 = arith.constant 8 : index
    %c0_57 = arith.constant 0 : index
    %c0_58 = arith.constant 0 : index
    %49 = vector.load %arg2[%c8, %c0_57, %c0_58] : memref<9x32x3xbf16, #tpu.memory_space<vmem>>, vector<1x32x3xbf16>
    %50 = vector.shape_cast %49 : vector<1x32x3xbf16> to vector<32x3xbf16>
    %cst_59 = arith.constant dense<0.000000e+00> : vector<32x72xf32>
    %51 = tpu.matmul %50, %48, %cst_59 {dimension_numbers = #tpu.dot_dimension_numbers<[1], [0], [0], [1], [0, 0, 1, 1], [], []>} : vector<32x3xbf16>, vector<3x72xbf16>, vector<32x72xf32> -> vector<32x72xf32>
    %52 = arith.addf %46, %51 : vector<32x72xf32>
    %c0_60 = arith.constant 0 : index
    %c0_61 = arith.constant 0 : index
    %c0_62 = arith.constant 0 : index
    %53 = vector.load %arg3[%c0_60, %c0_61, %c0_62] : memref<1x32x1xf32, #tpu.memory_space<vmem>>, vector<1x32x1xf32>
    %54 = vector.shape_cast %53 : vector<1x32x1xf32> to vector<32x1xf32>
    %55 = vector.broadcast %54 : vector<32x1xf32> to vector<32x72xf32>
    %56 = arith.addf %52, %55 : vector<32x72xf32>
    %cst_63 = arith.constant 0.000000e+00 : f32
    %57 = vector.broadcast %cst_63 : f32 to vector<32x72xf32>
    %58 = arith.maximumf %56, %57 : vector<32x72xf32>
    %59 = arith.truncf %58 : vector<32x72xf32> to vector<32x72xbf16>
    %c0_64 = arith.constant 0 : index
    %c0_65 = arith.constant 0 : index
    %c0_66 = arith.constant 0 : index
    %c0_67 = arith.constant 0 : index
    %60 = vector.load %arg4[%c0_64, %c0_65, %c0_66, %c0_67] : memref<1x1x32x72xbf16, #tpu.memory_space<vmem>>, vector<1x1x32x72xbf16>
    %61 = vector.shape_cast %60 : vector<1x1x32x72xbf16> to vector<32x72xbf16>
    %62 = vector.shape_cast %59 : vector<32x72xbf16> to vector<1x1x32x72xbf16>
    tpu.vector_store %arg4[%c0_64, %c0_65, %c0_66, %c0_67], %62 {strides = array<i32>} : memref<1x1x32x72xbf16, #tpu.memory_space<vmem>>, vector<1x1x32x72xbf16>,
    return
  }
  func.func @transform_0(%arg0: i32) -> (i32, i32, i32, i32) {
    %c0_i32 = arith.constant 0 : i32
    %c0_i32_0 = arith.constant 0 : i32
    %c0_i32_1 = arith.constant 0 : i32
    %c0_i32_2 = arith.constant 0 : i32
    return %arg0, %c0_i32, %c0_i32_0, %c0_i32_1 : i32, i32, i32, i32
  }
  func.func @transform_1(%arg0: i32) -> (i32, i32, i32) {
    %c0_i32 = arith.constant 0 : i32
    %c0_i32_0 = arith.constant 0 : i32
    %c0_i32_1 = arith.constant 0 : i32
    %c0_i32_2 = arith.constant 0 : i32
    return %c0_i32, %c0_i32_0, %c0_i32_1 : i32, i32, i32
  }
  func.func @transform_2(%arg0: i32) -> (i32, i32, i32) {
    %c0_i32 = arith.constant 0 : i32
    %c0_i32_0 = arith.constant 0 : i32
    %c0_i32_1 = arith.constant 0 : i32
    %c0_i32_2 = arith.constant 0 : i32
    return %c0_i32, %c0_i32_0, %c0_i32_1 : i32, i32, i32
  }
  func.func @transform_3(%arg0: i32) -> (i32, i32, i32, i32) {
    %c0_i32 = arith.constant 0 : i32
    %c0_i32_0 = arith.constant 0 : i32
    %c0_i32_1 = arith.constant 0 : i32
    %c0_i32_2 = arith.constant 0 : i32
    return %arg0, %c0_i32, %c0_i32_0, %c0_i32_1 : i32, i32, i32, i32
  }
}

module attributes {stable_mosaic.version = 11 : i64} {
  func.func @_tapconv_kernel(%arg0: i32, %arg1: memref<1x4x32x30xbf16, #tpu.memory_space<vmem>>, %arg2: memref<9x16x32xbf16, #tpu.memory_space<vmem>>, %arg3: memref<1x16x1xf32, #tpu.memory_space<vmem>>, %arg4: memref<1x1x16x20xf32, #tpu.memory_space<vmem>>) attributes {dimension_semantics = [#tpu.dimension_semantics<parallel>], iteration_bounds = array<i64: 2>, scalar_prefetch = 0 : i64, scratch_operands = 0 : i64, tpu.core_type = #tpu.core_type<tc>, window_params = [{transform_indices = @transform_0, window_bounds = array<i64: 1, 4, 32, 30>}, {pipeline_mode = #tpu.pipeline_mode<synchronous>, transform_indices = @transform_1, window_bounds = array<i64: 9, 16, 32>}, {pipeline_mode = #tpu.pipeline_mode<synchronous>, transform_indices = @transform_2, window_bounds = array<i64: 1, 16, 1>}, {transform_indices = @transform_3, window_bounds = array<i64: 1, 1, 16, 20>}]} {
    %c0 = arith.constant 0 : index
    %c0_0 = arith.constant 0 : index
    %c0_1 = arith.constant 0 : index
    %c0_2 = arith.constant 0 : index
    %0 = vector.load %arg1[%c0, %c0_0, %c0_1, %c0_2] : memref<1x4x32x30xbf16, #tpu.memory_space<vmem>>, vector<1x1x32x20xbf16>
    %1 = vector.shape_cast %0 : vector<1x1x32x20xbf16> to vector<32x20xbf16>
    %c0_3 = arith.constant 0 : index
    %c0_4 = arith.constant 0 : index
    %c0_5 = arith.constant 0 : index
    %2 = vector.load %arg2[%c0_3, %c0_4, %c0_5] : memref<9x16x32xbf16, #tpu.memory_space<vmem>>, vector<1x16x32xbf16>
    %3 = vector.shape_cast %2 : vector<1x16x32xbf16> to vector<16x32xbf16>
    %cst = arith.constant dense<0.000000e+00> : vector<16x20xf32>
    %4 = tpu.matmul %3, %1, %cst {dimension_numbers = #tpu.dot_dimension_numbers<[1], [0], [0], [1], [0, 0, 1, 1], [], []>} : vector<16x32xbf16>, vector<32x20xbf16>, vector<16x20xf32> -> vector<16x20xf32>
    %c0_6 = arith.constant 0 : index
    %c1 = arith.constant 1 : index
    %c0_7 = arith.constant 0 : index
    %c0_8 = arith.constant 0 : index
    %5 = vector.load %arg1[%c0_6, %c1, %c0_7, %c0_8] : memref<1x4x32x30xbf16, #tpu.memory_space<vmem>>, vector<1x1x32x20xbf16>
    %6 = vector.shape_cast %5 : vector<1x1x32x20xbf16> to vector<32x20xbf16>
    %c1_9 = arith.constant 1 : index
    %c0_10 = arith.constant 0 : index
    %c0_11 = arith.constant 0 : index
    %7 = vector.load %arg2[%c1_9, %c0_10, %c0_11] : memref<9x16x32xbf16, #tpu.memory_space<vmem>>, vector<1x16x32xbf16>
    %8 = vector.shape_cast %7 : vector<1x16x32xbf16> to vector<16x32xbf16>
    %cst_12 = arith.constant dense<0.000000e+00> : vector<16x20xf32>
    %9 = tpu.matmul %8, %6, %cst_12 {dimension_numbers = #tpu.dot_dimension_numbers<[1], [0], [0], [1], [0, 0, 1, 1], [], []>} : vector<16x32xbf16>, vector<32x20xbf16>, vector<16x20xf32> -> vector<16x20xf32>
    %10 = arith.addf %4, %9 : vector<16x20xf32>
    %c0_13 = arith.constant 0 : index
    %c0_14 = arith.constant 0 : index
    %c0_15 = arith.constant 0 : index
    %c1_16 = arith.constant 1 : index
    %11 = vector.load %arg1[%c0_13, %c0_14, %c0_15, %c1_16] : memref<1x4x32x30xbf16, #tpu.memory_space<vmem>>, vector<1x1x32x20xbf16>
    %12 = vector.shape_cast %11 : vector<1x1x32x20xbf16> to vector<32x20xbf16>
    %c2 = arith.constant 2 : index
    %c0_17 = arith.constant 0 : index
    %c0_18 = arith.constant 0 : index
    %13 = vector.load %arg2[%c2, %c0_17, %c0_18] : memref<9x16x32xbf16, #tpu.memory_space<vmem>>, vector<1x16x32xbf16>
    %14 = vector.shape_cast %13 : vector<1x16x32xbf16> to vector<16x32xbf16>
    %cst_19 = arith.constant dense<0.000000e+00> : vector<16x20xf32>
    %15 = tpu.matmul %14, %12, %cst_19 {dimension_numbers = #tpu.dot_dimension_numbers<[1], [0], [0], [1], [0, 0, 1, 1], [], []>} : vector<16x32xbf16>, vector<32x20xbf16>, vector<16x20xf32> -> vector<16x20xf32>
    %16 = arith.addf %10, %15 : vector<16x20xf32>
    %c0_20 = arith.constant 0 : index
    %c2_21 = arith.constant 2 : index
    %c0_22 = arith.constant 0 : index
    %c0_23 = arith.constant 0 : index
    %17 = vector.load %arg1[%c0_20, %c2_21, %c0_22, %c0_23] : memref<1x4x32x30xbf16, #tpu.memory_space<vmem>>, vector<1x1x32x20xbf16>
    %18 = vector.shape_cast %17 : vector<1x1x32x20xbf16> to vector<32x20xbf16>
    %c3 = arith.constant 3 : index
    %c0_24 = arith.constant 0 : index
    %c0_25 = arith.constant 0 : index
    %19 = vector.load %arg2[%c3, %c0_24, %c0_25] : memref<9x16x32xbf16, #tpu.memory_space<vmem>>, vector<1x16x32xbf16>
    %20 = vector.shape_cast %19 : vector<1x16x32xbf16> to vector<16x32xbf16>
    %cst_26 = arith.constant dense<0.000000e+00> : vector<16x20xf32>
    %21 = tpu.matmul %20, %18, %cst_26 {dimension_numbers = #tpu.dot_dimension_numbers<[1], [0], [0], [1], [0, 0, 1, 1], [], []>} : vector<16x32xbf16>, vector<32x20xbf16>, vector<16x20xf32> -> vector<16x20xf32>
    %22 = arith.addf %16, %21 : vector<16x20xf32>
    %c0_27 = arith.constant 0 : index
    %c3_28 = arith.constant 3 : index
    %c0_29 = arith.constant 0 : index
    %c0_30 = arith.constant 0 : index
    %23 = vector.load %arg1[%c0_27, %c3_28, %c0_29, %c0_30] : memref<1x4x32x30xbf16, #tpu.memory_space<vmem>>, vector<1x1x32x20xbf16>
    %24 = vector.shape_cast %23 : vector<1x1x32x20xbf16> to vector<32x20xbf16>
    %c4 = arith.constant 4 : index
    %c0_31 = arith.constant 0 : index
    %c0_32 = arith.constant 0 : index
    %25 = vector.load %arg2[%c4, %c0_31, %c0_32] : memref<9x16x32xbf16, #tpu.memory_space<vmem>>, vector<1x16x32xbf16>
    %26 = vector.shape_cast %25 : vector<1x16x32xbf16> to vector<16x32xbf16>
    %cst_33 = arith.constant dense<0.000000e+00> : vector<16x20xf32>
    %27 = tpu.matmul %26, %24, %cst_33 {dimension_numbers = #tpu.dot_dimension_numbers<[1], [0], [0], [1], [0, 0, 1, 1], [], []>} : vector<16x32xbf16>, vector<32x20xbf16>, vector<16x20xf32> -> vector<16x20xf32>
    %28 = arith.addf %22, %27 : vector<16x20xf32>
    %c0_34 = arith.constant 0 : index
    %c2_35 = arith.constant 2 : index
    %c0_36 = arith.constant 0 : index
    %c1_37 = arith.constant 1 : index
    %29 = vector.load %arg1[%c0_34, %c2_35, %c0_36, %c1_37] : memref<1x4x32x30xbf16, #tpu.memory_space<vmem>>, vector<1x1x32x20xbf16>
    %30 = vector.shape_cast %29 : vector<1x1x32x20xbf16> to vector<32x20xbf16>
    %c5 = arith.constant 5 : index
    %c0_38 = arith.constant 0 : index
    %c0_39 = arith.constant 0 : index
    %31 = vector.load %arg2[%c5, %c0_38, %c0_39] : memref<9x16x32xbf16, #tpu.memory_space<vmem>>, vector<1x16x32xbf16>
    %32 = vector.shape_cast %31 : vector<1x16x32xbf16> to vector<16x32xbf16>
    %cst_40 = arith.constant dense<0.000000e+00> : vector<16x20xf32>
    %33 = tpu.matmul %32, %30, %cst_40 {dimension_numbers = #tpu.dot_dimension_numbers<[1], [0], [0], [1], [0, 0, 1, 1], [], []>} : vector<16x32xbf16>, vector<32x20xbf16>, vector<16x20xf32> -> vector<16x20xf32>
    %34 = arith.addf %28, %33 : vector<16x20xf32>
    %c0_41 = arith.constant 0 : index
    %c0_42 = arith.constant 0 : index
    %c0_43 = arith.constant 0 : index
    %c5_44 = arith.constant 5 : index
    %35 = vector.load %arg1[%c0_41, %c0_42, %c0_43, %c5_44] : memref<1x4x32x30xbf16, #tpu.memory_space<vmem>>, vector<1x1x32x20xbf16>
    %36 = vector.shape_cast %35 : vector<1x1x32x20xbf16> to vector<32x20xbf16>
    %c6 = arith.constant 6 : index
    %c0_45 = arith.constant 0 : index
    %c0_46 = arith.constant 0 : index
    %37 = vector.load %arg2[%c6, %c0_45, %c0_46] : memref<9x16x32xbf16, #tpu.memory_space<vmem>>, vector<1x16x32xbf16>
    %38 = vector.shape_cast %37 : vector<1x16x32xbf16> to vector<16x32xbf16>
    %cst_47 = arith.constant dense<0.000000e+00> : vector<16x20xf32>
    %39 = tpu.matmul %38, %36, %cst_47 {dimension_numbers = #tpu.dot_dimension_numbers<[1], [0], [0], [1], [0, 0, 1, 1], [], []>} : vector<16x32xbf16>, vector<32x20xbf16>, vector<16x20xf32> -> vector<16x20xf32>
    %40 = arith.addf %34, %39 : vector<16x20xf32>
    %c0_48 = arith.constant 0 : index
    %c1_49 = arith.constant 1 : index
    %c0_50 = arith.constant 0 : index
    %c5_51 = arith.constant 5 : index
    %41 = vector.load %arg1[%c0_48, %c1_49, %c0_50, %c5_51] : memref<1x4x32x30xbf16, #tpu.memory_space<vmem>>, vector<1x1x32x20xbf16>
    %42 = vector.shape_cast %41 : vector<1x1x32x20xbf16> to vector<32x20xbf16>
    %c7 = arith.constant 7 : index
    %c0_52 = arith.constant 0 : index
    %c0_53 = arith.constant 0 : index
    %43 = vector.load %arg2[%c7, %c0_52, %c0_53] : memref<9x16x32xbf16, #tpu.memory_space<vmem>>, vector<1x16x32xbf16>
    %44 = vector.shape_cast %43 : vector<1x16x32xbf16> to vector<16x32xbf16>
    %cst_54 = arith.constant dense<0.000000e+00> : vector<16x20xf32>
    %45 = tpu.matmul %44, %42, %cst_54 {dimension_numbers = #tpu.dot_dimension_numbers<[1], [0], [0], [1], [0, 0, 1, 1], [], []>} : vector<16x32xbf16>, vector<32x20xbf16>, vector<16x20xf32> -> vector<16x20xf32>
    %46 = arith.addf %40, %45 : vector<16x20xf32>
    %c0_55 = arith.constant 0 : index
    %c0_56 = arith.constant 0 : index
    %c0_57 = arith.constant 0 : index
    %c6_58 = arith.constant 6 : index
    %47 = vector.load %arg1[%c0_55, %c0_56, %c0_57, %c6_58] : memref<1x4x32x30xbf16, #tpu.memory_space<vmem>>, vector<1x1x32x20xbf16>
    %48 = vector.shape_cast %47 : vector<1x1x32x20xbf16> to vector<32x20xbf16>
    %c8 = arith.constant 8 : index
    %c0_59 = arith.constant 0 : index
    %c0_60 = arith.constant 0 : index
    %49 = vector.load %arg2[%c8, %c0_59, %c0_60] : memref<9x16x32xbf16, #tpu.memory_space<vmem>>, vector<1x16x32xbf16>
    %50 = vector.shape_cast %49 : vector<1x16x32xbf16> to vector<16x32xbf16>
    %cst_61 = arith.constant dense<0.000000e+00> : vector<16x20xf32>
    %51 = tpu.matmul %50, %48, %cst_61 {dimension_numbers = #tpu.dot_dimension_numbers<[1], [0], [0], [1], [0, 0, 1, 1], [], []>} : vector<16x32xbf16>, vector<32x20xbf16>, vector<16x20xf32> -> vector<16x20xf32>
    %52 = arith.addf %46, %51 : vector<16x20xf32>
    %c0_62 = arith.constant 0 : index
    %c0_63 = arith.constant 0 : index
    %c0_64 = arith.constant 0 : index
    %53 = vector.load %arg3[%c0_62, %c0_63, %c0_64] : memref<1x16x1xf32, #tpu.memory_space<vmem>>, vector<1x16x1xf32>
    %54 = vector.shape_cast %53 : vector<1x16x1xf32> to vector<16x1xf32>
    %55 = vector.broadcast %54 : vector<16x1xf32> to vector<16x20xf32>
    %56 = arith.addf %52, %55 : vector<16x20xf32>
    %c0_65 = arith.constant 0 : index
    %c0_66 = arith.constant 0 : index
    %c0_67 = arith.constant 0 : index
    %c0_68 = arith.constant 0 : index
    %57 = vector.load %arg4[%c0_65, %c0_66, %c0_67, %c0_68] : memref<1x1x16x20xf32, #tpu.memory_space<vmem>>, vector<1x1x16x20xf32>
    %58 = vector.shape_cast %57 : vector<1x1x16x20xf32> to vector<16x20xf32>
    %59 = vector.shape_cast %56 : vector<16x20xf32> to vector<1x1x16x20xf32>
    tpu.vector_store %arg4[%c0_65, %c0_66, %c0_67, %c0_68], %59 {strides = array<i32>} : memref<1x1x16x20xf32, #tpu.memory_space<vmem>>, vector<1x1x16x20xf32>,
    return
  }
  func.func @transform_0(%arg0: i32) -> (i32, i32, i32, i32) {
    %c0_i32 = arith.constant 0 : i32
    %c0_i32_0 = arith.constant 0 : i32
    %c0_i32_1 = arith.constant 0 : i32
    %c0_i32_2 = arith.constant 0 : i32
    return %arg0, %c0_i32, %c0_i32_0, %c0_i32_1 : i32, i32, i32, i32
  }
  func.func @transform_1(%arg0: i32) -> (i32, i32, i32) {
    %c0_i32 = arith.constant 0 : i32
    %c0_i32_0 = arith.constant 0 : i32
    %c0_i32_1 = arith.constant 0 : i32
    %c0_i32_2 = arith.constant 0 : i32
    return %c0_i32, %c0_i32_0, %c0_i32_1 : i32, i32, i32
  }
  func.func @transform_2(%arg0: i32) -> (i32, i32, i32) {
    %c0_i32 = arith.constant 0 : i32
    %c0_i32_0 = arith.constant 0 : i32
    %c0_i32_1 = arith.constant 0 : i32
    %c0_i32_2 = arith.constant 0 : i32
    return %c0_i32, %c0_i32_0, %c0_i32_1 : i32, i32, i32
  }
  func.func @transform_3(%arg0: i32) -> (i32, i32, i32, i32) {
    %c0_i32 = arith.constant 0 : i32
    %c0_i32_0 = arith.constant 0 : i32
    %c0_i32_1 = arith.constant 0 : i32
    %c0_i32_2 = arith.constant 0 : i32
    return %arg0, %c0_i32, %c0_i32_0, %c0_i32_1 : i32, i32, i32, i32
  }
}

module attributes {stable_mosaic.version = 11 : i64} {
  func.func @_tapconv_kernel(%arg0: i32, %arg1: memref<1x1x16x42xbf16, #tpu.memory_space<vmem>>, %arg2: memref<9x16x16xbf16, #tpu.memory_space<vmem>>, %arg3: memref<1x16x1xf32, #tpu.memory_space<vmem>>, %arg4: memref<1x1x16x24xbf16, #tpu.memory_space<vmem>>) attributes {dimension_semantics = [#tpu.dimension_semantics<parallel>], iteration_bounds = array<i64: 2>, scalar_prefetch = 0 : i64, scratch_operands = 0 : i64, tpu.core_type = #tpu.core_type<tc>, window_params = [{transform_indices = @transform_0, window_bounds = array<i64: 1, 1, 16, 42>}, {pipeline_mode = #tpu.pipeline_mode<synchronous>, transform_indices = @transform_1, window_bounds = array<i64: 9, 16, 16>}, {pipeline_mode = #tpu.pipeline_mode<synchronous>, transform_indices = @transform_2, window_bounds = array<i64: 1, 16, 1>}, {transform_indices = @transform_3, window_bounds = array<i64: 1, 1, 16, 24>}]} {
    %c0 = arith.constant 0 : index
    %c0_0 = arith.constant 0 : index
    %c0_1 = arith.constant 0 : index
    %c0_2 = arith.constant 0 : index
    %0 = vector.load %arg1[%c0, %c0_0, %c0_1, %c0_2] : memref<1x1x16x42xbf16, #tpu.memory_space<vmem>>, vector<1x1x16x24xbf16>
    %1 = vector.shape_cast %0 : vector<1x1x16x24xbf16> to vector<16x24xbf16>
    %c0_3 = arith.constant 0 : index
    %c0_4 = arith.constant 0 : index
    %c0_5 = arith.constant 0 : index
    %2 = vector.load %arg2[%c0_3, %c0_4, %c0_5] : memref<9x16x16xbf16, #tpu.memory_space<vmem>>, vector<1x16x16xbf16>
    %3 = vector.shape_cast %2 : vector<1x16x16xbf16> to vector<16x16xbf16>
    %cst = arith.constant dense<0.000000e+00> : vector<16x24xf32>
    %4 = tpu.matmul %3, %1, %cst {dimension_numbers = #tpu.dot_dimension_numbers<[1], [0], [0], [1], [0, 0, 1, 1], [], []>} : vector<16x16xbf16>, vector<16x24xbf16>, vector<16x24xf32> -> vector<16x24xf32>
    %c0_6 = arith.constant 0 : index
    %c0_7 = arith.constant 0 : index
    %c0_8 = arith.constant 0 : index
    %c1 = arith.constant 1 : index
    %5 = vector.load %arg1[%c0_6, %c0_7, %c0_8, %c1] : memref<1x1x16x42xbf16, #tpu.memory_space<vmem>>, vector<1x1x16x24xbf16>
    %6 = vector.shape_cast %5 : vector<1x1x16x24xbf16> to vector<16x24xbf16>
    %c1_9 = arith.constant 1 : index
    %c0_10 = arith.constant 0 : index
    %c0_11 = arith.constant 0 : index
    %7 = vector.load %arg2[%c1_9, %c0_10, %c0_11] : memref<9x16x16xbf16, #tpu.memory_space<vmem>>, vector<1x16x16xbf16>
    %8 = vector.shape_cast %7 : vector<1x16x16xbf16> to vector<16x16xbf16>
    %cst_12 = arith.constant dense<0.000000e+00> : vector<16x24xf32>
    %9 = tpu.matmul %8, %6, %cst_12 {dimension_numbers = #tpu.dot_dimension_numbers<[1], [0], [0], [1], [0, 0, 1, 1], [], []>} : vector<16x16xbf16>, vector<16x24xbf16>, vector<16x24xf32> -> vector<16x24xf32>
    %10 = arith.addf %4, %9 : vector<16x24xf32>
    %c0_13 = arith.constant 0 : index
    %c0_14 = arith.constant 0 : index
    %c0_15 = arith.constant 0 : index
    %c2 = arith.constant 2 : index
    %11 = vector.load %arg1[%c0_13, %c0_14, %c0_15, %c2] : memref<1x1x16x42xbf16, #tpu.memory_space<vmem>>, vector<1x1x16x24xbf16>
    %12 = vector.shape_cast %11 : vector<1x1x16x24xbf16> to vector<16x24xbf16>
    %c2_16 = arith.constant 2 : index
    %c0_17 = arith.constant 0 : index
    %c0_18 = arith.constant 0 : index
    %13 = vector.load %arg2[%c2_16, %c0_17, %c0_18] : memref<9x16x16xbf16, #tpu.memory_space<vmem>>, vector<1x16x16xbf16>
    %14 = vector.shape_cast %13 : vector<1x16x16xbf16> to vector<16x16xbf16>
    %cst_19 = arith.constant dense<0.000000e+00> : vector<16x24xf32>
    %15 = tpu.matmul %14, %12, %cst_19 {dimension_numbers = #tpu.dot_dimension_numbers<[1], [0], [0], [1], [0, 0, 1, 1], [], []>} : vector<16x16xbf16>, vector<16x24xbf16>, vector<16x24xf32> -> vector<16x24xf32>
    %16 = arith.addf %10, %15 : vector<16x24xf32>
    %c0_20 = arith.constant 0 : index
    %c0_21 = arith.constant 0 : index
    %c0_22 = arith.constant 0 : index
    %c6 = arith.constant 6 : index
    %17 = vector.load %arg1[%c0_20, %c0_21, %c0_22, %c6] : memref<1x1x16x42xbf16, #tpu.memory_space<vmem>>, vector<1x1x16x24xbf16>
    %18 = vector.shape_cast %17 : vector<1x1x16x24xbf16> to vector<16x24xbf16>
    %c3 = arith.constant 3 : index
    %c0_23 = arith.constant 0 : index
    %c0_24 = arith.constant 0 : index
    %19 = vector.load %arg2[%c3, %c0_23, %c0_24] : memref<9x16x16xbf16, #tpu.memory_space<vmem>>, vector<1x16x16xbf16>
    %20 = vector.shape_cast %19 : vector<1x16x16xbf16> to vector<16x16xbf16>
    %cst_25 = arith.constant dense<0.000000e+00> : vector<16x24xf32>
    %21 = tpu.matmul %20, %18, %cst_25 {dimension_numbers = #tpu.dot_dimension_numbers<[1], [0], [0], [1], [0, 0, 1, 1], [], []>} : vector<16x16xbf16>, vector<16x24xbf16>, vector<16x24xf32> -> vector<16x24xf32>
    %22 = arith.addf %16, %21 : vector<16x24xf32>
    %c0_26 = arith.constant 0 : index
    %c0_27 = arith.constant 0 : index
    %c0_28 = arith.constant 0 : index
    %c7 = arith.constant 7 : index
    %23 = vector.load %arg1[%c0_26, %c0_27, %c0_28, %c7] : memref<1x1x16x42xbf16, #tpu.memory_space<vmem>>, vector<1x1x16x24xbf16>
    %24 = vector.shape_cast %23 : vector<1x1x16x24xbf16> to vector<16x24xbf16>
    %c4 = arith.constant 4 : index
    %c0_29 = arith.constant 0 : index
    %c0_30 = arith.constant 0 : index
    %25 = vector.load %arg2[%c4, %c0_29, %c0_30] : memref<9x16x16xbf16, #tpu.memory_space<vmem>>, vector<1x16x16xbf16>
    %26 = vector.shape_cast %25 : vector<1x16x16xbf16> to vector<16x16xbf16>
    %cst_31 = arith.constant dense<0.000000e+00> : vector<16x24xf32>
    %27 = tpu.matmul %26, %24, %cst_31 {dimension_numbers = #tpu.dot_dimension_numbers<[1], [0], [0], [1], [0, 0, 1, 1], [], []>} : vector<16x16xbf16>, vector<16x24xbf16>, vector<16x24xf32> -> vector<16x24xf32>
    %28 = arith.addf %22, %27 : vector<16x24xf32>
    %c0_32 = arith.constant 0 : index
    %c0_33 = arith.constant 0 : index
    %c0_34 = arith.constant 0 : index
    %c8 = arith.constant 8 : index
    %29 = vector.load %arg1[%c0_32, %c0_33, %c0_34, %c8] : memref<1x1x16x42xbf16, #tpu.memory_space<vmem>>, vector<1x1x16x24xbf16>
    %30 = vector.shape_cast %29 : vector<1x1x16x24xbf16> to vector<16x24xbf16>
    %c5 = arith.constant 5 : index
    %c0_35 = arith.constant 0 : index
    %c0_36 = arith.constant 0 : index
    %31 = vector.load %arg2[%c5, %c0_35, %c0_36] : memref<9x16x16xbf16, #tpu.memory_space<vmem>>, vector<1x16x16xbf16>
    %32 = vector.shape_cast %31 : vector<1x16x16xbf16> to vector<16x16xbf16>
    %cst_37 = arith.constant dense<0.000000e+00> : vector<16x24xf32>
    %33 = tpu.matmul %32, %30, %cst_37 {dimension_numbers = #tpu.dot_dimension_numbers<[1], [0], [0], [1], [0, 0, 1, 1], [], []>} : vector<16x16xbf16>, vector<16x24xbf16>, vector<16x24xf32> -> vector<16x24xf32>
    %34 = arith.addf %28, %33 : vector<16x24xf32>
    %c0_38 = arith.constant 0 : index
    %c0_39 = arith.constant 0 : index
    %c0_40 = arith.constant 0 : index
    %c12 = arith.constant 12 : index
    %35 = vector.load %arg1[%c0_38, %c0_39, %c0_40, %c12] : memref<1x1x16x42xbf16, #tpu.memory_space<vmem>>, vector<1x1x16x24xbf16>
    %36 = vector.shape_cast %35 : vector<1x1x16x24xbf16> to vector<16x24xbf16>
    %c6_41 = arith.constant 6 : index
    %c0_42 = arith.constant 0 : index
    %c0_43 = arith.constant 0 : index
    %37 = vector.load %arg2[%c6_41, %c0_42, %c0_43] : memref<9x16x16xbf16, #tpu.memory_space<vmem>>, vector<1x16x16xbf16>
    %38 = vector.shape_cast %37 : vector<1x16x16xbf16> to vector<16x16xbf16>
    %cst_44 = arith.constant dense<0.000000e+00> : vector<16x24xf32>
    %39 = tpu.matmul %38, %36, %cst_44 {dimension_numbers = #tpu.dot_dimension_numbers<[1], [0], [0], [1], [0, 0, 1, 1], [], []>} : vector<16x16xbf16>, vector<16x24xbf16>, vector<16x24xf32> -> vector<16x24xf32>
    %40 = arith.addf %34, %39 : vector<16x24xf32>
    %c0_45 = arith.constant 0 : index
    %c0_46 = arith.constant 0 : index
    %c0_47 = arith.constant 0 : index
    %c13 = arith.constant 13 : index
    %41 = vector.load %arg1[%c0_45, %c0_46, %c0_47, %c13] : memref<1x1x16x42xbf16, #tpu.memory_space<vmem>>, vector<1x1x16x24xbf16>
    %42 = vector.shape_cast %41 : vector<1x1x16x24xbf16> to vector<16x24xbf16>
    %c7_48 = arith.constant 7 : index
    %c0_49 = arith.constant 0 : index
    %c0_50 = arith.constant 0 : index
    %43 = vector.load %arg2[%c7_48, %c0_49, %c0_50] : memref<9x16x16xbf16, #tpu.memory_space<vmem>>, vector<1x16x16xbf16>
    %44 = vector.shape_cast %43 : vector<1x16x16xbf16> to vector<16x16xbf16>
    %cst_51 = arith.constant dense<0.000000e+00> : vector<16x24xf32>
    %45 = tpu.matmul %44, %42, %cst_51 {dimension_numbers = #tpu.dot_dimension_numbers<[1], [0], [0], [1], [0, 0, 1, 1], [], []>} : vector<16x16xbf16>, vector<16x24xbf16>, vector<16x24xf32> -> vector<16x24xf32>
    %46 = arith.addf %40, %45 : vector<16x24xf32>
    %c0_52 = arith.constant 0 : index
    %c0_53 = arith.constant 0 : index
    %c0_54 = arith.constant 0 : index
    %c14 = arith.constant 14 : index
    %47 = vector.load %arg1[%c0_52, %c0_53, %c0_54, %c14] : memref<1x1x16x42xbf16, #tpu.memory_space<vmem>>, vector<1x1x16x24xbf16>
    %48 = vector.shape_cast %47 : vector<1x1x16x24xbf16> to vector<16x24xbf16>
    %c8_55 = arith.constant 8 : index
    %c0_56 = arith.constant 0 : index
    %c0_57 = arith.constant 0 : index
    %49 = vector.load %arg2[%c8_55, %c0_56, %c0_57] : memref<9x16x16xbf16, #tpu.memory_space<vmem>>, vector<1x16x16xbf16>
    %50 = vector.shape_cast %49 : vector<1x16x16xbf16> to vector<16x16xbf16>
    %cst_58 = arith.constant dense<0.000000e+00> : vector<16x24xf32>
    %51 = tpu.matmul %50, %48, %cst_58 {dimension_numbers = #tpu.dot_dimension_numbers<[1], [0], [0], [1], [0, 0, 1, 1], [], []>} : vector<16x16xbf16>, vector<16x24xbf16>, vector<16x24xf32> -> vector<16x24xf32>
    %52 = arith.addf %46, %51 : vector<16x24xf32>
    %c0_59 = arith.constant 0 : index
    %c0_60 = arith.constant 0 : index
    %c0_61 = arith.constant 0 : index
    %53 = vector.load %arg3[%c0_59, %c0_60, %c0_61] : memref<1x16x1xf32, #tpu.memory_space<vmem>>, vector<1x16x1xf32>
    %54 = vector.shape_cast %53 : vector<1x16x1xf32> to vector<16x1xf32>
    %55 = vector.broadcast %54 : vector<16x1xf32> to vector<16x24xf32>
    %56 = arith.addf %52, %55 : vector<16x24xf32>
    %cst_62 = arith.constant 0.000000e+00 : f32
    %57 = vector.broadcast %cst_62 : f32 to vector<16x24xf32>
    %58 = arith.maximumf %56, %57 : vector<16x24xf32>
    %59 = arith.truncf %58 : vector<16x24xf32> to vector<16x24xbf16>
    %c0_63 = arith.constant 0 : index
    %c0_64 = arith.constant 0 : index
    %c0_65 = arith.constant 0 : index
    %c0_66 = arith.constant 0 : index
    %60 = vector.load %arg4[%c0_63, %c0_64, %c0_65, %c0_66] : memref<1x1x16x24xbf16, #tpu.memory_space<vmem>>, vector<1x1x16x24xbf16>
    %61 = vector.shape_cast %60 : vector<1x1x16x24xbf16> to vector<16x24xbf16>
    %62 = vector.shape_cast %59 : vector<16x24xbf16> to vector<1x1x16x24xbf16>
    tpu.vector_store %arg4[%c0_63, %c0_64, %c0_65, %c0_66], %62 {strides = array<i32>} : memref<1x1x16x24xbf16, #tpu.memory_space<vmem>>, vector<1x1x16x24xbf16>,
    return
  }
  func.func @transform_0(%arg0: i32) -> (i32, i32, i32, i32) {
    %c0_i32 = arith.constant 0 : i32
    %c0_i32_0 = arith.constant 0 : i32
    %c0_i32_1 = arith.constant 0 : i32
    %c0_i32_2 = arith.constant 0 : i32
    return %arg0, %c0_i32, %c0_i32_0, %c0_i32_1 : i32, i32, i32, i32
  }
  func.func @transform_1(%arg0: i32) -> (i32, i32, i32) {
    %c0_i32 = arith.constant 0 : i32
    %c0_i32_0 = arith.constant 0 : i32
    %c0_i32_1 = arith.constant 0 : i32
    %c0_i32_2 = arith.constant 0 : i32
    return %c0_i32, %c0_i32_0, %c0_i32_1 : i32, i32, i32
  }
  func.func @transform_2(%arg0: i32) -> (i32, i32, i32) {
    %c0_i32 = arith.constant 0 : i32
    %c0_i32_0 = arith.constant 0 : i32
    %c0_i32_1 = arith.constant 0 : i32
    %c0_i32_2 = arith.constant 0 : i32
    return %c0_i32, %c0_i32_0, %c0_i32_1 : i32, i32, i32
  }
  func.func @transform_3(%arg0: i32) -> (i32, i32, i32, i32) {
    %c0_i32 = arith.constant 0 : i32
    %c0_i32_0 = arith.constant 0 : i32
    %c0_i32_1 = arith.constant 0 : i32
    %c0_i32_2 = arith.constant 0 : i32
    return %arg0, %c0_i32, %c0_i32_0, %c0_i32_1 : i32, i32, i32, i32
  }
}

module attributes {stable_mosaic.version = 11 : i64} {
  func.func @_tapconv_kernel(%arg0: i32, %arg1: memref<1x4x16x12xbf16, #tpu.memory_space<vmem>>, %arg2: memref<9x8x16xbf16, #tpu.memory_space<vmem>>, %arg3: memref<1x8x1xf32, #tpu.memory_space<vmem>>, %arg4: memref<1x1x8x6xf32, #tpu.memory_space<vmem>>) attributes {dimension_semantics = [#tpu.dimension_semantics<parallel>], iteration_bounds = array<i64: 2>, scalar_prefetch = 0 : i64, scratch_operands = 0 : i64, tpu.core_type = #tpu.core_type<tc>, window_params = [{transform_indices = @transform_0, window_bounds = array<i64: 1, 4, 16, 12>}, {pipeline_mode = #tpu.pipeline_mode<synchronous>, transform_indices = @transform_1, window_bounds = array<i64: 9, 8, 16>}, {pipeline_mode = #tpu.pipeline_mode<synchronous>, transform_indices = @transform_2, window_bounds = array<i64: 1, 8, 1>}, {transform_indices = @transform_3, window_bounds = array<i64: 1, 1, 8, 6>}]} {
    %c0 = arith.constant 0 : index
    %c0_0 = arith.constant 0 : index
    %c0_1 = arith.constant 0 : index
    %c0_2 = arith.constant 0 : index
    %0 = vector.load %arg1[%c0, %c0_0, %c0_1, %c0_2] : memref<1x4x16x12xbf16, #tpu.memory_space<vmem>>, vector<1x1x16x6xbf16>
    %1 = vector.shape_cast %0 : vector<1x1x16x6xbf16> to vector<16x6xbf16>
    %c0_3 = arith.constant 0 : index
    %c0_4 = arith.constant 0 : index
    %c0_5 = arith.constant 0 : index
    %2 = vector.load %arg2[%c0_3, %c0_4, %c0_5] : memref<9x8x16xbf16, #tpu.memory_space<vmem>>, vector<1x8x16xbf16>
    %3 = vector.shape_cast %2 : vector<1x8x16xbf16> to vector<8x16xbf16>
    %cst = arith.constant dense<0.000000e+00> : vector<8x6xf32>
    %4 = tpu.matmul %3, %1, %cst {dimension_numbers = #tpu.dot_dimension_numbers<[1], [0], [0], [1], [0, 0, 1, 1], [], []>} : vector<8x16xbf16>, vector<16x6xbf16>, vector<8x6xf32> -> vector<8x6xf32>
    %c0_6 = arith.constant 0 : index
    %c1 = arith.constant 1 : index
    %c0_7 = arith.constant 0 : index
    %c0_8 = arith.constant 0 : index
    %5 = vector.load %arg1[%c0_6, %c1, %c0_7, %c0_8] : memref<1x4x16x12xbf16, #tpu.memory_space<vmem>>, vector<1x1x16x6xbf16>
    %6 = vector.shape_cast %5 : vector<1x1x16x6xbf16> to vector<16x6xbf16>
    %c1_9 = arith.constant 1 : index
    %c0_10 = arith.constant 0 : index
    %c0_11 = arith.constant 0 : index
    %7 = vector.load %arg2[%c1_9, %c0_10, %c0_11] : memref<9x8x16xbf16, #tpu.memory_space<vmem>>, vector<1x8x16xbf16>
    %8 = vector.shape_cast %7 : vector<1x8x16xbf16> to vector<8x16xbf16>
    %cst_12 = arith.constant dense<0.000000e+00> : vector<8x6xf32>
    %9 = tpu.matmul %8, %6, %cst_12 {dimension_numbers = #tpu.dot_dimension_numbers<[1], [0], [0], [1], [0, 0, 1, 1], [], []>} : vector<8x16xbf16>, vector<16x6xbf16>, vector<8x6xf32> -> vector<8x6xf32>
    %10 = arith.addf %4, %9 : vector<8x6xf32>
    %c0_13 = arith.constant 0 : index
    %c0_14 = arith.constant 0 : index
    %c0_15 = arith.constant 0 : index
    %c1_16 = arith.constant 1 : index
    %11 = vector.load %arg1[%c0_13, %c0_14, %c0_15, %c1_16] : memref<1x4x16x12xbf16, #tpu.memory_space<vmem>>, vector<1x1x16x6xbf16>
    %12 = vector.shape_cast %11 : vector<1x1x16x6xbf16> to vector<16x6xbf16>
    %c2 = arith.constant 2 : index
    %c0_17 = arith.constant 0 : index
    %c0_18 = arith.constant 0 : index
    %13 = vector.load %arg2[%c2, %c0_17, %c0_18] : memref<9x8x16xbf16, #tpu.memory_space<vmem>>, vector<1x8x16xbf16>
    %14 = vector.shape_cast %13 : vector<1x8x16xbf16> to vector<8x16xbf16>
    %cst_19 = arith.constant dense<0.000000e+00> : vector<8x6xf32>
    %15 = tpu.matmul %14, %12, %cst_19 {dimension_numbers = #tpu.dot_dimension_numbers<[1], [0], [0], [1], [0, 0, 1, 1], [], []>} : vector<8x16xbf16>, vector<16x6xbf16>, vector<8x6xf32> -> vector<8x6xf32>
    %16 = arith.addf %10, %15 : vector<8x6xf32>
    %c0_20 = arith.constant 0 : index
    %c2_21 = arith.constant 2 : index
    %c0_22 = arith.constant 0 : index
    %c0_23 = arith.constant 0 : index
    %17 = vector.load %arg1[%c0_20, %c2_21, %c0_22, %c0_23] : memref<1x4x16x12xbf16, #tpu.memory_space<vmem>>, vector<1x1x16x6xbf16>
    %18 = vector.shape_cast %17 : vector<1x1x16x6xbf16> to vector<16x6xbf16>
    %c3 = arith.constant 3 : index
    %c0_24 = arith.constant 0 : index
    %c0_25 = arith.constant 0 : index
    %19 = vector.load %arg2[%c3, %c0_24, %c0_25] : memref<9x8x16xbf16, #tpu.memory_space<vmem>>, vector<1x8x16xbf16>
    %20 = vector.shape_cast %19 : vector<1x8x16xbf16> to vector<8x16xbf16>
    %cst_26 = arith.constant dense<0.000000e+00> : vector<8x6xf32>
    %21 = tpu.matmul %20, %18, %cst_26 {dimension_numbers = #tpu.dot_dimension_numbers<[1], [0], [0], [1], [0, 0, 1, 1], [], []>} : vector<8x16xbf16>, vector<16x6xbf16>, vector<8x6xf32> -> vector<8x6xf32>
    %22 = arith.addf %16, %21 : vector<8x6xf32>
    %c0_27 = arith.constant 0 : index
    %c3_28 = arith.constant 3 : index
    %c0_29 = arith.constant 0 : index
    %c0_30 = arith.constant 0 : index
    %23 = vector.load %arg1[%c0_27, %c3_28, %c0_29, %c0_30] : memref<1x4x16x12xbf16, #tpu.memory_space<vmem>>, vector<1x1x16x6xbf16>
    %24 = vector.shape_cast %23 : vector<1x1x16x6xbf16> to vector<16x6xbf16>
    %c4 = arith.constant 4 : index
    %c0_31 = arith.constant 0 : index
    %c0_32 = arith.constant 0 : index
    %25 = vector.load %arg2[%c4, %c0_31, %c0_32] : memref<9x8x16xbf16, #tpu.memory_space<vmem>>, vector<1x8x16xbf16>
    %26 = vector.shape_cast %25 : vector<1x8x16xbf16> to vector<8x16xbf16>
    %cst_33 = arith.constant dense<0.000000e+00> : vector<8x6xf32>
    %27 = tpu.matmul %26, %24, %cst_33 {dimension_numbers = #tpu.dot_dimension_numbers<[1], [0], [0], [1], [0, 0, 1, 1], [], []>} : vector<8x16xbf16>, vector<16x6xbf16>, vector<8x6xf32> -> vector<8x6xf32>
    %28 = arith.addf %22, %27 : vector<8x6xf32>
    %c0_34 = arith.constant 0 : index
    %c2_35 = arith.constant 2 : index
    %c0_36 = arith.constant 0 : index
    %c1_37 = arith.constant 1 : index
    %29 = vector.load %arg1[%c0_34, %c2_35, %c0_36, %c1_37] : memref<1x4x16x12xbf16, #tpu.memory_space<vmem>>, vector<1x1x16x6xbf16>
    %30 = vector.shape_cast %29 : vector<1x1x16x6xbf16> to vector<16x6xbf16>
    %c5 = arith.constant 5 : index
    %c0_38 = arith.constant 0 : index
    %c0_39 = arith.constant 0 : index
    %31 = vector.load %arg2[%c5, %c0_38, %c0_39] : memref<9x8x16xbf16, #tpu.memory_space<vmem>>, vector<1x8x16xbf16>
    %32 = vector.shape_cast %31 : vector<1x8x16xbf16> to vector<8x16xbf16>
    %cst_40 = arith.constant dense<0.000000e+00> : vector<8x6xf32>
    %33 = tpu.matmul %32, %30, %cst_40 {dimension_numbers = #tpu.dot_dimension_numbers<[1], [0], [0], [1], [0, 0, 1, 1], [], []>} : vector<8x16xbf16>, vector<16x6xbf16>, vector<8x6xf32> -> vector<8x6xf32>
    %34 = arith.addf %28, %33 : vector<8x6xf32>
    %c0_41 = arith.constant 0 : index
    %c0_42 = arith.constant 0 : index
    %c0_43 = arith.constant 0 : index
    %c3_44 = arith.constant 3 : index
    %35 = vector.load %arg1[%c0_41, %c0_42, %c0_43, %c3_44] : memref<1x4x16x12xbf16, #tpu.memory_space<vmem>>, vector<1x1x16x6xbf16>
    %36 = vector.shape_cast %35 : vector<1x1x16x6xbf16> to vector<16x6xbf16>
    %c6 = arith.constant 6 : index
    %c0_45 = arith.constant 0 : index
    %c0_46 = arith.constant 0 : index
    %37 = vector.load %arg2[%c6, %c0_45, %c0_46] : memref<9x8x16xbf16, #tpu.memory_space<vmem>>, vector<1x8x16xbf16>
    %38 = vector.shape_cast %37 : vector<1x8x16xbf16> to vector<8x16xbf16>
    %cst_47 = arith.constant dense<0.000000e+00> : vector<8x6xf32>
    %39 = tpu.matmul %38, %36, %cst_47 {dimension_numbers = #tpu.dot_dimension_numbers<[1], [0], [0], [1], [0, 0, 1, 1], [], []>} : vector<8x16xbf16>, vector<16x6xbf16>, vector<8x6xf32> -> vector<8x6xf32>
    %40 = arith.addf %34, %39 : vector<8x6xf32>
    %c0_48 = arith.constant 0 : index
    %c1_49 = arith.constant 1 : index
    %c0_50 = arith.constant 0 : index
    %c3_51 = arith.constant 3 : index
    %41 = vector.load %arg1[%c0_48, %c1_49, %c0_50, %c3_51] : memref<1x4x16x12xbf16, #tpu.memory_space<vmem>>, vector<1x1x16x6xbf16>
    %42 = vector.shape_cast %41 : vector<1x1x16x6xbf16> to vector<16x6xbf16>
    %c7 = arith.constant 7 : index
    %c0_52 = arith.constant 0 : index
    %c0_53 = arith.constant 0 : index
    %43 = vector.load %arg2[%c7, %c0_52, %c0_53] : memref<9x8x16xbf16, #tpu.memory_space<vmem>>, vector<1x8x16xbf16>
    %44 = vector.shape_cast %43 : vector<1x8x16xbf16> to vector<8x16xbf16>
    %cst_54 = arith.constant dense<0.000000e+00> : vector<8x6xf32>
    %45 = tpu.matmul %44, %42, %cst_54 {dimension_numbers = #tpu.dot_dimension_numbers<[1], [0], [0], [1], [0, 0, 1, 1], [], []>} : vector<8x16xbf16>, vector<16x6xbf16>, vector<8x6xf32> -> vector<8x6xf32>
    %46 = arith.addf %40, %45 : vector<8x6xf32>
    %c0_55 = arith.constant 0 : index
    %c0_56 = arith.constant 0 : index
    %c0_57 = arith.constant 0 : index
    %c4_58 = arith.constant 4 : index
    %47 = vector.load %arg1[%c0_55, %c0_56, %c0_57, %c4_58] : memref<1x4x16x12xbf16, #tpu.memory_space<vmem>>, vector<1x1x16x6xbf16>
    %48 = vector.shape_cast %47 : vector<1x1x16x6xbf16> to vector<16x6xbf16>
    %c8 = arith.constant 8 : index
    %c0_59 = arith.constant 0 : index
    %c0_60 = arith.constant 0 : index
    %49 = vector.load %arg2[%c8, %c0_59, %c0_60] : memref<9x8x16xbf16, #tpu.memory_space<vmem>>, vector<1x8x16xbf16>
    %50 = vector.shape_cast %49 : vector<1x8x16xbf16> to vector<8x16xbf16>
    %cst_61 = arith.constant dense<0.000000e+00> : vector<8x6xf32>
    %51 = tpu.matmul %50, %48, %cst_61 {dimension_numbers = #tpu.dot_dimension_numbers<[1], [0], [0], [1], [0, 0, 1, 1], [], []>} : vector<8x16xbf16>, vector<16x6xbf16>, vector<8x6xf32> -> vector<8x6xf32>
    %52 = arith.addf %46, %51 : vector<8x6xf32>
    %c0_62 = arith.constant 0 : index
    %c0_63 = arith.constant 0 : index
    %c0_64 = arith.constant 0 : index
    %53 = vector.load %arg3[%c0_62, %c0_63, %c0_64] : memref<1x8x1xf32, #tpu.memory_space<vmem>>, vector<1x8x1xf32>
    %54 = vector.shape_cast %53 : vector<1x8x1xf32> to vector<8x1xf32>
    %55 = vector.broadcast %54 : vector<8x1xf32> to vector<8x6xf32>
    %56 = arith.addf %52, %55 : vector<8x6xf32>
    %c0_65 = arith.constant 0 : index
    %c0_66 = arith.constant 0 : index
    %c0_67 = arith.constant 0 : index
    %c0_68 = arith.constant 0 : index
    %57 = vector.load %arg4[%c0_65, %c0_66, %c0_67, %c0_68] : memref<1x1x8x6xf32, #tpu.memory_space<vmem>>, vector<1x1x8x6xf32>
    %58 = vector.shape_cast %57 : vector<1x1x8x6xf32> to vector<8x6xf32>
    %59 = vector.shape_cast %56 : vector<8x6xf32> to vector<1x1x8x6xf32>
    tpu.vector_store %arg4[%c0_65, %c0_66, %c0_67, %c0_68], %59 {strides = array<i32>} : memref<1x1x8x6xf32, #tpu.memory_space<vmem>>, vector<1x1x8x6xf32>,
    return
  }
  func.func @transform_0(%arg0: i32) -> (i32, i32, i32, i32) {
    %c0_i32 = arith.constant 0 : i32
    %c0_i32_0 = arith.constant 0 : i32
    %c0_i32_1 = arith.constant 0 : i32
    %c0_i32_2 = arith.constant 0 : i32
    return %arg0, %c0_i32, %c0_i32_0, %c0_i32_1 : i32, i32, i32, i32
  }
  func.func @transform_1(%arg0: i32) -> (i32, i32, i32) {
    %c0_i32 = arith.constant 0 : i32
    %c0_i32_0 = arith.constant 0 : i32
    %c0_i32_1 = arith.constant 0 : i32
    %c0_i32_2 = arith.constant 0 : i32
    return %c0_i32, %c0_i32_0, %c0_i32_1 : i32, i32, i32
  }
  func.func @transform_2(%arg0: i32) -> (i32, i32, i32) {
    %c0_i32 = arith.constant 0 : i32
    %c0_i32_0 = arith.constant 0 : i32
    %c0_i32_1 = arith.constant 0 : i32
    %c0_i32_2 = arith.constant 0 : i32
    return %c0_i32, %c0_i32_0, %c0_i32_1 : i32, i32, i32
  }
  func.func @transform_3(%arg0: i32) -> (i32, i32, i32, i32) {
    %c0_i32 = arith.constant 0 : i32
    %c0_i32_0 = arith.constant 0 : i32
    %c0_i32_1 = arith.constant 0 : i32
    %c0_i32_2 = arith.constant 0 : i32
    return %arg0, %c0_i32, %c0_i32_0, %c0_i32_1 : i32, i32, i32, i32
  }
}

module attributes {stable_mosaic.version = 11 : i64} {
  func.func @_tapconv_kernel(%arg0: i32, %arg1: memref<1x1x8x12xbf16, #tpu.memory_space<vmem>>, %arg2: memref<1x1x8x12xbf16, #tpu.memory_space<vmem>>, %arg3: memref<9x16x8xbf16, #tpu.memory_space<vmem>>, %arg4: memref<9x16x8xbf16, #tpu.memory_space<vmem>>, %arg5: memref<4x16x1xf32, #tpu.memory_space<vmem>>, %arg6: memref<1x4x16x6xbf16, #tpu.memory_space<vmem>>) attributes {dimension_semantics = [#tpu.dimension_semantics<parallel>], iteration_bounds = array<i64: 2>, scalar_prefetch = 0 : i64, scratch_operands = 0 : i64, tpu.core_type = #tpu.core_type<tc>, window_params = [{transform_indices = @transform_0, window_bounds = array<i64: 1, 1, 8, 12>}, {transform_indices = @transform_1, window_bounds = array<i64: 1, 1, 8, 12>}, {pipeline_mode = #tpu.pipeline_mode<synchronous>, transform_indices = @transform_2, window_bounds = array<i64: 9, 16, 8>}, {pipeline_mode = #tpu.pipeline_mode<synchronous>, transform_indices = @transform_3, window_bounds = array<i64: 9, 16, 8>}, {pipeline_mode = #tpu.pipeline_mode<synchronous>, transform_indices = @transform_4, window_bounds = array<i64: 4, 16, 1>}, {transform_indices = @transform_5, window_bounds = array<i64: 1, 4, 16, 6>}]} {
    %c0 = arith.constant 0 : index
    %c0_0 = arith.constant 0 : index
    %c0_1 = arith.constant 0 : index
    %c0_2 = arith.constant 0 : index
    %0 = vector.load %arg1[%c0, %c0_0, %c0_1, %c0_2] : memref<1x1x8x12xbf16, #tpu.memory_space<vmem>>, vector<1x1x8x6xbf16>
    %1 = vector.shape_cast %0 : vector<1x1x8x6xbf16> to vector<8x6xbf16>
    %c0_3 = arith.constant 0 : index
    %c0_4 = arith.constant 0 : index
    %c0_5 = arith.constant 0 : index
    %2 = vector.load %arg3[%c0_3, %c0_4, %c0_5] : memref<9x16x8xbf16, #tpu.memory_space<vmem>>, vector<1x16x8xbf16>
    %3 = vector.shape_cast %2 : vector<1x16x8xbf16> to vector<16x8xbf16>
    %cst = arith.constant dense<0.000000e+00> : vector<16x6xf32>
    %4 = tpu.matmul %3, %1, %cst {dimension_numbers = #tpu.dot_dimension_numbers<[1], [0], [0], [1], [0, 0, 1, 1], [], []>} : vector<16x8xbf16>, vector<8x6xbf16>, vector<16x6xf32> -> vector<16x6xf32>
    %c0_6 = arith.constant 0 : index
    %c0_7 = arith.constant 0 : index
    %c0_8 = arith.constant 0 : index
    %c0_9 = arith.constant 0 : index
    %5 = vector.load %arg1[%c0_6, %c0_7, %c0_8, %c0_9] : memref<1x1x8x12xbf16, #tpu.memory_space<vmem>>, vector<1x1x8x6xbf16>
    %6 = vector.shape_cast %5 : vector<1x1x8x6xbf16> to vector<8x6xbf16>
    %c1 = arith.constant 1 : index
    %c0_10 = arith.constant 0 : index
    %c0_11 = arith.constant 0 : index
    %7 = vector.load %arg3[%c1, %c0_10, %c0_11] : memref<9x16x8xbf16, #tpu.memory_space<vmem>>, vector<1x16x8xbf16>
    %8 = vector.shape_cast %7 : vector<1x16x8xbf16> to vector<16x8xbf16>
    %cst_12 = arith.constant dense<0.000000e+00> : vector<16x6xf32>
    %9 = tpu.matmul %8, %6, %cst_12 {dimension_numbers = #tpu.dot_dimension_numbers<[1], [0], [0], [1], [0, 0, 1, 1], [], []>} : vector<16x8xbf16>, vector<8x6xbf16>, vector<16x6xf32> -> vector<16x6xf32>
    %c0_13 = arith.constant 0 : index
    %c0_14 = arith.constant 0 : index
    %c0_15 = arith.constant 0 : index
    %c1_16 = arith.constant 1 : index
    %10 = vector.load %arg1[%c0_13, %c0_14, %c0_15, %c1_16] : memref<1x1x8x12xbf16, #tpu.memory_space<vmem>>, vector<1x1x8x6xbf16>
    %11 = vector.shape_cast %10 : vector<1x1x8x6xbf16> to vector<8x6xbf16>
    %c2 = arith.constant 2 : index
    %c0_17 = arith.constant 0 : index
    %c0_18 = arith.constant 0 : index
    %12 = vector.load %arg3[%c2, %c0_17, %c0_18] : memref<9x16x8xbf16, #tpu.memory_space<vmem>>, vector<1x16x8xbf16>
    %13 = vector.shape_cast %12 : vector<1x16x8xbf16> to vector<16x8xbf16>
    %cst_19 = arith.constant dense<0.000000e+00> : vector<16x6xf32>
    %14 = tpu.matmul %13, %11, %cst_19 {dimension_numbers = #tpu.dot_dimension_numbers<[1], [0], [0], [1], [0, 0, 1, 1], [], []>} : vector<16x8xbf16>, vector<8x6xbf16>, vector<16x6xf32> -> vector<16x6xf32>
    %15 = arith.addf %9, %14 : vector<16x6xf32>
    %c0_20 = arith.constant 0 : index
    %c0_21 = arith.constant 0 : index
    %c0_22 = arith.constant 0 : index
    %c0_23 = arith.constant 0 : index
    %16 = vector.load %arg1[%c0_20, %c0_21, %c0_22, %c0_23] : memref<1x1x8x12xbf16, #tpu.memory_space<vmem>>, vector<1x1x8x6xbf16>
    %17 = vector.shape_cast %16 : vector<1x1x8x6xbf16> to vector<8x6xbf16>
    %c3 = arith.constant 3 : index
    %c0_24 = arith.constant 0 : index
    %c0_25 = arith.constant 0 : index
    %18 = vector.load %arg3[%c3, %c0_24, %c0_25] : memref<9x16x8xbf16, #tpu.memory_space<vmem>>, vector<1x16x8xbf16>
    %19 = vector.shape_cast %18 : vector<1x16x8xbf16> to vector<16x8xbf16>
    %cst_26 = arith.constant dense<0.000000e+00> : vector<16x6xf32>
    %20 = tpu.matmul %19, %17, %cst_26 {dimension_numbers = #tpu.dot_dimension_numbers<[1], [0], [0], [1], [0, 0, 1, 1], [], []>} : vector<16x8xbf16>, vector<8x6xbf16>, vector<16x6xf32> -> vector<16x6xf32>
    %c0_27 = arith.constant 0 : index
    %c0_28 = arith.constant 0 : index
    %c0_29 = arith.constant 0 : index
    %c3_30 = arith.constant 3 : index
    %21 = vector.load %arg1[%c0_27, %c0_28, %c0_29, %c3_30] : memref<1x1x8x12xbf16, #tpu.memory_space<vmem>>, vector<1x1x8x6xbf16>
    %22 = vector.shape_cast %21 : vector<1x1x8x6xbf16> to vector<8x6xbf16>
    %c4 = arith.constant 4 : index
    %c0_31 = arith.constant 0 : index
    %c0_32 = arith.constant 0 : index
    %23 = vector.load %arg3[%c4, %c0_31, %c0_32] : memref<9x16x8xbf16, #tpu.memory_space<vmem>>, vector<1x16x8xbf16>
    %24 = vector.shape_cast %23 : vector<1x16x8xbf16> to vector<16x8xbf16>
    %cst_33 = arith.constant dense<0.000000e+00> : vector<16x6xf32>
    %25 = tpu.matmul %24, %22, %cst_33 {dimension_numbers = #tpu.dot_dimension_numbers<[1], [0], [0], [1], [0, 0, 1, 1], [], []>} : vector<16x8xbf16>, vector<8x6xbf16>, vector<16x6xf32> -> vector<16x6xf32>
    %26 = arith.addf %20, %25 : vector<16x6xf32>
    %c0_34 = arith.constant 0 : index
    %c0_35 = arith.constant 0 : index
    %c0_36 = arith.constant 0 : index
    %c0_37 = arith.constant 0 : index
    %27 = vector.load %arg1[%c0_34, %c0_35, %c0_36, %c0_37] : memref<1x1x8x12xbf16, #tpu.memory_space<vmem>>, vector<1x1x8x6xbf16>
    %28 = vector.shape_cast %27 : vector<1x1x8x6xbf16> to vector<8x6xbf16>
    %c5 = arith.constant 5 : index
    %c0_38 = arith.constant 0 : index
    %c0_39 = arith.constant 0 : index
    %29 = vector.load %arg3[%c5, %c0_38, %c0_39] : memref<9x16x8xbf16, #tpu.memory_space<vmem>>, vector<1x16x8xbf16>
    %30 = vector.shape_cast %29 : vector<1x16x8xbf16> to vector<16x8xbf16>
    %cst_40 = arith.constant dense<0.000000e+00> : vector<16x6xf32>
    %31 = tpu.matmul %30, %28, %cst_40 {dimension_numbers = #tpu.dot_dimension_numbers<[1], [0], [0], [1], [0, 0, 1, 1], [], []>} : vector<16x8xbf16>, vector<8x6xbf16>, vector<16x6xf32> -> vector<16x6xf32>
    %c0_41 = arith.constant 0 : index
    %c0_42 = arith.constant 0 : index
    %c0_43 = arith.constant 0 : index
    %c1_44 = arith.constant 1 : index
    %32 = vector.load %arg1[%c0_41, %c0_42, %c0_43, %c1_44] : memref<1x1x8x12xbf16, #tpu.memory_space<vmem>>, vector<1x1x8x6xbf16>
    %33 = vector.shape_cast %32 : vector<1x1x8x6xbf16> to vector<8x6xbf16>
    %c6 = arith.constant 6 : index
    %c0_45 = arith.constant 0 : index
    %c0_46 = arith.constant 0 : index
    %34 = vector.load %arg3[%c6, %c0_45, %c0_46] : memref<9x16x8xbf16, #tpu.memory_space<vmem>>, vector<1x16x8xbf16>
    %35 = vector.shape_cast %34 : vector<1x16x8xbf16> to vector<16x8xbf16>
    %cst_47 = arith.constant dense<0.000000e+00> : vector<16x6xf32>
    %36 = tpu.matmul %35, %33, %cst_47 {dimension_numbers = #tpu.dot_dimension_numbers<[1], [0], [0], [1], [0, 0, 1, 1], [], []>} : vector<16x8xbf16>, vector<8x6xbf16>, vector<16x6xf32> -> vector<16x6xf32>
    %37 = arith.addf %31, %36 : vector<16x6xf32>
    %c0_48 = arith.constant 0 : index
    %c0_49 = arith.constant 0 : index
    %c0_50 = arith.constant 0 : index
    %c3_51 = arith.constant 3 : index
    %38 = vector.load %arg1[%c0_48, %c0_49, %c0_50, %c3_51] : memref<1x1x8x12xbf16, #tpu.memory_space<vmem>>, vector<1x1x8x6xbf16>
    %39 = vector.shape_cast %38 : vector<1x1x8x6xbf16> to vector<8x6xbf16>
    %c7 = arith.constant 7 : index
    %c0_52 = arith.constant 0 : index
    %c0_53 = arith.constant 0 : index
    %40 = vector.load %arg3[%c7, %c0_52, %c0_53] : memref<9x16x8xbf16, #tpu.memory_space<vmem>>, vector<1x16x8xbf16>
    %41 = vector.shape_cast %40 : vector<1x16x8xbf16> to vector<16x8xbf16>
    %cst_54 = arith.constant dense<0.000000e+00> : vector<16x6xf32>
    %42 = tpu.matmul %41, %39, %cst_54 {dimension_numbers = #tpu.dot_dimension_numbers<[1], [0], [0], [1], [0, 0, 1, 1], [], []>} : vector<16x8xbf16>, vector<8x6xbf16>, vector<16x6xf32> -> vector<16x6xf32>
    %43 = arith.addf %37, %42 : vector<16x6xf32>
    %c0_55 = arith.constant 0 : index
    %c0_56 = arith.constant 0 : index
    %c0_57 = arith.constant 0 : index
    %c4_58 = arith.constant 4 : index
    %44 = vector.load %arg1[%c0_55, %c0_56, %c0_57, %c4_58] : memref<1x1x8x12xbf16, #tpu.memory_space<vmem>>, vector<1x1x8x6xbf16>
    %45 = vector.shape_cast %44 : vector<1x1x8x6xbf16> to vector<8x6xbf16>
    %c8 = arith.constant 8 : index
    %c0_59 = arith.constant 0 : index
    %c0_60 = arith.constant 0 : index
    %46 = vector.load %arg3[%c8, %c0_59, %c0_60] : memref<9x16x8xbf16, #tpu.memory_space<vmem>>, vector<1x16x8xbf16>
    %47 = vector.shape_cast %46 : vector<1x16x8xbf16> to vector<16x8xbf16>
    %cst_61 = arith.constant dense<0.000000e+00> : vector<16x6xf32>
    %48 = tpu.matmul %47, %45, %cst_61 {dimension_numbers = #tpu.dot_dimension_numbers<[1], [0], [0], [1], [0, 0, 1, 1], [], []>} : vector<16x8xbf16>, vector<8x6xbf16>, vector<16x6xf32> -> vector<16x6xf32>
    %49 = arith.addf %43, %48 : vector<16x6xf32>
    %c0_62 = arith.constant 0 : index
    %c0_63 = arith.constant 0 : index
    %c0_64 = arith.constant 0 : index
    %c0_65 = arith.constant 0 : index
    %50 = vector.load %arg2[%c0_62, %c0_63, %c0_64, %c0_65] : memref<1x1x8x12xbf16, #tpu.memory_space<vmem>>, vector<1x1x8x6xbf16>
    %51 = vector.shape_cast %50 : vector<1x1x8x6xbf16> to vector<8x6xbf16>
    %c0_66 = arith.constant 0 : index
    %c0_67 = arith.constant 0 : index
    %c0_68 = arith.constant 0 : index
    %52 = vector.load %arg4[%c0_66, %c0_67, %c0_68] : memref<9x16x8xbf16, #tpu.memory_space<vmem>>, vector<1x16x8xbf16>
    %53 = vector.shape_cast %52 : vector<1x16x8xbf16> to vector<16x8xbf16>
    %cst_69 = arith.constant dense<0.000000e+00> : vector<16x6xf32>
    %54 = tpu.matmul %53, %51, %cst_69 {dimension_numbers = #tpu.dot_dimension_numbers<[1], [0], [0], [1], [0, 0, 1, 1], [], []>} : vector<16x8xbf16>, vector<8x6xbf16>, vector<16x6xf32> -> vector<16x6xf32>
    %55 = arith.addf %4, %54 : vector<16x6xf32>
    %c0_70 = arith.constant 0 : index
    %c0_71 = arith.constant 0 : index
    %c0_72 = arith.constant 0 : index
    %c0_73 = arith.constant 0 : index
    %56 = vector.load %arg2[%c0_70, %c0_71, %c0_72, %c0_73] : memref<1x1x8x12xbf16, #tpu.memory_space<vmem>>, vector<1x1x8x6xbf16>
    %57 = vector.shape_cast %56 : vector<1x1x8x6xbf16> to vector<8x6xbf16>
    %c1_74 = arith.constant 1 : index
    %c0_75 = arith.constant 0 : index
    %c0_76 = arith.constant 0 : index
    %58 = vector.load %arg4[%c1_74, %c0_75, %c0_76] : memref<9x16x8xbf16, #tpu.memory_space<vmem>>, vector<1x16x8xbf16>
    %59 = vector.shape_cast %58 : vector<1x16x8xbf16> to vector<16x8xbf16>
    %cst_77 = arith.constant dense<0.000000e+00> : vector<16x6xf32>
    %60 = tpu.matmul %59, %57, %cst_77 {dimension_numbers = #tpu.dot_dimension_numbers<[1], [0], [0], [1], [0, 0, 1, 1], [], []>} : vector<16x8xbf16>, vector<8x6xbf16>, vector<16x6xf32> -> vector<16x6xf32>
    %61 = arith.addf %15, %60 : vector<16x6xf32>
    %c0_78 = arith.constant 0 : index
    %c0_79 = arith.constant 0 : index
    %c0_80 = arith.constant 0 : index
    %c1_81 = arith.constant 1 : index
    %62 = vector.load %arg2[%c0_78, %c0_79, %c0_80, %c1_81] : memref<1x1x8x12xbf16, #tpu.memory_space<vmem>>, vector<1x1x8x6xbf16>
    %63 = vector.shape_cast %62 : vector<1x1x8x6xbf16> to vector<8x6xbf16>
    %c2_82 = arith.constant 2 : index
    %c0_83 = arith.constant 0 : index
    %c0_84 = arith.constant 0 : index
    %64 = vector.load %arg4[%c2_82, %c0_83, %c0_84] : memref<9x16x8xbf16, #tpu.memory_space<vmem>>, vector<1x16x8xbf16>
    %65 = vector.shape_cast %64 : vector<1x16x8xbf16> to vector<16x8xbf16>
    %cst_85 = arith.constant dense<0.000000e+00> : vector<16x6xf32>
    %66 = tpu.matmul %65, %63, %cst_85 {dimension_numbers = #tpu.dot_dimension_numbers<[1], [0], [0], [1], [0, 0, 1, 1], [], []>} : vector<16x8xbf16>, vector<8x6xbf16>, vector<16x6xf32> -> vector<16x6xf32>
    %67 = arith.addf %61, %66 : vector<16x6xf32>
    %c0_86 = arith.constant 0 : index
    %c0_87 = arith.constant 0 : index
    %c0_88 = arith.constant 0 : index
    %c0_89 = arith.constant 0 : index
    %68 = vector.load %arg2[%c0_86, %c0_87, %c0_88, %c0_89] : memref<1x1x8x12xbf16, #tpu.memory_space<vmem>>, vector<1x1x8x6xbf16>
    %69 = vector.shape_cast %68 : vector<1x1x8x6xbf16> to vector<8x6xbf16>
    %c3_90 = arith.constant 3 : index
    %c0_91 = arith.constant 0 : index
    %c0_92 = arith.constant 0 : index
    %70 = vector.load %arg4[%c3_90, %c0_91, %c0_92] : memref<9x16x8xbf16, #tpu.memory_space<vmem>>, vector<1x16x8xbf16>
    %71 = vector.shape_cast %70 : vector<1x16x8xbf16> to vector<16x8xbf16>
    %cst_93 = arith.constant dense<0.000000e+00> : vector<16x6xf32>
    %72 = tpu.matmul %71, %69, %cst_93 {dimension_numbers = #tpu.dot_dimension_numbers<[1], [0], [0], [1], [0, 0, 1, 1], [], []>} : vector<16x8xbf16>, vector<8x6xbf16>, vector<16x6xf32> -> vector<16x6xf32>
    %73 = arith.addf %26, %72 : vector<16x6xf32>
    %c0_94 = arith.constant 0 : index
    %c0_95 = arith.constant 0 : index
    %c0_96 = arith.constant 0 : index
    %c3_97 = arith.constant 3 : index
    %74 = vector.load %arg2[%c0_94, %c0_95, %c0_96, %c3_97] : memref<1x1x8x12xbf16, #tpu.memory_space<vmem>>, vector<1x1x8x6xbf16>
    %75 = vector.shape_cast %74 : vector<1x1x8x6xbf16> to vector<8x6xbf16>
    %c4_98 = arith.constant 4 : index
    %c0_99 = arith.constant 0 : index
    %c0_100 = arith.constant 0 : index
    %76 = vector.load %arg4[%c4_98, %c0_99, %c0_100] : memref<9x16x8xbf16, #tpu.memory_space<vmem>>, vector<1x16x8xbf16>
    %77 = vector.shape_cast %76 : vector<1x16x8xbf16> to vector<16x8xbf16>
    %cst_101 = arith.constant dense<0.000000e+00> : vector<16x6xf32>
    %78 = tpu.matmul %77, %75, %cst_101 {dimension_numbers = #tpu.dot_dimension_numbers<[1], [0], [0], [1], [0, 0, 1, 1], [], []>} : vector<16x8xbf16>, vector<8x6xbf16>, vector<16x6xf32> -> vector<16x6xf32>
    %79 = arith.addf %73, %78 : vector<16x6xf32>
    %c0_102 = arith.constant 0 : index
    %c0_103 = arith.constant 0 : index
    %c0_104 = arith.constant 0 : index
    %c0_105 = arith.constant 0 : index
    %80 = vector.load %arg2[%c0_102, %c0_103, %c0_104, %c0_105] : memref<1x1x8x12xbf16, #tpu.memory_space<vmem>>, vector<1x1x8x6xbf16>
    %81 = vector.shape_cast %80 : vector<1x1x8x6xbf16> to vector<8x6xbf16>
    %c5_106 = arith.constant 5 : index
    %c0_107 = arith.constant 0 : index
    %c0_108 = arith.constant 0 : index
    %82 = vector.load %arg4[%c5_106, %c0_107, %c0_108] : memref<9x16x8xbf16, #tpu.memory_space<vmem>>, vector<1x16x8xbf16>
    %83 = vector.shape_cast %82 : vector<1x16x8xbf16> to vector<16x8xbf16>
    %cst_109 = arith.constant dense<0.000000e+00> : vector<16x6xf32>
    %84 = tpu.matmul %83, %81, %cst_109 {dimension_numbers = #tpu.dot_dimension_numbers<[1], [0], [0], [1], [0, 0, 1, 1], [], []>} : vector<16x8xbf16>, vector<8x6xbf16>, vector<16x6xf32> -> vector<16x6xf32>
    %85 = arith.addf %49, %84 : vector<16x6xf32>
    %c0_110 = arith.constant 0 : index
    %c0_111 = arith.constant 0 : index
    %c0_112 = arith.constant 0 : index
    %c1_113 = arith.constant 1 : index
    %86 = vector.load %arg2[%c0_110, %c0_111, %c0_112, %c1_113] : memref<1x1x8x12xbf16, #tpu.memory_space<vmem>>, vector<1x1x8x6xbf16>
    %87 = vector.shape_cast %86 : vector<1x1x8x6xbf16> to vector<8x6xbf16>
    %c6_114 = arith.constant 6 : index
    %c0_115 = arith.constant 0 : index
    %c0_116 = arith.constant 0 : index
    %88 = vector.load %arg4[%c6_114, %c0_115, %c0_116] : memref<9x16x8xbf16, #tpu.memory_space<vmem>>, vector<1x16x8xbf16>
    %89 = vector.shape_cast %88 : vector<1x16x8xbf16> to vector<16x8xbf16>
    %cst_117 = arith.constant dense<0.000000e+00> : vector<16x6xf32>
    %90 = tpu.matmul %89, %87, %cst_117 {dimension_numbers = #tpu.dot_dimension_numbers<[1], [0], [0], [1], [0, 0, 1, 1], [], []>} : vector<16x8xbf16>, vector<8x6xbf16>, vector<16x6xf32> -> vector<16x6xf32>
    %91 = arith.addf %85, %90 : vector<16x6xf32>
    %c0_118 = arith.constant 0 : index
    %c0_119 = arith.constant 0 : index
    %c0_120 = arith.constant 0 : index
    %c3_121 = arith.constant 3 : index
    %92 = vector.load %arg2[%c0_118, %c0_119, %c0_120, %c3_121] : memref<1x1x8x12xbf16, #tpu.memory_space<vmem>>, vector<1x1x8x6xbf16>
    %93 = vector.shape_cast %92 : vector<1x1x8x6xbf16> to vector<8x6xbf16>
    %c7_122 = arith.constant 7 : index
    %c0_123 = arith.constant 0 : index
    %c0_124 = arith.constant 0 : index
    %94 = vector.load %arg4[%c7_122, %c0_123, %c0_124] : memref<9x16x8xbf16, #tpu.memory_space<vmem>>, vector<1x16x8xbf16>
    %95 = vector.shape_cast %94 : vector<1x16x8xbf16> to vector<16x8xbf16>
    %cst_125 = arith.constant dense<0.000000e+00> : vector<16x6xf32>
    %96 = tpu.matmul %95, %93, %cst_125 {dimension_numbers = #tpu.dot_dimension_numbers<[1], [0], [0], [1], [0, 0, 1, 1], [], []>} : vector<16x8xbf16>, vector<8x6xbf16>, vector<16x6xf32> -> vector<16x6xf32>
    %97 = arith.addf %91, %96 : vector<16x6xf32>
    %c0_126 = arith.constant 0 : index
    %c0_127 = arith.constant 0 : index
    %c0_128 = arith.constant 0 : index
    %c4_129 = arith.constant 4 : index
    %98 = vector.load %arg2[%c0_126, %c0_127, %c0_128, %c4_129] : memref<1x1x8x12xbf16, #tpu.memory_space<vmem>>, vector<1x1x8x6xbf16>
    %99 = vector.shape_cast %98 : vector<1x1x8x6xbf16> to vector<8x6xbf16>
    %c8_130 = arith.constant 8 : index
    %c0_131 = arith.constant 0 : index
    %c0_132 = arith.constant 0 : index
    %100 = vector.load %arg4[%c8_130, %c0_131, %c0_132] : memref<9x16x8xbf16, #tpu.memory_space<vmem>>, vector<1x16x8xbf16>
    %101 = vector.shape_cast %100 : vector<1x16x8xbf16> to vector<16x8xbf16>
    %cst_133 = arith.constant dense<0.000000e+00> : vector<16x6xf32>
    %102 = tpu.matmul %101, %99, %cst_133 {dimension_numbers = #tpu.dot_dimension_numbers<[1], [0], [0], [1], [0, 0, 1, 1], [], []>} : vector<16x8xbf16>, vector<8x6xbf16>, vector<16x6xf32> -> vector<16x6xf32>
    %103 = arith.addf %97, %102 : vector<16x6xf32>
    %c0_134 = arith.constant 0 : index
    %c0_135 = arith.constant 0 : index
    %c0_136 = arith.constant 0 : index
    %104 = vector.load %arg5[%c0_134, %c0_135, %c0_136] : memref<4x16x1xf32, #tpu.memory_space<vmem>>, vector<1x16x1xf32>
    %105 = vector.shape_cast %104 : vector<1x16x1xf32> to vector<16x1xf32>
    %106 = vector.broadcast %105 : vector<16x1xf32> to vector<16x6xf32>
    %107 = arith.addf %55, %106 : vector<16x6xf32>
    %cst_137 = arith.constant 0.000000e+00 : f32
    %108 = vector.broadcast %cst_137 : f32 to vector<16x6xf32>
    %109 = arith.maximumf %107, %108 : vector<16x6xf32>
    %110 = arith.truncf %109 : vector<16x6xf32> to vector<16x6xbf16>
    %c0_138 = arith.constant 0 : index
    %c0_139 = arith.constant 0 : index
    %c0_140 = arith.constant 0 : index
    %c0_141 = arith.constant 0 : index
    %111 = vector.load %arg6[%c0_138, %c0_139, %c0_140, %c0_141] : memref<1x4x16x6xbf16, #tpu.memory_space<vmem>>, vector<1x1x16x6xbf16>
    %112 = vector.shape_cast %111 : vector<1x1x16x6xbf16> to vector<16x6xbf16>
    %113 = vector.shape_cast %110 : vector<16x6xbf16> to vector<1x1x16x6xbf16>
    tpu.vector_store %arg6[%c0_138, %c0_139, %c0_140, %c0_141], %113 {strides = array<i32>} : memref<1x4x16x6xbf16, #tpu.memory_space<vmem>>, vector<1x1x16x6xbf16>,
    %c1_142 = arith.constant 1 : index
    %c0_143 = arith.constant 0 : index
    %c0_144 = arith.constant 0 : index
    %114 = vector.load %arg5[%c1_142, %c0_143, %c0_144] : memref<4x16x1xf32, #tpu.memory_space<vmem>>, vector<1x16x1xf32>
    %115 = vector.shape_cast %114 : vector<1x16x1xf32> to vector<16x1xf32>
    %116 = vector.broadcast %115 : vector<16x1xf32> to vector<16x6xf32>
    %117 = arith.addf %67, %116 : vector<16x6xf32>
    %cst_145 = arith.constant 0.000000e+00 : f32
    %118 = vector.broadcast %cst_145 : f32 to vector<16x6xf32>
    %119 = arith.maximumf %117, %118 : vector<16x6xf32>
    %120 = arith.truncf %119 : vector<16x6xf32> to vector<16x6xbf16>
    %c0_146 = arith.constant 0 : index
    %c1_147 = arith.constant 1 : index
    %c0_148 = arith.constant 0 : index
    %c0_149 = arith.constant 0 : index
    %121 = vector.load %arg6[%c0_146, %c1_147, %c0_148, %c0_149] : memref<1x4x16x6xbf16, #tpu.memory_space<vmem>>, vector<1x1x16x6xbf16>
    %122 = vector.shape_cast %121 : vector<1x1x16x6xbf16> to vector<16x6xbf16>
    %123 = vector.shape_cast %120 : vector<16x6xbf16> to vector<1x1x16x6xbf16>
    tpu.vector_store %arg6[%c0_146, %c1_147, %c0_148, %c0_149], %123 {strides = array<i32>} : memref<1x4x16x6xbf16, #tpu.memory_space<vmem>>, vector<1x1x16x6xbf16>,
    %c2_150 = arith.constant 2 : index
    %c0_151 = arith.constant 0 : index
    %c0_152 = arith.constant 0 : index
    %124 = vector.load %arg5[%c2_150, %c0_151, %c0_152] : memref<4x16x1xf32, #tpu.memory_space<vmem>>, vector<1x16x1xf32>
    %125 = vector.shape_cast %124 : vector<1x16x1xf32> to vector<16x1xf32>
    %126 = vector.broadcast %125 : vector<16x1xf32> to vector<16x6xf32>
    %127 = arith.addf %79, %126 : vector<16x6xf32>
    %cst_153 = arith.constant 0.000000e+00 : f32
    %128 = vector.broadcast %cst_153 : f32 to vector<16x6xf32>
    %129 = arith.maximumf %127, %128 : vector<16x6xf32>
    %130 = arith.truncf %129 : vector<16x6xf32> to vector<16x6xbf16>
    %c0_154 = arith.constant 0 : index
    %c2_155 = arith.constant 2 : index
    %c0_156 = arith.constant 0 : index
    %c0_157 = arith.constant 0 : index
    %131 = vector.load %arg6[%c0_154, %c2_155, %c0_156, %c0_157] : memref<1x4x16x6xbf16, #tpu.memory_space<vmem>>, vector<1x1x16x6xbf16>
    %132 = vector.shape_cast %131 : vector<1x1x16x6xbf16> to vector<16x6xbf16>
    %133 = vector.shape_cast %130 : vector<16x6xbf16> to vector<1x1x16x6xbf16>
    tpu.vector_store %arg6[%c0_154, %c2_155, %c0_156, %c0_157], %133 {strides = array<i32>} : memref<1x4x16x6xbf16, #tpu.memory_space<vmem>>, vector<1x1x16x6xbf16>,
    %c3_158 = arith.constant 3 : index
    %c0_159 = arith.constant 0 : index
    %c0_160 = arith.constant 0 : index
    %134 = vector.load %arg5[%c3_158, %c0_159, %c0_160] : memref<4x16x1xf32, #tpu.memory_space<vmem>>, vector<1x16x1xf32>
    %135 = vector.shape_cast %134 : vector<1x16x1xf32> to vector<16x1xf32>
    %136 = vector.broadcast %135 : vector<16x1xf32> to vector<16x6xf32>
    %137 = arith.addf %103, %136 : vector<16x6xf32>
    %cst_161 = arith.constant 0.000000e+00 : f32
    %138 = vector.broadcast %cst_161 : f32 to vector<16x6xf32>
    %139 = arith.maximumf %137, %138 : vector<16x6xf32>
    %140 = arith.truncf %139 : vector<16x6xf32> to vector<16x6xbf16>
    %c0_162 = arith.constant 0 : index
    %c3_163 = arith.constant 3 : index
    %c0_164 = arith.constant 0 : index
    %c0_165 = arith.constant 0 : index
    %141 = vector.load %arg6[%c0_162, %c3_163, %c0_164, %c0_165] : memref<1x4x16x6xbf16, #tpu.memory_space<vmem>>, vector<1x1x16x6xbf16>
    %142 = vector.shape_cast %141 : vector<1x1x16x6xbf16> to vector<16x6xbf16>
    %143 = vector.shape_cast %140 : vector<16x6xbf16> to vector<1x1x16x6xbf16>
    tpu.vector_store %arg6[%c0_162, %c3_163, %c0_164, %c0_165], %143 {strides = array<i32>} : memref<1x4x16x6xbf16, #tpu.memory_space<vmem>>, vector<1x1x16x6xbf16>,
    return
  }
  func.func @transform_0(%arg0: i32) -> (i32, i32, i32, i32) {
    %c0_i32 = arith.constant 0 : i32
    %c0_i32_0 = arith.constant 0 : i32
    %c0_i32_1 = arith.constant 0 : i32
    %c0_i32_2 = arith.constant 0 : i32
    return %arg0, %c0_i32, %c0_i32_0, %c0_i32_1 : i32, i32, i32, i32
  }
  func.func @transform_1(%arg0: i32) -> (i32, i32, i32, i32) {
    %c0_i32 = arith.constant 0 : i32
    %c0_i32_0 = arith.constant 0 : i32
    %c0_i32_1 = arith.constant 0 : i32
    %c0_i32_2 = arith.constant 0 : i32
    return %arg0, %c0_i32, %c0_i32_0, %c0_i32_1 : i32, i32, i32, i32
  }
  func.func @transform_2(%arg0: i32) -> (i32, i32, i32) {
    %c0_i32 = arith.constant 0 : i32
    %c0_i32_0 = arith.constant 0 : i32
    %c0_i32_1 = arith.constant 0 : i32
    %c0_i32_2 = arith.constant 0 : i32
    return %c0_i32, %c0_i32_0, %c0_i32_1 : i32, i32, i32
  }
  func.func @transform_3(%arg0: i32) -> (i32, i32, i32) {
    %c0_i32 = arith.constant 0 : i32
    %c0_i32_0 = arith.constant 0 : i32
    %c0_i32_1 = arith.constant 0 : i32
    %c0_i32_2 = arith.constant 0 : i32
    return %c0_i32, %c0_i32_0, %c0_i32_1 : i32, i32, i32
  }
  func.func @transform_4(%arg0: i32) -> (i32, i32, i32) {
    %c0_i32 = arith.constant 0 : i32
    %c0_i32_0 = arith.constant 0 : i32
    %c0_i32_1 = arith.constant 0 : i32
    %c0_i32_2 = arith.constant 0 : i32
    return %c0_i32, %c0_i32_0, %c0_i32_1 : i32, i32, i32
  }
  func.func @transform_5(%arg0: i32) -> (i32, i32, i32, i32) {
    %c0_i32 = arith.constant 0 : i32
    %c0_i32_0 = arith.constant 0 : i32
    %c0_i32_1 = arith.constant 0 : i32
    %c0_i32_2 = arith.constant 0 : i32
    return %arg0, %c0_i32, %c0_i32_0, %c0_i32_1 : i32, i32, i32, i32
  }
}

module attributes {stable_mosaic.version = 11 : i64} {
  func.func @_quant_rate_prior_kernel(%arg0: i32, %arg1: memref<1x8x4xf32, #tpu.memory_space<vmem>>, %arg2: memref<8x1xf32, #tpu.memory_space<vmem>>, %arg3: memref<8x1xf32, #tpu.memory_space<vmem>>, %arg4: memref<1x8x4xf32, #tpu.memory_space<vmem>>, %arg5: memref<1x8x4xf32, #tpu.memory_space<vmem>>) attributes {dimension_semantics = [#tpu.dimension_semantics<parallel>], iteration_bounds = array<i64: 2>, scalar_prefetch = 0 : i64, scratch_operands = 0 : i64, tpu.core_type = #tpu.core_type<tc>, window_params = [{transform_indices = @transform_0, window_bounds = array<i64: 1, 8, 4>}, {pipeline_mode = #tpu.pipeline_mode<synchronous>, transform_indices = @transform_1, window_bounds = array<i64: 8, 1>}, {pipeline_mode = #tpu.pipeline_mode<synchronous>, transform_indices = @transform_2, window_bounds = array<i64: 8, 1>}, {transform_indices = @transform_3, window_bounds = array<i64: 1, 8, 4>}, {transform_indices = @transform_4, window_bounds = array<i64: 1, 8, 4>}]} {
    %c0 = arith.constant 0 : index
    %c0_0 = arith.constant 0 : index
    %c0_1 = arith.constant 0 : index
    %0 = vector.load %arg1[%c0, %c0_0, %c0_1] : memref<1x8x4xf32, #tpu.memory_space<vmem>>, vector<1x8x4xf32>
    %1 = vector.shape_cast %0 : vector<1x8x4xf32> to vector<8x4xf32>
    %c0_2 = arith.constant 0 : index
    %c0_3 = arith.constant 0 : index
    %2 = vector.load %arg2[%c0_2, %c0_3] : memref<8x1xf32, #tpu.memory_space<vmem>>, vector<8x1xf32>
    %c0_4 = arith.constant 0 : index
    %c0_5 = arith.constant 0 : index
    %3 = vector.load %arg3[%c0_4, %c0_5] : memref<8x1xf32, #tpu.memory_space<vmem>>, vector<8x1xf32>
    %4 = tpu.reciprocal %3 {approx = true} : vector<8x1xf32> -> vector<8x1xf32>
    %5 = vector.broadcast %2 : vector<8x1xf32> to vector<8x4xf32>
    %6 = arith.subf %1, %5 : vector<8x4xf32>
    %cst = arith.constant 5.000000e-01 : f32
    %7 = vector.broadcast %cst : f32 to vector<8x4xf32>
    %8 = arith.addf %6, %7 : vector<8x4xf32>
    %9 = math.floor %8 : vector<8x4xf32>
    %cst_6 = arith.constant 5.000000e-01 : f32
    %10 = vector.broadcast %cst_6 : f32 to vector<8x4xf32>
    %11 = arith.addf %9, %10 : vector<8x4xf32>
    %12 = vector.broadcast %4 : vector<8x1xf32> to vector<8x4xf32>
    %13 = arith.mulf %11, %12 : vector<8x4xf32>
    %cst_7 = arith.constant 4.471500e-02 : f32
    %14 = vector.broadcast %cst_7 : f32 to vector<8x4xf32>
    %15 = arith.mulf %14, %13 : vector<8x4xf32>
    %16 = arith.mulf %15, %13 : vector<8x4xf32>
    %17 = arith.mulf %16, %13 : vector<8x4xf32>
    %18 = arith.addf %13, %17 : vector<8x4xf32>
    %cst_8 = arith.constant 0.797884583 : f32
    %19 = vector.broadcast %cst_8 : f32 to vector<8x4xf32>
    %20 = arith.mulf %19, %18 : vector<8x4xf32>
    %21 = math.tanh %20 : vector<8x4xf32>
    %cst_9 = arith.constant 1.000000e+00 : f32
    %22 = vector.broadcast %cst_9 : f32 to vector<8x4xf32>
    %23 = arith.addf %22, %21 : vector<8x4xf32>
    %cst_10 = arith.constant 5.000000e-01 : f32
    %24 = vector.broadcast %cst_10 : f32 to vector<8x4xf32>
    %25 = arith.mulf %24, %23 : vector<8x4xf32>
    %cst_11 = arith.constant 5.000000e-01 : f32
    %26 = vector.broadcast %cst_11 : f32 to vector<8x4xf32>
    %27 = arith.subf %9, %26 : vector<8x4xf32>
    %28 = vector.broadcast %4 : vector<8x1xf32> to vector<8x4xf32>
    %29 = arith.mulf %27, %28 : vector<8x4xf32>
    %cst_12 = arith.constant 4.471500e-02 : f32
    %30 = vector.broadcast %cst_12 : f32 to vector<8x4xf32>
    %31 = arith.mulf %30, %29 : vector<8x4xf32>
    %32 = arith.mulf %31, %29 : vector<8x4xf32>
    %33 = arith.mulf %32, %29 : vector<8x4xf32>
    %34 = arith.addf %29, %33 : vector<8x4xf32>
    %cst_13 = arith.constant 0.797884583 : f32
    %35 = vector.broadcast %cst_13 : f32 to vector<8x4xf32>
    %36 = arith.mulf %35, %34 : vector<8x4xf32>
    %37 = math.tanh %36 : vector<8x4xf32>
    %cst_14 = arith.constant 1.000000e+00 : f32
    %38 = vector.broadcast %cst_14 : f32 to vector<8x4xf32>
    %39 = arith.addf %38, %37 : vector<8x4xf32>
    %cst_15 = arith.constant 5.000000e-01 : f32
    %40 = vector.broadcast %cst_15 : f32 to vector<8x4xf32>
    %41 = arith.mulf %40, %39 : vector<8x4xf32>
    %42 = arith.subf %25, %41 : vector<8x4xf32>
    %43 = vector.broadcast %2 : vector<8x1xf32> to vector<8x4xf32>
    %44 = arith.addf %9, %43 : vector<8x4xf32>
    %c0_16 = arith.constant 0 : index
    %c0_17 = arith.constant 0 : index
    %c0_18 = arith.constant 0 : index
    %45 = vector.load %arg4[%c0_16, %c0_17, %c0_18] : memref<1x8x4xf32, #tpu.memory_space<vmem>>, vector<1x8x4xf32>
    %46 = vector.shape_cast %45 : vector<1x8x4xf32> to vector<8x4xf32>
    %47 = vector.shape_cast %44 : vector<8x4xf32> to vector<1x8x4xf32>
    tpu.vector_store %arg4[%c0_16, %c0_17, %c0_18], %47 {strides = array<i32>} : memref<1x8x4xf32, #tpu.memory_space<vmem>>, vector<1x8x4xf32>,
    %cst_19 = arith.constant 9.99999971E-10 : f32
    %48 = vector.broadcast %cst_19 : f32 to vector<8x4xf32>
    %49 = arith.maximumf %42, %48 : vector<8x4xf32>
    %50 = math.log %49 : vector<8x4xf32>
    %cst_20 = arith.constant 0.000000e+00 : f32
    %51 = vector.broadcast %cst_20 : f32 to vector<8x4xf32>
    %52 = arith.subf %51, %50 : vector<8x4xf32>
    %cst_21 = arith.constant 1.44269502 : f32
    %53 = vector.broadcast %cst_21 : f32 to vector<8x4xf32>
    %54 = arith.mulf %52, %53 : vector<8x4xf32>
    %c0_22 = arith.constant 0 : index
    %c0_23 = arith.constant 0 : index
    %c0_24 = arith.constant 0 : index
    %55 = vector.load %arg5[%c0_22, %c0_23, %c0_24] : memref<1x8x4xf32, #tpu.memory_space<vmem>>, vector<1x8x4xf32>
    %56 = vector.shape_cast %55 : vector<1x8x4xf32> to vector<8x4xf32>
    %57 = vector.shape_cast %54 : vector<8x4xf32> to vector<1x8x4xf32>
    tpu.vector_store %arg5[%c0_22, %c0_23, %c0_24], %57 {strides = array<i32>} : memref<1x8x4xf32, #tpu.memory_space<vmem>>, vector<1x8x4xf32>,
    return
  }
  func.func @transform_0(%arg0: i32) -> (i32, i32, i32) {
    %c0_i32 = arith.constant 0 : i32
    %c0_i32_0 = arith.constant 0 : i32
    %c0_i32_1 = arith.constant 0 : i32
    return %arg0, %c0_i32, %c0_i32_0 : i32, i32, i32
  }
  func.func @transform_1(%arg0: i32) -> (i32, i32) {
    %c0_i32 = arith.constant 0 : i32
    %c0_i32_0 = arith.constant 0 : i32
    %c0_i32_1 = arith.constant 0 : i32
    return %c0_i32, %c0_i32_0 : i32, i32
  }
  func.func @transform_2(%arg0: i32) -> (i32, i32) {
    %c0_i32 = arith.constant 0 : i32
    %c0_i32_0 = arith.constant 0 : i32
    %c0_i32_1 = arith.constant 0 : i32
    return %c0_i32, %c0_i32_0 : i32, i32
  }
  func.func @transform_3(%arg0: i32) -> (i32, i32, i32) {
    %c0_i32 = arith.constant 0 : i32
    %c0_i32_0 = arith.constant 0 : i32
    %c0_i32_1 = arith.constant 0 : i32
    return %arg0, %c0_i32, %c0_i32_0 : i32, i32, i32
  }
  func.func @transform_4(%arg0: i32) -> (i32, i32, i32) {
    %c0_i32 = arith.constant 0 : i32
    %c0_i32_0 = arith.constant 0 : i32
    %c0_i32_1 = arith.constant 0 : i32
    return %arg0, %c0_i32, %c0_i32_0 : i32, i32, i32
  }
}

module attributes {stable_mosaic.version = 11 : i64} {
  func.func @_tapconv_kernel(%arg0: i32, %arg1: memref<1x1x16x42xbf16, #tpu.memory_space<vmem>>, %arg2: memref<1x1x16x42xbf16, #tpu.memory_space<vmem>>, %arg3: memref<9x32x16xbf16, #tpu.memory_space<vmem>>, %arg4: memref<9x32x16xbf16, #tpu.memory_space<vmem>>, %arg5: memref<1x32x1xf32, #tpu.memory_space<vmem>>, %arg6: memref<1x1x32x24xf32, #tpu.memory_space<vmem>>) attributes {dimension_semantics = [#tpu.dimension_semantics<parallel>], iteration_bounds = array<i64: 2>, scalar_prefetch = 0 : i64, scratch_operands = 0 : i64, tpu.core_type = #tpu.core_type<tc>, window_params = [{transform_indices = @transform_0, window_bounds = array<i64: 1, 1, 16, 42>}, {transform_indices = @transform_1, window_bounds = array<i64: 1, 1, 16, 42>}, {pipeline_mode = #tpu.pipeline_mode<synchronous>, transform_indices = @transform_2, window_bounds = array<i64: 9, 32, 16>}, {pipeline_mode = #tpu.pipeline_mode<synchronous>, transform_indices = @transform_3, window_bounds = array<i64: 9, 32, 16>}, {pipeline_mode = #tpu.pipeline_mode<synchronous>, transform_indices = @transform_4, window_bounds = array<i64: 1, 32, 1>}, {transform_indices = @transform_5, window_bounds = array<i64: 1, 1, 32, 24>}]} {
    %c0 = arith.constant 0 : index
    %c0_0 = arith.constant 0 : index
    %c0_1 = arith.constant 0 : index
    %c0_2 = arith.constant 0 : index
    %0 = vector.load %arg1[%c0, %c0_0, %c0_1, %c0_2] : memref<1x1x16x42xbf16, #tpu.memory_space<vmem>>, vector<1x1x16x24xbf16>
    %1 = vector.shape_cast %0 : vector<1x1x16x24xbf16> to vector<16x24xbf16>
    %c0_3 = arith.constant 0 : index
    %c0_4 = arith.constant 0 : index
    %c0_5 = arith.constant 0 : index
    %2 = vector.load %arg3[%c0_3, %c0_4, %c0_5] : memref<9x32x16xbf16, #tpu.memory_space<vmem>>, vector<1x32x16xbf16>
    %3 = vector.shape_cast %2 : vector<1x32x16xbf16> to vector<32x16xbf16>
    %cst = arith.constant dense<0.000000e+00> : vector<32x24xf32>
    %4 = tpu.matmul %3, %1, %cst {dimension_numbers = #tpu.dot_dimension_numbers<[1], [0], [0], [1], [0, 0, 1, 1], [], []>} : vector<32x16xbf16>, vector<16x24xbf16>, vector<32x24xf32> -> vector<32x24xf32>
    %c0_6 = arith.constant 0 : index
    %c0_7 = arith.constant 0 : index
    %c0_8 = arith.constant 0 : index
    %c1 = arith.constant 1 : index
    %5 = vector.load %arg1[%c0_6, %c0_7, %c0_8, %c1] : memref<1x1x16x42xbf16, #tpu.memory_space<vmem>>, vector<1x1x16x24xbf16>
    %6 = vector.shape_cast %5 : vector<1x1x16x24xbf16> to vector<16x24xbf16>
    %c1_9 = arith.constant 1 : index
    %c0_10 = arith.constant 0 : index
    %c0_11 = arith.constant 0 : index
    %7 = vector.load %arg3[%c1_9, %c0_10, %c0_11] : memref<9x32x16xbf16, #tpu.memory_space<vmem>>, vector<1x32x16xbf16>
    %8 = vector.shape_cast %7 : vector<1x32x16xbf16> to vector<32x16xbf16>
    %cst_12 = arith.constant dense<0.000000e+00> : vector<32x24xf32>
    %9 = tpu.matmul %8, %6, %cst_12 {dimension_numbers = #tpu.dot_dimension_numbers<[1], [0], [0], [1], [0, 0, 1, 1], [], []>} : vector<32x16xbf16>, vector<16x24xbf16>, vector<32x24xf32> -> vector<32x24xf32>
    %10 = arith.addf %4, %9 : vector<32x24xf32>
    %c0_13 = arith.constant 0 : index
    %c0_14 = arith.constant 0 : index
    %c0_15 = arith.constant 0 : index
    %c2 = arith.constant 2 : index
    %11 = vector.load %arg1[%c0_13, %c0_14, %c0_15, %c2] : memref<1x1x16x42xbf16, #tpu.memory_space<vmem>>, vector<1x1x16x24xbf16>
    %12 = vector.shape_cast %11 : vector<1x1x16x24xbf16> to vector<16x24xbf16>
    %c2_16 = arith.constant 2 : index
    %c0_17 = arith.constant 0 : index
    %c0_18 = arith.constant 0 : index
    %13 = vector.load %arg3[%c2_16, %c0_17, %c0_18] : memref<9x32x16xbf16, #tpu.memory_space<vmem>>, vector<1x32x16xbf16>
    %14 = vector.shape_cast %13 : vector<1x32x16xbf16> to vector<32x16xbf16>
    %cst_19 = arith.constant dense<0.000000e+00> : vector<32x24xf32>
    %15 = tpu.matmul %14, %12, %cst_19 {dimension_numbers = #tpu.dot_dimension_numbers<[1], [0], [0], [1], [0, 0, 1, 1], [], []>} : vector<32x16xbf16>, vector<16x24xbf16>, vector<32x24xf32> -> vector<32x24xf32>
    %16 = arith.addf %10, %15 : vector<32x24xf32>
    %c0_20 = arith.constant 0 : index
    %c0_21 = arith.constant 0 : index
    %c0_22 = arith.constant 0 : index
    %c6 = arith.constant 6 : index
    %17 = vector.load %arg1[%c0_20, %c0_21, %c0_22, %c6] : memref<1x1x16x42xbf16, #tpu.memory_space<vmem>>, vector<1x1x16x24xbf16>
    %18 = vector.shape_cast %17 : vector<1x1x16x24xbf16> to vector<16x24xbf16>
    %c3 = arith.constant 3 : index
    %c0_23 = arith.constant 0 : index
    %c0_24 = arith.constant 0 : index
    %19 = vector.load %arg3[%c3, %c0_23, %c0_24] : memref<9x32x16xbf16, #tpu.memory_space<vmem>>, vector<1x32x16xbf16>
    %20 = vector.shape_cast %19 : vector<1x32x16xbf16> to vector<32x16xbf16>
    %cst_25 = arith.constant dense<0.000000e+00> : vector<32x24xf32>
    %21 = tpu.matmul %20, %18, %cst_25 {dimension_numbers = #tpu.dot_dimension_numbers<[1], [0], [0], [1], [0, 0, 1, 1], [], []>} : vector<32x16xbf16>, vector<16x24xbf16>, vector<32x24xf32> -> vector<32x24xf32>
    %22 = arith.addf %16, %21 : vector<32x24xf32>
    %c0_26 = arith.constant 0 : index
    %c0_27 = arith.constant 0 : index
    %c0_28 = arith.constant 0 : index
    %c7 = arith.constant 7 : index
    %23 = vector.load %arg1[%c0_26, %c0_27, %c0_28, %c7] : memref<1x1x16x42xbf16, #tpu.memory_space<vmem>>, vector<1x1x16x24xbf16>
    %24 = vector.shape_cast %23 : vector<1x1x16x24xbf16> to vector<16x24xbf16>
    %c4 = arith.constant 4 : index
    %c0_29 = arith.constant 0 : index
    %c0_30 = arith.constant 0 : index
    %25 = vector.load %arg3[%c4, %c0_29, %c0_30] : memref<9x32x16xbf16, #tpu.memory_space<vmem>>, vector<1x32x16xbf16>
    %26 = vector.shape_cast %25 : vector<1x32x16xbf16> to vector<32x16xbf16>
    %cst_31 = arith.constant dense<0.000000e+00> : vector<32x24xf32>
    %27 = tpu.matmul %26, %24, %cst_31 {dimension_numbers = #tpu.dot_dimension_numbers<[1], [0], [0], [1], [0, 0, 1, 1], [], []>} : vector<32x16xbf16>, vector<16x24xbf16>, vector<32x24xf32> -> vector<32x24xf32>
    %28 = arith.addf %22, %27 : vector<32x24xf32>
    %c0_32 = arith.constant 0 : index
    %c0_33 = arith.constant 0 : index
    %c0_34 = arith.constant 0 : index
    %c8 = arith.constant 8 : index
    %29 = vector.load %arg1[%c0_32, %c0_33, %c0_34, %c8] : memref<1x1x16x42xbf16, #tpu.memory_space<vmem>>, vector<1x1x16x24xbf16>
    %30 = vector.shape_cast %29 : vector<1x1x16x24xbf16> to vector<16x24xbf16>
    %c5 = arith.constant 5 : index
    %c0_35 = arith.constant 0 : index
    %c0_36 = arith.constant 0 : index
    %31 = vector.load %arg3[%c5, %c0_35, %c0_36] : memref<9x32x16xbf16, #tpu.memory_space<vmem>>, vector<1x32x16xbf16>
    %32 = vector.shape_cast %31 : vector<1x32x16xbf16> to vector<32x16xbf16>
    %cst_37 = arith.constant dense<0.000000e+00> : vector<32x24xf32>
    %33 = tpu.matmul %32, %30, %cst_37 {dimension_numbers = #tpu.dot_dimension_numbers<[1], [0], [0], [1], [0, 0, 1, 1], [], []>} : vector<32x16xbf16>, vector<16x24xbf16>, vector<32x24xf32> -> vector<32x24xf32>
    %34 = arith.addf %28, %33 : vector<32x24xf32>
    %c0_38 = arith.constant 0 : index
    %c0_39 = arith.constant 0 : index
    %c0_40 = arith.constant 0 : index
    %c12 = arith.constant 12 : index
    %35 = vector.load %arg1[%c0_38, %c0_39, %c0_40, %c12] : memref<1x1x16x42xbf16, #tpu.memory_space<vmem>>, vector<1x1x16x24xbf16>
    %36 = vector.shape_cast %35 : vector<1x1x16x24xbf16> to vector<16x24xbf16>
    %c6_41 = arith.constant 6 : index
    %c0_42 = arith.constant 0 : index
    %c0_43 = arith.constant 0 : index
    %37 = vector.load %arg3[%c6_41, %c0_42, %c0_43] : memref<9x32x16xbf16, #tpu.memory_space<vmem>>, vector<1x32x16xbf16>
    %38 = vector.shape_cast %37 : vector<1x32x16xbf16> to vector<32x16xbf16>
    %cst_44 = arith.constant dense<0.000000e+00> : vector<32x24xf32>
    %39 = tpu.matmul %38, %36, %cst_44 {dimension_numbers = #tpu.dot_dimension_numbers<[1], [0], [0], [1], [0, 0, 1, 1], [], []>} : vector<32x16xbf16>, vector<16x24xbf16>, vector<32x24xf32> -> vector<32x24xf32>
    %40 = arith.addf %34, %39 : vector<32x24xf32>
    %c0_45 = arith.constant 0 : index
    %c0_46 = arith.constant 0 : index
    %c0_47 = arith.constant 0 : index
    %c13 = arith.constant 13 : index
    %41 = vector.load %arg1[%c0_45, %c0_46, %c0_47, %c13] : memref<1x1x16x42xbf16, #tpu.memory_space<vmem>>, vector<1x1x16x24xbf16>
    %42 = vector.shape_cast %41 : vector<1x1x16x24xbf16> to vector<16x24xbf16>
    %c7_48 = arith.constant 7 : index
    %c0_49 = arith.constant 0 : index
    %c0_50 = arith.constant 0 : index
    %43 = vector.load %arg3[%c7_48, %c0_49, %c0_50] : memref<9x32x16xbf16, #tpu.memory_space<vmem>>, vector<1x32x16xbf16>
    %44 = vector.shape_cast %43 : vector<1x32x16xbf16> to vector<32x16xbf16>
    %cst_51 = arith.constant dense<0.000000e+00> : vector<32x24xf32>
    %45 = tpu.matmul %44, %42, %cst_51 {dimension_numbers = #tpu.dot_dimension_numbers<[1], [0], [0], [1], [0, 0, 1, 1], [], []>} : vector<32x16xbf16>, vector<16x24xbf16>, vector<32x24xf32> -> vector<32x24xf32>
    %46 = arith.addf %40, %45 : vector<32x24xf32>
    %c0_52 = arith.constant 0 : index
    %c0_53 = arith.constant 0 : index
    %c0_54 = arith.constant 0 : index
    %c14 = arith.constant 14 : index
    %47 = vector.load %arg1[%c0_52, %c0_53, %c0_54, %c14] : memref<1x1x16x42xbf16, #tpu.memory_space<vmem>>, vector<1x1x16x24xbf16>
    %48 = vector.shape_cast %47 : vector<1x1x16x24xbf16> to vector<16x24xbf16>
    %c8_55 = arith.constant 8 : index
    %c0_56 = arith.constant 0 : index
    %c0_57 = arith.constant 0 : index
    %49 = vector.load %arg3[%c8_55, %c0_56, %c0_57] : memref<9x32x16xbf16, #tpu.memory_space<vmem>>, vector<1x32x16xbf16>
    %50 = vector.shape_cast %49 : vector<1x32x16xbf16> to vector<32x16xbf16>
    %cst_58 = arith.constant dense<0.000000e+00> : vector<32x24xf32>
    %51 = tpu.matmul %50, %48, %cst_58 {dimension_numbers = #tpu.dot_dimension_numbers<[1], [0], [0], [1], [0, 0, 1, 1], [], []>} : vector<32x16xbf16>, vector<16x24xbf16>, vector<32x24xf32> -> vector<32x24xf32>
    %52 = arith.addf %46, %51 : vector<32x24xf32>
    %c0_59 = arith.constant 0 : index
    %c0_60 = arith.constant 0 : index
    %c0_61 = arith.constant 0 : index
    %c0_62 = arith.constant 0 : index
    %53 = vector.load %arg2[%c0_59, %c0_60, %c0_61, %c0_62] : memref<1x1x16x42xbf16, #tpu.memory_space<vmem>>, vector<1x1x16x24xbf16>
    %54 = vector.shape_cast %53 : vector<1x1x16x24xbf16> to vector<16x24xbf16>
    %c0_63 = arith.constant 0 : index
    %c0_64 = arith.constant 0 : index
    %c0_65 = arith.constant 0 : index
    %55 = vector.load %arg4[%c0_63, %c0_64, %c0_65] : memref<9x32x16xbf16, #tpu.memory_space<vmem>>, vector<1x32x16xbf16>
    %56 = vector.shape_cast %55 : vector<1x32x16xbf16> to vector<32x16xbf16>
    %cst_66 = arith.constant dense<0.000000e+00> : vector<32x24xf32>
    %57 = tpu.matmul %56, %54, %cst_66 {dimension_numbers = #tpu.dot_dimension_numbers<[1], [0], [0], [1], [0, 0, 1, 1], [], []>} : vector<32x16xbf16>, vector<16x24xbf16>, vector<32x24xf32> -> vector<32x24xf32>
    %58 = arith.addf %52, %57 : vector<32x24xf32>
    %c0_67 = arith.constant 0 : index
    %c0_68 = arith.constant 0 : index
    %c0_69 = arith.constant 0 : index
    %c1_70 = arith.constant 1 : index
    %59 = vector.load %arg2[%c0_67, %c0_68, %c0_69, %c1_70] : memref<1x1x16x42xbf16, #tpu.memory_space<vmem>>, vector<1x1x16x24xbf16>
    %60 = vector.shape_cast %59 : vector<1x1x16x24xbf16> to vector<16x24xbf16>
    %c1_71 = arith.constant 1 : index
    %c0_72 = arith.constant 0 : index
    %c0_73 = arith.constant 0 : index
    %61 = vector.load %arg4[%c1_71, %c0_72, %c0_73] : memref<9x32x16xbf16, #tpu.memory_space<vmem>>, vector<1x32x16xbf16>
    %62 = vector.shape_cast %61 : vector<1x32x16xbf16> to vector<32x16xbf16>
    %cst_74 = arith.constant dense<0.000000e+00> : vector<32x24xf32>
    %63 = tpu.matmul %62, %60, %cst_74 {dimension_numbers = #tpu.dot_dimension_numbers<[1], [0], [0], [1], [0, 0, 1, 1], [], []>} : vector<32x16xbf16>, vector<16x24xbf16>, vector<32x24xf32> -> vector<32x24xf32>
    %64 = arith.addf %58, %63 : vector<32x24xf32>
    %c0_75 = arith.constant 0 : index
    %c0_76 = arith.constant 0 : index
    %c0_77 = arith.constant 0 : index
    %c2_78 = arith.constant 2 : index
    %65 = vector.load %arg2[%c0_75, %c0_76, %c0_77, %c2_78] : memref<1x1x16x42xbf16, #tpu.memory_space<vmem>>, vector<1x1x16x24xbf16>
    %66 = vector.shape_cast %65 : vector<1x1x16x24xbf16> to vector<16x24xbf16>
    %c2_79 = arith.constant 2 : index
    %c0_80 = arith.constant 0 : index
    %c0_81 = arith.constant 0 : index
    %67 = vector.load %arg4[%c2_79, %c0_80, %c0_81] : memref<9x32x16xbf16, #tpu.memory_space<vmem>>, vector<1x32x16xbf16>
    %68 = vector.shape_cast %67 : vector<1x32x16xbf16> to vector<32x16xbf16>
    %cst_82 = arith.constant dense<0.000000e+00> : vector<32x24xf32>
    %69 = tpu.matmul %68, %66, %cst_82 {dimension_numbers = #tpu.dot_dimension_numbers<[1], [0], [0], [1], [0, 0, 1, 1], [], []>} : vector<32x16xbf16>, vector<16x24xbf16>, vector<32x24xf32> -> vector<32x24xf32>
    %70 = arith.addf %64, %69 : vector<32x24xf32>
    %c0_83 = arith.constant 0 : index
    %c0_84 = arith.constant 0 : index
    %c0_85 = arith.constant 0 : index
    %c6_86 = arith.constant 6 : index
    %71 = vector.load %arg2[%c0_83, %c0_84, %c0_85, %c6_86] : memref<1x1x16x42xbf16, #tpu.memory_space<vmem>>, vector<1x1x16x24xbf16>
    %72 = vector.shape_cast %71 : vector<1x1x16x24xbf16> to vector<16x24xbf16>
    %c3_87 = arith.constant 3 : index
    %c0_88 = arith.constant 0 : index
    %c0_89 = arith.constant 0 : index
    %73 = vector.load %arg4[%c3_87, %c0_88, %c0_89] : memref<9x32x16xbf16, #tpu.memory_space<vmem>>, vector<1x32x16xbf16>
    %74 = vector.shape_cast %73 : vector<1x32x16xbf16> to vector<32x16xbf16>
    %cst_90 = arith.constant dense<0.000000e+00> : vector<32x24xf32>
    %75 = tpu.matmul %74, %72, %cst_90 {dimension_numbers = #tpu.dot_dimension_numbers<[1], [0], [0], [1], [0, 0, 1, 1], [], []>} : vector<32x16xbf16>, vector<16x24xbf16>, vector<32x24xf32> -> vector<32x24xf32>
    %76 = arith.addf %70, %75 : vector<32x24xf32>
    %c0_91 = arith.constant 0 : index
    %c0_92 = arith.constant 0 : index
    %c0_93 = arith.constant 0 : index
    %c7_94 = arith.constant 7 : index
    %77 = vector.load %arg2[%c0_91, %c0_92, %c0_93, %c7_94] : memref<1x1x16x42xbf16, #tpu.memory_space<vmem>>, vector<1x1x16x24xbf16>
    %78 = vector.shape_cast %77 : vector<1x1x16x24xbf16> to vector<16x24xbf16>
    %c4_95 = arith.constant 4 : index
    %c0_96 = arith.constant 0 : index
    %c0_97 = arith.constant 0 : index
    %79 = vector.load %arg4[%c4_95, %c0_96, %c0_97] : memref<9x32x16xbf16, #tpu.memory_space<vmem>>, vector<1x32x16xbf16>
    %80 = vector.shape_cast %79 : vector<1x32x16xbf16> to vector<32x16xbf16>
    %cst_98 = arith.constant dense<0.000000e+00> : vector<32x24xf32>
    %81 = tpu.matmul %80, %78, %cst_98 {dimension_numbers = #tpu.dot_dimension_numbers<[1], [0], [0], [1], [0, 0, 1, 1], [], []>} : vector<32x16xbf16>, vector<16x24xbf16>, vector<32x24xf32> -> vector<32x24xf32>
    %82 = arith.addf %76, %81 : vector<32x24xf32>
    %c0_99 = arith.constant 0 : index
    %c0_100 = arith.constant 0 : index
    %c0_101 = arith.constant 0 : index
    %c8_102 = arith.constant 8 : index
    %83 = vector.load %arg2[%c0_99, %c0_100, %c0_101, %c8_102] : memref<1x1x16x42xbf16, #tpu.memory_space<vmem>>, vector<1x1x16x24xbf16>
    %84 = vector.shape_cast %83 : vector<1x1x16x24xbf16> to vector<16x24xbf16>
    %c5_103 = arith.constant 5 : index
    %c0_104 = arith.constant 0 : index
    %c0_105 = arith.constant 0 : index
    %85 = vector.load %arg4[%c5_103, %c0_104, %c0_105] : memref<9x32x16xbf16, #tpu.memory_space<vmem>>, vector<1x32x16xbf16>
    %86 = vector.shape_cast %85 : vector<1x32x16xbf16> to vector<32x16xbf16>
    %cst_106 = arith.constant dense<0.000000e+00> : vector<32x24xf32>
    %87 = tpu.matmul %86, %84, %cst_106 {dimension_numbers = #tpu.dot_dimension_numbers<[1], [0], [0], [1], [0, 0, 1, 1], [], []>} : vector<32x16xbf16>, vector<16x24xbf16>, vector<32x24xf32> -> vector<32x24xf32>
    %88 = arith.addf %82, %87 : vector<32x24xf32>
    %c0_107 = arith.constant 0 : index
    %c0_108 = arith.constant 0 : index
    %c0_109 = arith.constant 0 : index
    %c12_110 = arith.constant 12 : index
    %89 = vector.load %arg2[%c0_107, %c0_108, %c0_109, %c12_110] : memref<1x1x16x42xbf16, #tpu.memory_space<vmem>>, vector<1x1x16x24xbf16>
    %90 = vector.shape_cast %89 : vector<1x1x16x24xbf16> to vector<16x24xbf16>
    %c6_111 = arith.constant 6 : index
    %c0_112 = arith.constant 0 : index
    %c0_113 = arith.constant 0 : index
    %91 = vector.load %arg4[%c6_111, %c0_112, %c0_113] : memref<9x32x16xbf16, #tpu.memory_space<vmem>>, vector<1x32x16xbf16>
    %92 = vector.shape_cast %91 : vector<1x32x16xbf16> to vector<32x16xbf16>
    %cst_114 = arith.constant dense<0.000000e+00> : vector<32x24xf32>
    %93 = tpu.matmul %92, %90, %cst_114 {dimension_numbers = #tpu.dot_dimension_numbers<[1], [0], [0], [1], [0, 0, 1, 1], [], []>} : vector<32x16xbf16>, vector<16x24xbf16>, vector<32x24xf32> -> vector<32x24xf32>
    %94 = arith.addf %88, %93 : vector<32x24xf32>
    %c0_115 = arith.constant 0 : index
    %c0_116 = arith.constant 0 : index
    %c0_117 = arith.constant 0 : index
    %c13_118 = arith.constant 13 : index
    %95 = vector.load %arg2[%c0_115, %c0_116, %c0_117, %c13_118] : memref<1x1x16x42xbf16, #tpu.memory_space<vmem>>, vector<1x1x16x24xbf16>
    %96 = vector.shape_cast %95 : vector<1x1x16x24xbf16> to vector<16x24xbf16>
    %c7_119 = arith.constant 7 : index
    %c0_120 = arith.constant 0 : index
    %c0_121 = arith.constant 0 : index
    %97 = vector.load %arg4[%c7_119, %c0_120, %c0_121] : memref<9x32x16xbf16, #tpu.memory_space<vmem>>, vector<1x32x16xbf16>
    %98 = vector.shape_cast %97 : vector<1x32x16xbf16> to vector<32x16xbf16>
    %cst_122 = arith.constant dense<0.000000e+00> : vector<32x24xf32>
    %99 = tpu.matmul %98, %96, %cst_122 {dimension_numbers = #tpu.dot_dimension_numbers<[1], [0], [0], [1], [0, 0, 1, 1], [], []>} : vector<32x16xbf16>, vector<16x24xbf16>, vector<32x24xf32> -> vector<32x24xf32>
    %100 = arith.addf %94, %99 : vector<32x24xf32>
    %c0_123 = arith.constant 0 : index
    %c0_124 = arith.constant 0 : index
    %c0_125 = arith.constant 0 : index
    %c14_126 = arith.constant 14 : index
    %101 = vector.load %arg2[%c0_123, %c0_124, %c0_125, %c14_126] : memref<1x1x16x42xbf16, #tpu.memory_space<vmem>>, vector<1x1x16x24xbf16>
    %102 = vector.shape_cast %101 : vector<1x1x16x24xbf16> to vector<16x24xbf16>
    %c8_127 = arith.constant 8 : index
    %c0_128 = arith.constant 0 : index
    %c0_129 = arith.constant 0 : index
    %103 = vector.load %arg4[%c8_127, %c0_128, %c0_129] : memref<9x32x16xbf16, #tpu.memory_space<vmem>>, vector<1x32x16xbf16>
    %104 = vector.shape_cast %103 : vector<1x32x16xbf16> to vector<32x16xbf16>
    %cst_130 = arith.constant dense<0.000000e+00> : vector<32x24xf32>
    %105 = tpu.matmul %104, %102, %cst_130 {dimension_numbers = #tpu.dot_dimension_numbers<[1], [0], [0], [1], [0, 0, 1, 1], [], []>} : vector<32x16xbf16>, vector<16x24xbf16>, vector<32x24xf32> -> vector<32x24xf32>
    %106 = arith.addf %100, %105 : vector<32x24xf32>
    %c0_131 = arith.constant 0 : index
    %c0_132 = arith.constant 0 : index
    %c0_133 = arith.constant 0 : index
    %107 = vector.load %arg5[%c0_131, %c0_132, %c0_133] : memref<1x32x1xf32, #tpu.memory_space<vmem>>, vector<1x32x1xf32>
    %108 = vector.shape_cast %107 : vector<1x32x1xf32> to vector<32x1xf32>
    %109 = vector.broadcast %108 : vector<32x1xf32> to vector<32x24xf32>
    %110 = arith.addf %106, %109 : vector<32x24xf32>
    %c0_134 = arith.constant 0 : index
    %c0_135 = arith.constant 0 : index
    %c0_136 = arith.constant 0 : index
    %c0_137 = arith.constant 0 : index
    %111 = vector.load %arg6[%c0_134, %c0_135, %c0_136, %c0_137] : memref<1x1x32x24xf32, #tpu.memory_space<vmem>>, vector<1x1x32x24xf32>
    %112 = vector.shape_cast %111 : vector<1x1x32x24xf32> to vector<32x24xf32>
    %113 = vector.shape_cast %110 : vector<32x24xf32> to vector<1x1x32x24xf32>
    tpu.vector_store %arg6[%c0_134, %c0_135, %c0_136, %c0_137], %113 {strides = array<i32>} : memref<1x1x32x24xf32, #tpu.memory_space<vmem>>, vector<1x1x32x24xf32>,
    return
  }
  func.func @transform_0(%arg0: i32) -> (i32, i32, i32, i32) {
    %c0_i32 = arith.constant 0 : i32
    %c0_i32_0 = arith.constant 0 : i32
    %c0_i32_1 = arith.constant 0 : i32
    %c0_i32_2 = arith.constant 0 : i32
    return %arg0, %c0_i32, %c0_i32_0, %c0_i32_1 : i32, i32, i32, i32
  }
  func.func @transform_1(%arg0: i32) -> (i32, i32, i32, i32) {
    %c0_i32 = arith.constant 0 : i32
    %c0_i32_0 = arith.constant 0 : i32
    %c0_i32_1 = arith.constant 0 : i32
    %c0_i32_2 = arith.constant 0 : i32
    return %arg0, %c0_i32, %c0_i32_0, %c0_i32_1 : i32, i32, i32, i32
  }
  func.func @transform_2(%arg0: i32) -> (i32, i32, i32) {
    %c0_i32 = arith.constant 0 : i32
    %c0_i32_0 = arith.constant 0 : i32
    %c0_i32_1 = arith.constant 0 : i32
    %c0_i32_2 = arith.constant 0 : i32
    return %c0_i32, %c0_i32_0, %c0_i32_1 : i32, i32, i32
  }
  func.func @transform_3(%arg0: i32) -> (i32, i32, i32) {
    %c0_i32 = arith.constant 0 : i32
    %c0_i32_0 = arith.constant 0 : i32
    %c0_i32_1 = arith.constant 0 : i32
    %c0_i32_2 = arith.constant 0 : i32
    return %c0_i32, %c0_i32_0, %c0_i32_1 : i32, i32, i32
  }
  func.func @transform_4(%arg0: i32) -> (i32, i32, i32) {
    %c0_i32 = arith.constant 0 : i32
    %c0_i32_0 = arith.constant 0 : i32
    %c0_i32_1 = arith.constant 0 : i32
    %c0_i32_2 = arith.constant 0 : i32
    return %c0_i32, %c0_i32_0, %c0_i32_1 : i32, i32, i32
  }
  func.func @transform_5(%arg0: i32) -> (i32, i32, i32, i32) {
    %c0_i32 = arith.constant 0 : i32
    %c0_i32_0 = arith.constant 0 : i32
    %c0_i32_1 = arith.constant 0 : i32
    %c0_i32_2 = arith.constant 0 : i32
    return %arg0, %c0_i32, %c0_i32_0, %c0_i32_1 : i32, i32, i32, i32
  }
}

module attributes {stable_mosaic.version = 11 : i64} {
  func.func @_quant_rate_cond_kernel(%arg0: i32, %arg1: memref<1x16x16xf32, #tpu.memory_space<vmem>>, %arg2: memref<1x32x16xf32, #tpu.memory_space<vmem>>, %arg3: memref<1x16x16xf32, #tpu.memory_space<vmem>>, %arg4: memref<1x16x16xf32, #tpu.memory_space<vmem>>) attributes {dimension_semantics = [#tpu.dimension_semantics<parallel>], iteration_bounds = array<i64: 2>, scalar_prefetch = 0 : i64, scratch_operands = 0 : i64, tpu.core_type = #tpu.core_type<tc>, window_params = [{transform_indices = @transform_0, window_bounds = array<i64: 1, 16, 16>}, {transform_indices = @transform_1, window_bounds = array<i64: 1, 32, 16>}, {transform_indices = @transform_2, window_bounds = array<i64: 1, 16, 16>}, {transform_indices = @transform_3, window_bounds = array<i64: 1, 16, 16>}]} {
    %c0 = arith.constant 0 : index
    %c0_0 = arith.constant 0 : index
    %c0_1 = arith.constant 0 : index
    %0 = vector.load %arg1[%c0, %c0_0, %c0_1] : memref<1x16x16xf32, #tpu.memory_space<vmem>>, vector<1x16x16xf32>
    %1 = vector.shape_cast %0 : vector<1x16x16xf32> to vector<16x16xf32>
    %c0_2 = arith.constant 0 : index
    %c0_3 = arith.constant 0 : index
    %c0_4 = arith.constant 0 : index
    %2 = vector.load %arg2[%c0_2, %c0_3, %c0_4] : memref<1x32x16xf32, #tpu.memory_space<vmem>>, vector<1x16x16xf32>
    %3 = vector.shape_cast %2 : vector<1x16x16xf32> to vector<16x16xf32>
    %c0_5 = arith.constant 0 : index
    %c16 = arith.constant 16 : index
    %c0_6 = arith.constant 0 : index
    %4 = vector.load %arg2[%c0_5, %c16, %c0_6] : memref<1x32x16xf32, #tpu.memory_space<vmem>>, vector<1x16x16xf32>
    %5 = vector.shape_cast %4 : vector<1x16x16xf32> to vector<16x16xf32>
    %cst = arith.constant 0.000000e+00 : f32
    %6 = vector.broadcast %cst : f32 to vector<16x16xf32>
    %7 = arith.maximumf %5, %6 : vector<16x16xf32>
    %8 = math.absf %5 : vector<16x16xf32>
    %cst_7 = arith.constant 0.000000e+00 : f32
    %9 = vector.broadcast %cst_7 : f32 to vector<16x16xf32>
    %10 = arith.subf %9, %8 : vector<16x16xf32>
    %11 = math.exp %10 : vector<16x16xf32>
    %cst_8 = arith.constant 1.000000e+00 : f32
    %12 = vector.broadcast %cst_8 : f32 to vector<16x16xf32>
    %13 = arith.addf %12, %11 : vector<16x16xf32>
    %14 = math.log %13 : vector<16x16xf32>
    %15 = arith.addf %7, %14 : vector<16x16xf32>
    %cst_9 = arith.constant 9.99999997E-7 : f32
    %16 = vector.broadcast %cst_9 : f32 to vector<16x16xf32>
    %17 = arith.addf %15, %16 : vector<16x16xf32>
    %18 = tpu.reciprocal %17 {approx = true} : vector<16x16xf32> -> vector<16x16xf32>
    %19 = arith.subf %1, %3 : vector<16x16xf32>
    %cst_10 = arith.constant 5.000000e-01 : f32
    %20 = vector.broadcast %cst_10 : f32 to vector<16x16xf32>
    %21 = arith.addf %19, %20 : vector<16x16xf32>
    %22 = math.floor %21 : vector<16x16xf32>
    %cst_11 = arith.constant 5.000000e-01 : f32
    %23 = vector.broadcast %cst_11 : f32 to vector<16x16xf32>
    %24 = arith.addf %22, %23 : vector<16x16xf32>
    %25 = arith.mulf %24, %18 : vector<16x16xf32>
    %cst_12 = arith.constant 4.471500e-02 : f32
    %26 = vector.broadcast %cst_12 : f32 to vector<16x16xf32>
    %27 = arith.mulf %26, %25 : vector<16x16xf32>
    %28 = arith.mulf %27, %25 : vector<16x16xf32>
    %29 = arith.mulf %28, %25 : vector<16x16xf32>
    %30 = arith.addf %25, %29 : vector<16x16xf32>
    %cst_13 = arith.constant 0.797884583 : f32
    %31 = vector.broadcast %cst_13 : f32 to vector<16x16xf32>
    %32 = arith.mulf %31, %30 : vector<16x16xf32>
    %33 = math.tanh %32 : vector<16x16xf32>
    %cst_14 = arith.constant 1.000000e+00 : f32
    %34 = vector.broadcast %cst_14 : f32 to vector<16x16xf32>
    %35 = arith.addf %34, %33 : vector<16x16xf32>
    %cst_15 = arith.constant 5.000000e-01 : f32
    %36 = vector.broadcast %cst_15 : f32 to vector<16x16xf32>
    %37 = arith.mulf %36, %35 : vector<16x16xf32>
    %cst_16 = arith.constant 5.000000e-01 : f32
    %38 = vector.broadcast %cst_16 : f32 to vector<16x16xf32>
    %39 = arith.subf %22, %38 : vector<16x16xf32>
    %40 = arith.mulf %39, %18 : vector<16x16xf32>
    %cst_17 = arith.constant 4.471500e-02 : f32
    %41 = vector.broadcast %cst_17 : f32 to vector<16x16xf32>
    %42 = arith.mulf %41, %40 : vector<16x16xf32>
    %43 = arith.mulf %42, %40 : vector<16x16xf32>
    %44 = arith.mulf %43, %40 : vector<16x16xf32>
    %45 = arith.addf %40, %44 : vector<16x16xf32>
    %cst_18 = arith.constant 0.797884583 : f32
    %46 = vector.broadcast %cst_18 : f32 to vector<16x16xf32>
    %47 = arith.mulf %46, %45 : vector<16x16xf32>
    %48 = math.tanh %47 : vector<16x16xf32>
    %cst_19 = arith.constant 1.000000e+00 : f32
    %49 = vector.broadcast %cst_19 : f32 to vector<16x16xf32>
    %50 = arith.addf %49, %48 : vector<16x16xf32>
    %cst_20 = arith.constant 5.000000e-01 : f32
    %51 = vector.broadcast %cst_20 : f32 to vector<16x16xf32>
    %52 = arith.mulf %51, %50 : vector<16x16xf32>
    %53 = arith.subf %37, %52 : vector<16x16xf32>
    %54 = arith.addf %22, %3 : vector<16x16xf32>
    %c0_21 = arith.constant 0 : index
    %c0_22 = arith.constant 0 : index
    %c0_23 = arith.constant 0 : index
    %55 = vector.load %arg3[%c0_21, %c0_22, %c0_23] : memref<1x16x16xf32, #tpu.memory_space<vmem>>, vector<1x16x16xf32>
    %56 = vector.shape_cast %55 : vector<1x16x16xf32> to vector<16x16xf32>
    %57 = vector.shape_cast %54 : vector<16x16xf32> to vector<1x16x16xf32>
    tpu.vector_store %arg3[%c0_21, %c0_22, %c0_23], %57 {strides = array<i32>} : memref<1x16x16xf32, #tpu.memory_space<vmem>>, vector<1x16x16xf32>,
    %cst_24 = arith.constant 9.99999971E-10 : f32
    %58 = vector.broadcast %cst_24 : f32 to vector<16x16xf32>
    %59 = arith.maximumf %53, %58 : vector<16x16xf32>
    %60 = math.log %59 : vector<16x16xf32>
    %cst_25 = arith.constant 0.000000e+00 : f32
    %61 = vector.broadcast %cst_25 : f32 to vector<16x16xf32>
    %62 = arith.subf %61, %60 : vector<16x16xf32>
    %cst_26 = arith.constant 1.44269502 : f32
    %63 = vector.broadcast %cst_26 : f32 to vector<16x16xf32>
    %64 = arith.mulf %62, %63 : vector<16x16xf32>
    %c0_27 = arith.constant 0 : index
    %c0_28 = arith.constant 0 : index
    %c0_29 = arith.constant 0 : index
    %65 = vector.load %arg4[%c0_27, %c0_28, %c0_29] : memref<1x16x16xf32, #tpu.memory_space<vmem>>, vector<1x16x16xf32>
    %66 = vector.shape_cast %65 : vector<1x16x16xf32> to vector<16x16xf32>
    %67 = vector.shape_cast %64 : vector<16x16xf32> to vector<1x16x16xf32>
    tpu.vector_store %arg4[%c0_27, %c0_28, %c0_29], %67 {strides = array<i32>} : memref<1x16x16xf32, #tpu.memory_space<vmem>>, vector<1x16x16xf32>,
    return
  }
  func.func @transform_0(%arg0: i32) -> (i32, i32, i32) {
    %c0_i32 = arith.constant 0 : i32
    %c0_i32_0 = arith.constant 0 : i32
    %c0_i32_1 = arith.constant 0 : i32
    return %arg0, %c0_i32, %c0_i32_0 : i32, i32, i32
  }
  func.func @transform_1(%arg0: i32) -> (i32, i32, i32) {
    %c0_i32 = arith.constant 0 : i32
    %c0_i32_0 = arith.constant 0 : i32
    %c0_i32_1 = arith.constant 0 : i32
    return %arg0, %c0_i32, %c0_i32_0 : i32, i32, i32
  }
  func.func @transform_2(%arg0: i32) -> (i32, i32, i32) {
    %c0_i32 = arith.constant 0 : i32
    %c0_i32_0 = arith.constant 0 : i32
    %c0_i32_1 = arith.constant 0 : i32
    return %arg0, %c0_i32, %c0_i32_0 : i32, i32, i32
  }
  func.func @transform_3(%arg0: i32) -> (i32, i32, i32) {
    %c0_i32 = arith.constant 0 : i32
    %c0_i32_0 = arith.constant 0 : i32
    %c0_i32_1 = arith.constant 0 : i32
    return %arg0, %c0_i32, %c0_i32_0 : i32, i32, i32
  }
}

module attributes {stable_mosaic.version = 11 : i64} {
  func.func @_tapconv_kernel(%arg0: i32, %arg1: memref<1x1x16x30xbf16, #tpu.memory_space<vmem>>, %arg2: memref<1x1x16x30xbf16, #tpu.memory_space<vmem>>, %arg3: memref<9x32x16xbf16, #tpu.memory_space<vmem>>, %arg4: memref<9x32x16xbf16, #tpu.memory_space<vmem>>, %arg5: memref<4x32x1xf32, #tpu.memory_space<vmem>>, %arg6: memref<1x4x32x20xbf16, #tpu.memory_space<vmem>>) attributes {dimension_semantics = [#tpu.dimension_semantics<parallel>], iteration_bounds = array<i64: 2>, scalar_prefetch = 0 : i64, scratch_operands = 0 : i64, tpu.core_type = #tpu.core_type<tc>, window_params = [{transform_indices = @transform_0, window_bounds = array<i64: 1, 1, 16, 30>}, {transform_indices = @transform_1, window_bounds = array<i64: 1, 1, 16, 30>}, {pipeline_mode = #tpu.pipeline_mode<synchronous>, transform_indices = @transform_2, window_bounds = array<i64: 9, 32, 16>}, {pipeline_mode = #tpu.pipeline_mode<synchronous>, transform_indices = @transform_3, window_bounds = array<i64: 9, 32, 16>}, {pipeline_mode = #tpu.pipeline_mode<synchronous>, transform_indices = @transform_4, window_bounds = array<i64: 4, 32, 1>}, {transform_indices = @transform_5, window_bounds = array<i64: 1, 4, 32, 20>}]} {
    %c0 = arith.constant 0 : index
    %c0_0 = arith.constant 0 : index
    %c0_1 = arith.constant 0 : index
    %c0_2 = arith.constant 0 : index
    %0 = vector.load %arg1[%c0, %c0_0, %c0_1, %c0_2] : memref<1x1x16x30xbf16, #tpu.memory_space<vmem>>, vector<1x1x16x20xbf16>
    %1 = vector.shape_cast %0 : vector<1x1x16x20xbf16> to vector<16x20xbf16>
    %c0_3 = arith.constant 0 : index
    %c0_4 = arith.constant 0 : index
    %c0_5 = arith.constant 0 : index
    %2 = vector.load %arg3[%c0_3, %c0_4, %c0_5] : memref<9x32x16xbf16, #tpu.memory_space<vmem>>, vector<1x32x16xbf16>
    %3 = vector.shape_cast %2 : vector<1x32x16xbf16> to vector<32x16xbf16>
    %cst = arith.constant dense<0.000000e+00> : vector<32x20xf32>
    %4 = tpu.matmul %3, %1, %cst {dimension_numbers = #tpu.dot_dimension_numbers<[1], [0], [0], [1], [0, 0, 1, 1], [], []>} : vector<32x16xbf16>, vector<16x20xbf16>, vector<32x20xf32> -> vector<32x20xf32>
    %c0_6 = arith.constant 0 : index
    %c0_7 = arith.constant 0 : index
    %c0_8 = arith.constant 0 : index
    %c0_9 = arith.constant 0 : index
    %5 = vector.load %arg1[%c0_6, %c0_7, %c0_8, %c0_9] : memref<1x1x16x30xbf16, #tpu.memory_space<vmem>>, vector<1x1x16x20xbf16>
    %6 = vector.shape_cast %5 : vector<1x1x16x20xbf16> to vector<16x20xbf16>
    %c1 = arith.constant 1 : index
    %c0_10 = arith.constant 0 : index
    %c0_11 = arith.constant 0 : index
    %7 = vector.load %arg3[%c1, %c0_10, %c0_11] : memref<9x32x16xbf16, #tpu.memory_space<vmem>>, vector<1x32x16xbf16>
    %8 = vector.shape_cast %7 : vector<1x32x16xbf16> to vector<32x16xbf16>
    %cst_12 = arith.constant dense<0.000000e+00> : vector<32x20xf32>
    %9 = tpu.matmul %8, %6, %cst_12 {dimension_numbers = #tpu.dot_dimension_numbers<[1], [0], [0], [1], [0, 0, 1, 1], [], []>} : vector<32x16xbf16>, vector<16x20xbf16>, vector<32x20xf32> -> vector<32x20xf32>
    %c0_13 = arith.constant 0 : index
    %c0_14 = arith.constant 0 : index
    %c0_15 = arith.constant 0 : index
    %c1_16 = arith.constant 1 : index
    %10 = vector.load %arg1[%c0_13, %c0_14, %c0_15, %c1_16] : memref<1x1x16x30xbf16, #tpu.memory_space<vmem>>, vector<1x1x16x20xbf16>
    %11 = vector.shape_cast %10 : vector<1x1x16x20xbf16> to vector<16x20xbf16>
    %c2 = arith.constant 2 : index
    %c0_17 = arith.constant 0 : index
    %c0_18 = arith.constant 0 : index
    %12 = vector.load %arg3[%c2, %c0_17, %c0_18] : memref<9x32x16xbf16, #tpu.memory_space<vmem>>, vector<1x32x16xbf16>
    %13 = vector.shape_cast %12 : vector<1x32x16xbf16> to vector<32x16xbf16>
    %cst_19 = arith.constant dense<0.000000e+00> : vector<32x20xf32>
    %14 = tpu.matmul %13, %11, %cst_19 {dimension_numbers = #tpu.dot_dimension_numbers<[1], [0], [0], [1], [0, 0, 1, 1], [], []>} : vector<32x16xbf16>, vector<16x20xbf16>, vector<32x20xf32> -> vector<32x20xf32>
    %15 = arith.addf %9, %14 : vector<32x20xf32>
    %c0_20 = arith.constant 0 : index
    %c0_21 = arith.constant 0 : index
    %c0_22 = arith.constant 0 : index
    %c0_23 = arith.constant 0 : index
    %16 = vector.load %arg1[%c0_20, %c0_21, %c0_22, %c0_23] : memref<1x1x16x30xbf16, #tpu.memory_space<vmem>>, vector<1x1x16x20xbf16>
    %17 = vector.shape_cast %16 : vector<1x1x16x20xbf16> to vector<16x20xbf16>
    %c3 = arith.constant 3 : index
    %c0_24 = arith.constant 0 : index
    %c0_25 = arith.constant 0 : index
    %18 = vector.load %arg3[%c3, %c0_24, %c0_25] : memref<9x32x16xbf16, #tpu.memory_space<vmem>>, vector<1x32x16xbf16>
    %19 = vector.shape_cast %18 : vector<1x32x16xbf16> to vector<32x16xbf16>
    %cst_26 = arith.constant dense<0.000000e+00> : vector<32x20xf32>
    %20 = tpu.matmul %19, %17, %cst_26 {dimension_numbers = #tpu.dot_dimension_numbers<[1], [0], [0], [1], [0, 0, 1, 1], [], []>} : vector<32x16xbf16>, vector<16x20xbf16>, vector<32x20xf32> -> vector<32x20xf32>
    %c0_27 = arith.constant 0 : index
    %c0_28 = arith.constant 0 : index
    %c0_29 = arith.constant 0 : index
    %c5 = arith.constant 5 : index
    %21 = vector.load %arg1[%c0_27, %c0_28, %c0_29, %c5] : memref<1x1x16x30xbf16, #tpu.memory_space<vmem>>, vector<1x1x16x20xbf16>
    %22 = vector.shape_cast %21 : vector<1x1x16x20xbf16> to vector<16x20xbf16>
    %c4 = arith.constant 4 : index
    %c0_30 = arith.constant 0 : index
    %c0_31 = arith.constant 0 : index
    %23 = vector.load %arg3[%c4, %c0_30, %c0_31] : memref<9x32x16xbf16, #tpu.memory_space<vmem>>, vector<1x32x16xbf16>
    %24 = vector.shape_cast %23 : vector<1x32x16xbf16> to vector<32x16xbf16>
    %cst_32 = arith.constant dense<0.000000e+00> : vector<32x20xf32>
    %25 = tpu.matmul %24, %22, %cst_32 {dimension_numbers = #tpu.dot_dimension_numbers<[1], [0], [0], [1], [0, 0, 1, 1], [], []>} : vector<32x16xbf16>, vector<16x20xbf16>, vector<32x20xf32> -> vector<32x20xf32>
    %26 = arith.addf %20, %25 : vector<32x20xf32>
    %c0_33 = arith.constant 0 : index
    %c0_34 = arith.constant 0 : index
    %c0_35 = arith.constant 0 : index
    %c0_36 = arith.constant 0 : index
    %27 = vector.load %arg1[%c0_33, %c0_34, %c0_35, %c0_36] : memref<1x1x16x30xbf16, #tpu.memory_space<vmem>>, vector<1x1x16x20xbf16>
    %28 = vector.shape_cast %27 : vector<1x1x16x20xbf16> to vector<16x20xbf16>
    %c5_37 = arith.constant 5 : index
    %c0_38 = arith.constant 0 : index
    %c0_39 = arith.constant 0 : index
    %29 = vector.load %arg3[%c5_37, %c0_38, %c0_39] : memref<9x32x16xbf16, #tpu.memory_space<vmem>>, vector<1x32x16xbf16>
    %30 = vector.shape_cast %29 : vector<1x32x16xbf16> to vector<32x16xbf16>
    %cst_40 = arith.constant dense<0.000000e+00> : vector<32x20xf32>
    %31 = tpu.matmul %30, %28, %cst_40 {dimension_numbers = #tpu.dot_dimension_numbers<[1], [0], [0], [1], [0, 0, 1, 1], [], []>} : vector<32x16xbf16>, vector<16x20xbf16>, vector<32x20xf32> -> vector<32x20xf32>
    %c0_41 = arith.constant 0 : index
    %c0_42 = arith.constant 0 : index
    %c0_43 = arith.constant 0 : index
    %c1_44 = arith.constant 1 : index
    %32 = vector.load %arg1[%c0_41, %c0_42, %c0_43, %c1_44] : memref<1x1x16x30xbf16, #tpu.memory_space<vmem>>, vector<1x1x16x20xbf16>
    %33 = vector.shape_cast %32 : vector<1x1x16x20xbf16> to vector<16x20xbf16>
    %c6 = arith.constant 6 : index
    %c0_45 = arith.constant 0 : index
    %c0_46 = arith.constant 0 : index
    %34 = vector.load %arg3[%c6, %c0_45, %c0_46] : memref<9x32x16xbf16, #tpu.memory_space<vmem>>, vector<1x32x16xbf16>
    %35 = vector.shape_cast %34 : vector<1x32x16xbf16> to vector<32x16xbf16>
    %cst_47 = arith.constant dense<0.000000e+00> : vector<32x20xf32>
    %36 = tpu.matmul %35, %33, %cst_47 {dimension_numbers = #tpu.dot_dimension_numbers<[1], [0], [0], [1], [0, 0, 1, 1], [], []>} : vector<32x16xbf16>, vector<16x20xbf16>, vector<32x20xf32> -> vector<32x20xf32>
    %37 = arith.addf %31, %36 : vector<32x20xf32>
    %c0_48 = arith.constant 0 : index
    %c0_49 = arith.constant 0 : index
    %c0_50 = arith.constant 0 : index
    %c5_51 = arith.constant 5 : index
    %38 = vector.load %arg1[%c0_48, %c0_49, %c0_50, %c5_51] : memref<1x1x16x30xbf16, #tpu.memory_space<vmem>>, vector<1x1x16x20xbf16>
    %39 = vector.shape_cast %38 : vector<1x1x16x20xbf16> to vector<16x20xbf16>
    %c7 = arith.constant 7 : index
    %c0_52 = arith.constant 0 : index
    %c0_53 = arith.constant 0 : index
    %40 = vector.load %arg3[%c7, %c0_52, %c0_53] : memref<9x32x16xbf16, #tpu.memory_space<vmem>>, vector<1x32x16xbf16>
    %41 = vector.shape_cast %40 : vector<1x32x16xbf16> to vector<32x16xbf16>
    %cst_54 = arith.constant dense<0.000000e+00> : vector<32x20xf32>
    %42 = tpu.matmul %41, %39, %cst_54 {dimension_numbers = #tpu.dot_dimension_numbers<[1], [0], [0], [1], [0, 0, 1, 1], [], []>} : vector<32x16xbf16>, vector<16x20xbf16>, vector<32x20xf32> -> vector<32x20xf32>
    %43 = arith.addf %37, %42 : vector<32x20xf32>
    %c0_55 = arith.constant 0 : index
    %c0_56 = arith.constant 0 : index
    %c0_57 = arith.constant 0 : index
    %c6_58 = arith.constant 6 : index
    %44 = vector.load %arg1[%c0_55, %c0_56, %c0_57, %c6_58] : memref<1x1x16x30xbf16, #tpu.memory_space<vmem>>, vector<1x1x16x20xbf16>
    %45 = vector.shape_cast %44 : vector<1x1x16x20xbf16> to vector<16x20xbf16>
    %c8 = arith.constant 8 : index
    %c0_59 = arith.constant 0 : index
    %c0_60 = arith.constant 0 : index
    %46 = vector.load %arg3[%c8, %c0_59, %c0_60] : memref<9x32x16xbf16, #tpu.memory_space<vmem>>, vector<1x32x16xbf16>
    %47 = vector.shape_cast %46 : vector<1x32x16xbf16> to vector<32x16xbf16>
    %cst_61 = arith.constant dense<0.000000e+00> : vector<32x20xf32>
    %48 = tpu.matmul %47, %45, %cst_61 {dimension_numbers = #tpu.dot_dimension_numbers<[1], [0], [0], [1], [0, 0, 1, 1], [], []>} : vector<32x16xbf16>, vector<16x20xbf16>, vector<32x20xf32> -> vector<32x20xf32>
    %49 = arith.addf %43, %48 : vector<32x20xf32>
    %c0_62 = arith.constant 0 : index
    %c0_63 = arith.constant 0 : index
    %c0_64 = arith.constant 0 : index
    %c0_65 = arith.constant 0 : index
    %50 = vector.load %arg2[%c0_62, %c0_63, %c0_64, %c0_65] : memref<1x1x16x30xbf16, #tpu.memory_space<vmem>>, vector<1x1x16x20xbf16>
    %51 = vector.shape_cast %50 : vector<1x1x16x20xbf16> to vector<16x20xbf16>
    %c0_66 = arith.constant 0 : index
    %c0_67 = arith.constant 0 : index
    %c0_68 = arith.constant 0 : index
    %52 = vector.load %arg4[%c0_66, %c0_67, %c0_68] : memref<9x32x16xbf16, #tpu.memory_space<vmem>>, vector<1x32x16xbf16>
    %53 = vector.shape_cast %52 : vector<1x32x16xbf16> to vector<32x16xbf16>
    %cst_69 = arith.constant dense<0.000000e+00> : vector<32x20xf32>
    %54 = tpu.matmul %53, %51, %cst_69 {dimension_numbers = #tpu.dot_dimension_numbers<[1], [0], [0], [1], [0, 0, 1, 1], [], []>} : vector<32x16xbf16>, vector<16x20xbf16>, vector<32x20xf32> -> vector<32x20xf32>
    %55 = arith.addf %4, %54 : vector<32x20xf32>
    %c0_70 = arith.constant 0 : index
    %c0_71 = arith.constant 0 : index
    %c0_72 = arith.constant 0 : index
    %c0_73 = arith.constant 0 : index
    %56 = vector.load %arg2[%c0_70, %c0_71, %c0_72, %c0_73] : memref<1x1x16x30xbf16, #tpu.memory_space<vmem>>, vector<1x1x16x20xbf16>
    %57 = vector.shape_cast %56 : vector<1x1x16x20xbf16> to vector<16x20xbf16>
    %c1_74 = arith.constant 1 : index
    %c0_75 = arith.constant 0 : index
    %c0_76 = arith.constant 0 : index
    %58 = vector.load %arg4[%c1_74, %c0_75, %c0_76] : memref<9x32x16xbf16, #tpu.memory_space<vmem>>, vector<1x32x16xbf16>
    %59 = vector.shape_cast %58 : vector<1x32x16xbf16> to vector<32x16xbf16>
    %cst_77 = arith.constant dense<0.000000e+00> : vector<32x20xf32>
    %60 = tpu.matmul %59, %57, %cst_77 {dimension_numbers = #tpu.dot_dimension_numbers<[1], [0], [0], [1], [0, 0, 1, 1], [], []>} : vector<32x16xbf16>, vector<16x20xbf16>, vector<32x20xf32> -> vector<32x20xf32>
    %61 = arith.addf %15, %60 : vector<32x20xf32>
    %c0_78 = arith.constant 0 : index
    %c0_79 = arith.constant 0 : index
    %c0_80 = arith.constant 0 : index
    %c1_81 = arith.constant 1 : index
    %62 = vector.load %arg2[%c0_78, %c0_79, %c0_80, %c1_81] : memref<1x1x16x30xbf16, #tpu.memory_space<vmem>>, vector<1x1x16x20xbf16>
    %63 = vector.shape_cast %62 : vector<1x1x16x20xbf16> to vector<16x20xbf16>
    %c2_82 = arith.constant 2 : index
    %c0_83 = arith.constant 0 : index
    %c0_84 = arith.constant 0 : index
    %64 = vector.load %arg4[%c2_82, %c0_83, %c0_84] : memref<9x32x16xbf16, #tpu.memory_space<vmem>>, vector<1x32x16xbf16>
    %65 = vector.shape_cast %64 : vector<1x32x16xbf16> to vector<32x16xbf16>
    %cst_85 = arith.constant dense<0.000000e+00> : vector<32x20xf32>
    %66 = tpu.matmul %65, %63, %cst_85 {dimension_numbers = #tpu.dot_dimension_numbers<[1], [0], [0], [1], [0, 0, 1, 1], [], []>} : vector<32x16xbf16>, vector<16x20xbf16>, vector<32x20xf32> -> vector<32x20xf32>
    %67 = arith.addf %61, %66 : vector<32x20xf32>
    %c0_86 = arith.constant 0 : index
    %c0_87 = arith.constant 0 : index
    %c0_88 = arith.constant 0 : index
    %c0_89 = arith.constant 0 : index
    %68 = vector.load %arg2[%c0_86, %c0_87, %c0_88, %c0_89] : memref<1x1x16x30xbf16, #tpu.memory_space<vmem>>, vector<1x1x16x20xbf16>
    %69 = vector.shape_cast %68 : vector<1x1x16x20xbf16> to vector<16x20xbf16>
    %c3_90 = arith.constant 3 : index
    %c0_91 = arith.constant 0 : index
    %c0_92 = arith.constant 0 : index
    %70 = vector.load %arg4[%c3_90, %c0_91, %c0_92] : memref<9x32x16xbf16, #tpu.memory_space<vmem>>, vector<1x32x16xbf16>
    %71 = vector.shape_cast %70 : vector<1x32x16xbf16> to vector<32x16xbf16>
    %cst_93 = arith.constant dense<0.000000e+00> : vector<32x20xf32>
    %72 = tpu.matmul %71, %69, %cst_93 {dimension_numbers = #tpu.dot_dimension_numbers<[1], [0], [0], [1], [0, 0, 1, 1], [], []>} : vector<32x16xbf16>, vector<16x20xbf16>, vector<32x20xf32> -> vector<32x20xf32>
    %73 = arith.addf %26, %72 : vector<32x20xf32>
    %c0_94 = arith.constant 0 : index
    %c0_95 = arith.constant 0 : index
    %c0_96 = arith.constant 0 : index
    %c5_97 = arith.constant 5 : index
    %74 = vector.load %arg2[%c0_94, %c0_95, %c0_96, %c5_97] : memref<1x1x16x30xbf16, #tpu.memory_space<vmem>>, vector<1x1x16x20xbf16>
    %75 = vector.shape_cast %74 : vector<1x1x16x20xbf16> to vector<16x20xbf16>
    %c4_98 = arith.constant 4 : index
    %c0_99 = arith.constant 0 : index
    %c0_100 = arith.constant 0 : index
    %76 = vector.load %arg4[%c4_98, %c0_99, %c0_100] : memref<9x32x16xbf16, #tpu.memory_space<vmem>>, vector<1x32x16xbf16>
    %77 = vector.shape_cast %76 : vector<1x32x16xbf16> to vector<32x16xbf16>
    %cst_101 = arith.constant dense<0.000000e+00> : vector<32x20xf32>
    %78 = tpu.matmul %77, %75, %cst_101 {dimension_numbers = #tpu.dot_dimension_numbers<[1], [0], [0], [1], [0, 0, 1, 1], [], []>} : vector<32x16xbf16>, vector<16x20xbf16>, vector<32x20xf32> -> vector<32x20xf32>
    %79 = arith.addf %73, %78 : vector<32x20xf32>
    %c0_102 = arith.constant 0 : index
    %c0_103 = arith.constant 0 : index
    %c0_104 = arith.constant 0 : index
    %c0_105 = arith.constant 0 : index
    %80 = vector.load %arg2[%c0_102, %c0_103, %c0_104, %c0_105] : memref<1x1x16x30xbf16, #tpu.memory_space<vmem>>, vector<1x1x16x20xbf16>
    %81 = vector.shape_cast %80 : vector<1x1x16x20xbf16> to vector<16x20xbf16>
    %c5_106 = arith.constant 5 : index
    %c0_107 = arith.constant 0 : index
    %c0_108 = arith.constant 0 : index
    %82 = vector.load %arg4[%c5_106, %c0_107, %c0_108] : memref<9x32x16xbf16, #tpu.memory_space<vmem>>, vector<1x32x16xbf16>
    %83 = vector.shape_cast %82 : vector<1x32x16xbf16> to vector<32x16xbf16>
    %cst_109 = arith.constant dense<0.000000e+00> : vector<32x20xf32>
    %84 = tpu.matmul %83, %81, %cst_109 {dimension_numbers = #tpu.dot_dimension_numbers<[1], [0], [0], [1], [0, 0, 1, 1], [], []>} : vector<32x16xbf16>, vector<16x20xbf16>, vector<32x20xf32> -> vector<32x20xf32>
    %85 = arith.addf %49, %84 : vector<32x20xf32>
    %c0_110 = arith.constant 0 : index
    %c0_111 = arith.constant 0 : index
    %c0_112 = arith.constant 0 : index
    %c1_113 = arith.constant 1 : index
    %86 = vector.load %arg2[%c0_110, %c0_111, %c0_112, %c1_113] : memref<1x1x16x30xbf16, #tpu.memory_space<vmem>>, vector<1x1x16x20xbf16>
    %87 = vector.shape_cast %86 : vector<1x1x16x20xbf16> to vector<16x20xbf16>
    %c6_114 = arith.constant 6 : index
    %c0_115 = arith.constant 0 : index
    %c0_116 = arith.constant 0 : index
    %88 = vector.load %arg4[%c6_114, %c0_115, %c0_116] : memref<9x32x16xbf16, #tpu.memory_space<vmem>>, vector<1x32x16xbf16>
    %89 = vector.shape_cast %88 : vector<1x32x16xbf16> to vector<32x16xbf16>
    %cst_117 = arith.constant dense<0.000000e+00> : vector<32x20xf32>
    %90 = tpu.matmul %89, %87, %cst_117 {dimension_numbers = #tpu.dot_dimension_numbers<[1], [0], [0], [1], [0, 0, 1, 1], [], []>} : vector<32x16xbf16>, vector<16x20xbf16>, vector<32x20xf32> -> vector<32x20xf32>
    %91 = arith.addf %85, %90 : vector<32x20xf32>
    %c0_118 = arith.constant 0 : index
    %c0_119 = arith.constant 0 : index
    %c0_120 = arith.constant 0 : index
    %c5_121 = arith.constant 5 : index
    %92 = vector.load %arg2[%c0_118, %c0_119, %c0_120, %c5_121] : memref<1x1x16x30xbf16, #tpu.memory_space<vmem>>, vector<1x1x16x20xbf16>
    %93 = vector.shape_cast %92 : vector<1x1x16x20xbf16> to vector<16x20xbf16>
    %c7_122 = arith.constant 7 : index
    %c0_123 = arith.constant 0 : index
    %c0_124 = arith.constant 0 : index
    %94 = vector.load %arg4[%c7_122, %c0_123, %c0_124] : memref<9x32x16xbf16, #tpu.memory_space<vmem>>, vector<1x32x16xbf16>
    %95 = vector.shape_cast %94 : vector<1x32x16xbf16> to vector<32x16xbf16>
    %cst_125 = arith.constant dense<0.000000e+00> : vector<32x20xf32>
    %96 = tpu.matmul %95, %93, %cst_125 {dimension_numbers = #tpu.dot_dimension_numbers<[1], [0], [0], [1], [0, 0, 1, 1], [], []>} : vector<32x16xbf16>, vector<16x20xbf16>, vector<32x20xf32> -> vector<32x20xf32>
    %97 = arith.addf %91, %96 : vector<32x20xf32>
    %c0_126 = arith.constant 0 : index
    %c0_127 = arith.constant 0 : index
    %c0_128 = arith.constant 0 : index
    %c6_129 = arith.constant 6 : index
    %98 = vector.load %arg2[%c0_126, %c0_127, %c0_128, %c6_129] : memref<1x1x16x30xbf16, #tpu.memory_space<vmem>>, vector<1x1x16x20xbf16>
    %99 = vector.shape_cast %98 : vector<1x1x16x20xbf16> to vector<16x20xbf16>
    %c8_130 = arith.constant 8 : index
    %c0_131 = arith.constant 0 : index
    %c0_132 = arith.constant 0 : index
    %100 = vector.load %arg4[%c8_130, %c0_131, %c0_132] : memref<9x32x16xbf16, #tpu.memory_space<vmem>>, vector<1x32x16xbf16>
    %101 = vector.shape_cast %100 : vector<1x32x16xbf16> to vector<32x16xbf16>
    %cst_133 = arith.constant dense<0.000000e+00> : vector<32x20xf32>
    %102 = tpu.matmul %101, %99, %cst_133 {dimension_numbers = #tpu.dot_dimension_numbers<[1], [0], [0], [1], [0, 0, 1, 1], [], []>} : vector<32x16xbf16>, vector<16x20xbf16>, vector<32x20xf32> -> vector<32x20xf32>
    %103 = arith.addf %97, %102 : vector<32x20xf32>
    %c0_134 = arith.constant 0 : index
    %c0_135 = arith.constant 0 : index
    %c0_136 = arith.constant 0 : index
    %104 = vector.load %arg5[%c0_134, %c0_135, %c0_136] : memref<4x32x1xf32, #tpu.memory_space<vmem>>, vector<1x32x1xf32>
    %105 = vector.shape_cast %104 : vector<1x32x1xf32> to vector<32x1xf32>
    %106 = vector.broadcast %105 : vector<32x1xf32> to vector<32x20xf32>
    %107 = arith.addf %55, %106 : vector<32x20xf32>
    %cst_137 = arith.constant 0.000000e+00 : f32
    %108 = vector.broadcast %cst_137 : f32 to vector<32x20xf32>
    %109 = arith.maximumf %107, %108 : vector<32x20xf32>
    %110 = arith.truncf %109 : vector<32x20xf32> to vector<32x20xbf16>
    %c0_138 = arith.constant 0 : index
    %c0_139 = arith.constant 0 : index
    %c0_140 = arith.constant 0 : index
    %c0_141 = arith.constant 0 : index
    %111 = vector.load %arg6[%c0_138, %c0_139, %c0_140, %c0_141] : memref<1x4x32x20xbf16, #tpu.memory_space<vmem>>, vector<1x1x32x20xbf16>
    %112 = vector.shape_cast %111 : vector<1x1x32x20xbf16> to vector<32x20xbf16>
    %113 = vector.shape_cast %110 : vector<32x20xbf16> to vector<1x1x32x20xbf16>
    tpu.vector_store %arg6[%c0_138, %c0_139, %c0_140, %c0_141], %113 {strides = array<i32>} : memref<1x4x32x20xbf16, #tpu.memory_space<vmem>>, vector<1x1x32x20xbf16>,
    %c1_142 = arith.constant 1 : index
    %c0_143 = arith.constant 0 : index
    %c0_144 = arith.constant 0 : index
    %114 = vector.load %arg5[%c1_142, %c0_143, %c0_144] : memref<4x32x1xf32, #tpu.memory_space<vmem>>, vector<1x32x1xf32>
    %115 = vector.shape_cast %114 : vector<1x32x1xf32> to vector<32x1xf32>
    %116 = vector.broadcast %115 : vector<32x1xf32> to vector<32x20xf32>
    %117 = arith.addf %67, %116 : vector<32x20xf32>
    %cst_145 = arith.constant 0.000000e+00 : f32
    %118 = vector.broadcast %cst_145 : f32 to vector<32x20xf32>
    %119 = arith.maximumf %117, %118 : vector<32x20xf32>
    %120 = arith.truncf %119 : vector<32x20xf32> to vector<32x20xbf16>
    %c0_146 = arith.constant 0 : index
    %c1_147 = arith.constant 1 : index
    %c0_148 = arith.constant 0 : index
    %c0_149 = arith.constant 0 : index
    %121 = vector.load %arg6[%c0_146, %c1_147, %c0_148, %c0_149] : memref<1x4x32x20xbf16, #tpu.memory_space<vmem>>, vector<1x1x32x20xbf16>
    %122 = vector.shape_cast %121 : vector<1x1x32x20xbf16> to vector<32x20xbf16>
    %123 = vector.shape_cast %120 : vector<32x20xbf16> to vector<1x1x32x20xbf16>
    tpu.vector_store %arg6[%c0_146, %c1_147, %c0_148, %c0_149], %123 {strides = array<i32>} : memref<1x4x32x20xbf16, #tpu.memory_space<vmem>>, vector<1x1x32x20xbf16>,
    %c2_150 = arith.constant 2 : index
    %c0_151 = arith.constant 0 : index
    %c0_152 = arith.constant 0 : index
    %124 = vector.load %arg5[%c2_150, %c0_151, %c0_152] : memref<4x32x1xf32, #tpu.memory_space<vmem>>, vector<1x32x1xf32>
    %125 = vector.shape_cast %124 : vector<1x32x1xf32> to vector<32x1xf32>
    %126 = vector.broadcast %125 : vector<32x1xf32> to vector<32x20xf32>
    %127 = arith.addf %79, %126 : vector<32x20xf32>
    %cst_153 = arith.constant 0.000000e+00 : f32
    %128 = vector.broadcast %cst_153 : f32 to vector<32x20xf32>
    %129 = arith.maximumf %127, %128 : vector<32x20xf32>
    %130 = arith.truncf %129 : vector<32x20xf32> to vector<32x20xbf16>
    %c0_154 = arith.constant 0 : index
    %c2_155 = arith.constant 2 : index
    %c0_156 = arith.constant 0 : index
    %c0_157 = arith.constant 0 : index
    %131 = vector.load %arg6[%c0_154, %c2_155, %c0_156, %c0_157] : memref<1x4x32x20xbf16, #tpu.memory_space<vmem>>, vector<1x1x32x20xbf16>
    %132 = vector.shape_cast %131 : vector<1x1x32x20xbf16> to vector<32x20xbf16>
    %133 = vector.shape_cast %130 : vector<32x20xbf16> to vector<1x1x32x20xbf16>
    tpu.vector_store %arg6[%c0_154, %c2_155, %c0_156, %c0_157], %133 {strides = array<i32>} : memref<1x4x32x20xbf16, #tpu.memory_space<vmem>>, vector<1x1x32x20xbf16>,
    %c3_158 = arith.constant 3 : index
    %c0_159 = arith.constant 0 : index
    %c0_160 = arith.constant 0 : index
    %134 = vector.load %arg5[%c3_158, %c0_159, %c0_160] : memref<4x32x1xf32, #tpu.memory_space<vmem>>, vector<1x32x1xf32>
    %135 = vector.shape_cast %134 : vector<1x32x1xf32> to vector<32x1xf32>
    %136 = vector.broadcast %135 : vector<32x1xf32> to vector<32x20xf32>
    %137 = arith.addf %103, %136 : vector<32x20xf32>
    %cst_161 = arith.constant 0.000000e+00 : f32
    %138 = vector.broadcast %cst_161 : f32 to vector<32x20xf32>
    %139 = arith.maximumf %137, %138 : vector<32x20xf32>
    %140 = arith.truncf %139 : vector<32x20xf32> to vector<32x20xbf16>
    %c0_162 = arith.constant 0 : index
    %c3_163 = arith.constant 3 : index
    %c0_164 = arith.constant 0 : index
    %c0_165 = arith.constant 0 : index
    %141 = vector.load %arg6[%c0_162, %c3_163, %c0_164, %c0_165] : memref<1x4x32x20xbf16, #tpu.memory_space<vmem>>, vector<1x1x32x20xbf16>
    %142 = vector.shape_cast %141 : vector<1x1x32x20xbf16> to vector<32x20xbf16>
    %143 = vector.shape_cast %140 : vector<32x20xbf16> to vector<1x1x32x20xbf16>
    tpu.vector_store %arg6[%c0_162, %c3_163, %c0_164, %c0_165], %143 {strides = array<i32>} : memref<1x4x32x20xbf16, #tpu.memory_space<vmem>>, vector<1x1x32x20xbf16>,
    return
  }
  func.func @transform_0(%arg0: i32) -> (i32, i32, i32, i32) {
    %c0_i32 = arith.constant 0 : i32
    %c0_i32_0 = arith.constant 0 : i32
    %c0_i32_1 = arith.constant 0 : i32
    %c0_i32_2 = arith.constant 0 : i32
    return %arg0, %c0_i32, %c0_i32_0, %c0_i32_1 : i32, i32, i32, i32
  }
  func.func @transform_1(%arg0: i32) -> (i32, i32, i32, i32) {
    %c0_i32 = arith.constant 0 : i32
    %c0_i32_0 = arith.constant 0 : i32
    %c0_i32_1 = arith.constant 0 : i32
    %c0_i32_2 = arith.constant 0 : i32
    return %arg0, %c0_i32, %c0_i32_0, %c0_i32_1 : i32, i32, i32, i32
  }
  func.func @transform_2(%arg0: i32) -> (i32, i32, i32) {
    %c0_i32 = arith.constant 0 : i32
    %c0_i32_0 = arith.constant 0 : i32
    %c0_i32_1 = arith.constant 0 : i32
    %c0_i32_2 = arith.constant 0 : i32
    return %c0_i32, %c0_i32_0, %c0_i32_1 : i32, i32, i32
  }
  func.func @transform_3(%arg0: i32) -> (i32, i32, i32) {
    %c0_i32 = arith.constant 0 : i32
    %c0_i32_0 = arith.constant 0 : i32
    %c0_i32_1 = arith.constant 0 : i32
    %c0_i32_2 = arith.constant 0 : i32
    return %c0_i32, %c0_i32_0, %c0_i32_1 : i32, i32, i32
  }
  func.func @transform_4(%arg0: i32) -> (i32, i32, i32) {
    %c0_i32 = arith.constant 0 : i32
    %c0_i32_0 = arith.constant 0 : i32
    %c0_i32_1 = arith.constant 0 : i32
    %c0_i32_2 = arith.constant 0 : i32
    return %c0_i32, %c0_i32_0, %c0_i32_1 : i32, i32, i32
  }
  func.func @transform_5(%arg0: i32) -> (i32, i32, i32, i32) {
    %c0_i32 = arith.constant 0 : i32
    %c0_i32_0 = arith.constant 0 : i32
    %c0_i32_1 = arith.constant 0 : i32
    %c0_i32_2 = arith.constant 0 : i32
    return %arg0, %c0_i32, %c0_i32_0, %c0_i32_1 : i32, i32, i32, i32
  }
}

module attributes {stable_mosaic.version = 11 : i64} {
  func.func @_tapconv_kernel(%arg0: i32, %arg1: memref<1x1x32x90xbf16, #tpu.memory_space<vmem>>, %arg2: memref<9x3x32xbf16, #tpu.memory_space<vmem>>, %arg3: memref<4x3x1xf32, #tpu.memory_space<vmem>>, %arg4: memref<1x4x3x72xf32, #tpu.memory_space<vmem>>) attributes {dimension_semantics = [#tpu.dimension_semantics<parallel>], iteration_bounds = array<i64: 2>, scalar_prefetch = 0 : i64, scratch_operands = 0 : i64, tpu.core_type = #tpu.core_type<tc>, window_params = [{transform_indices = @transform_0, window_bounds = array<i64: 1, 1, 32, 90>}, {pipeline_mode = #tpu.pipeline_mode<synchronous>, transform_indices = @transform_1, window_bounds = array<i64: 9, 3, 32>}, {pipeline_mode = #tpu.pipeline_mode<synchronous>, transform_indices = @transform_2, window_bounds = array<i64: 4, 3, 1>}, {transform_indices = @transform_3, window_bounds = array<i64: 1, 4, 3, 72>}]} {
    %c0 = arith.constant 0 : index
    %c0_0 = arith.constant 0 : index
    %c0_1 = arith.constant 0 : index
    %c0_2 = arith.constant 0 : index
    %0 = vector.load %arg1[%c0, %c0_0, %c0_1, %c0_2] : memref<1x1x32x90xbf16, #tpu.memory_space<vmem>>, vector<1x1x32x72xbf16>
    %1 = vector.shape_cast %0 : vector<1x1x32x72xbf16> to vector<32x72xbf16>
    %c0_3 = arith.constant 0 : index
    %c0_4 = arith.constant 0 : index
    %c0_5 = arith.constant 0 : index
    %2 = vector.load %arg2[%c0_3, %c0_4, %c0_5] : memref<9x3x32xbf16, #tpu.memory_space<vmem>>, vector<1x3x32xbf16>
    %3 = vector.shape_cast %2 : vector<1x3x32xbf16> to vector<3x32xbf16>
    %cst = arith.constant dense<0.000000e+00> : vector<3x72xf32>
    %4 = tpu.matmul %3, %1, %cst {dimension_numbers = #tpu.dot_dimension_numbers<[1], [0], [0], [1], [0, 0, 1, 1], [], []>} : vector<3x32xbf16>, vector<32x72xbf16>, vector<3x72xf32> -> vector<3x72xf32>
    %c0_6 = arith.constant 0 : index
    %c0_7 = arith.constant 0 : index
    %c0_8 = arith.constant 0 : index
    %c0_9 = arith.constant 0 : index
    %5 = vector.load %arg1[%c0_6, %c0_7, %c0_8, %c0_9] : memref<1x1x32x90xbf16, #tpu.memory_space<vmem>>, vector<1x1x32x72xbf16>
    %6 = vector.shape_cast %5 : vector<1x1x32x72xbf16> to vector<32x72xbf16>
    %c1 = arith.constant 1 : index
    %c0_10 = arith.constant 0 : index
    %c0_11 = arith.constant 0 : index
    %7 = vector.load %arg2[%c1, %c0_10, %c0_11] : memref<9x3x32xbf16, #tpu.memory_space<vmem>>, vector<1x3x32xbf16>
    %8 = vector.shape_cast %7 : vector<1x3x32xbf16> to vector<3x32xbf16>
    %cst_12 = arith.constant dense<0.000000e+00> : vector<3x72xf32>
    %9 = tpu.matmul %8, %6, %cst_12 {dimension_numbers = #tpu.dot_dimension_numbers<[1], [0], [0], [1], [0, 0, 1, 1], [], []>} : vector<3x32xbf16>, vector<32x72xbf16>, vector<3x72xf32> -> vector<3x72xf32>
    %c0_13 = arith.constant 0 : index
    %c0_14 = arith.constant 0 : index
    %c0_15 = arith.constant 0 : index
    %c1_16 = arith.constant 1 : index
    %10 = vector.load %arg1[%c0_13, %c0_14, %c0_15, %c1_16] : memref<1x1x32x90xbf16, #tpu.memory_space<vmem>>, vector<1x1x32x72xbf16>
    %11 = vector.shape_cast %10 : vector<1x1x32x72xbf16> to vector<32x72xbf16>
    %c2 = arith.constant 2 : index
    %c0_17 = arith.constant 0 : index
    %c0_18 = arith.constant 0 : index
    %12 = vector.load %arg2[%c2, %c0_17, %c0_18] : memref<9x3x32xbf16, #tpu.memory_space<vmem>>, vector<1x3x32xbf16>
    %13 = vector.shape_cast %12 : vector<1x3x32xbf16> to vector<3x32xbf16>
    %cst_19 = arith.constant dense<0.000000e+00> : vector<3x72xf32>
    %14 = tpu.matmul %13, %11, %cst_19 {dimension_numbers = #tpu.dot_dimension_numbers<[1], [0], [0], [1], [0, 0, 1, 1], [], []>} : vector<3x32xbf16>, vector<32x72xbf16>, vector<3x72xf32> -> vector<3x72xf32>
    %15 = arith.addf %9, %14 : vector<3x72xf32>
    %c0_20 = arith.constant 0 : index
    %c0_21 = arith.constant 0 : index
    %c0_22 = arith.constant 0 : index
    %c0_23 = arith.constant 0 : index
    %16 = vector.load %arg1[%c0_20, %c0_21, %c0_22, %c0_23] : memref<1x1x32x90xbf16, #tpu.memory_space<vmem>>, vector<1x1x32x72xbf16>
    %17 = vector.shape_cast %16 : vector<1x1x32x72xbf16> to vector<32x72xbf16>
    %c3 = arith.constant 3 : index
    %c0_24 = arith.constant 0 : index
    %c0_25 = arith.constant 0 : index
    %18 = vector.load %arg2[%c3, %c0_24, %c0_25] : memref<9x3x32xbf16, #tpu.memory_space<vmem>>, vector<1x3x32xbf16>
    %19 = vector.shape_cast %18 : vector<1x3x32xbf16> to vector<3x32xbf16>
    %cst_26 = arith.constant dense<0.000000e+00> : vector<3x72xf32>
    %20 = tpu.matmul %19, %17, %cst_26 {dimension_numbers = #tpu.dot_dimension_numbers<[1], [0], [0], [1], [0, 0, 1, 1], [], []>} : vector<3x32xbf16>, vector<32x72xbf16>, vector<3x72xf32> -> vector<3x72xf32>
    %c0_27 = arith.constant 0 : index
    %c0_28 = arith.constant 0 : index
    %c0_29 = arith.constant 0 : index
    %c9 = arith.constant 9 : index
    %21 = vector.load %arg1[%c0_27, %c0_28, %c0_29, %c9] : memref<1x1x32x90xbf16, #tpu.memory_space<vmem>>, vector<1x1x32x72xbf16>
    %22 = vector.shape_cast %21 : vector<1x1x32x72xbf16> to vector<32x72xbf16>
    %c4 = arith.constant 4 : index
    %c0_30 = arith.constant 0 : index
    %c0_31 = arith.constant 0 : index
    %23 = vector.load %arg2[%c4, %c0_30, %c0_31] : memref<9x3x32xbf16, #tpu.memory_space<vmem>>, vector<1x3x32xbf16>
    %24 = vector.shape_cast %23 : vector<1x3x32xbf16> to vector<3x32xbf16>
    %cst_32 = arith.constant dense<0.000000e+00> : vector<3x72xf32>
    %25 = tpu.matmul %24, %22, %cst_32 {dimension_numbers = #tpu.dot_dimension_numbers<[1], [0], [0], [1], [0, 0, 1, 1], [], []>} : vector<3x32xbf16>, vector<32x72xbf16>, vector<3x72xf32> -> vector<3x72xf32>
    %26 = arith.addf %20, %25 : vector<3x72xf32>
    %c0_33 = arith.constant 0 : index
    %c0_34 = arith.constant 0 : index
    %c0_35 = arith.constant 0 : index
    %c0_36 = arith.constant 0 : index
    %27 = vector.load %arg1[%c0_33, %c0_34, %c0_35, %c0_36] : memref<1x1x32x90xbf16, #tpu.memory_space<vmem>>, vector<1x1x32x72xbf16>
    %28 = vector.shape_cast %27 : vector<1x1x32x72xbf16> to vector<32x72xbf16>
    %c5 = arith.constant 5 : index
    %c0_37 = arith.constant 0 : index
    %c0_38 = arith.constant 0 : index
    %29 = vector.load %arg2[%c5, %c0_37, %c0_38] : memref<9x3x32xbf16, #tpu.memory_space<vmem>>, vector<1x3x32xbf16>
    %30 = vector.shape_cast %29 : vector<1x3x32xbf16> to vector<3x32xbf16>
    %cst_39 = arith.constant dense<0.000000e+00> : vector<3x72xf32>
    %31 = tpu.matmul %30, %28, %cst_39 {dimension_numbers = #tpu.dot_dimension_numbers<[1], [0], [0], [1], [0, 0, 1, 1], [], []>} : vector<3x32xbf16>, vector<32x72xbf16>, vector<3x72xf32> -> vector<3x72xf32>
    %c0_40 = arith.constant 0 : index
    %c0_41 = arith.constant 0 : index
    %c0_42 = arith.constant 0 : index
    %c1_43 = arith.constant 1 : index
    %32 = vector.load %arg1[%c0_40, %c0_41, %c0_42, %c1_43] : memref<1x1x32x90xbf16, #tpu.memory_space<vmem>>, vector<1x1x32x72xbf16>
    %33 = vector.shape_cast %32 : vector<1x1x32x72xbf16> to vector<32x72xbf16>
    %c6 = arith.constant 6 : index
    %c0_44 = arith.constant 0 : index
    %c0_45 = arith.constant 0 : index
    %34 = vector.load %arg2[%c6, %c0_44, %c0_45] : memref<9x3x32xbf16, #tpu.memory_space<vmem>>, vector<1x3x32xbf16>
    %35 = vector.shape_cast %34 : vector<1x3x32xbf16> to vector<3x32xbf16>
    %cst_46 = arith.constant dense<0.000000e+00> : vector<3x72xf32>
    %36 = tpu.matmul %35, %33, %cst_46 {dimension_numbers = #tpu.dot_dimension_numbers<[1], [0], [0], [1], [0, 0, 1, 1], [], []>} : vector<3x32xbf16>, vector<32x72xbf16>, vector<3x72xf32> -> vector<3x72xf32>
    %37 = arith.addf %31, %36 : vector<3x72xf32>
    %c0_47 = arith.constant 0 : index
    %c0_48 = arith.constant 0 : index
    %c0_49 = arith.constant 0 : index
    %c9_50 = arith.constant 9 : index
    %38 = vector.load %arg1[%c0_47, %c0_48, %c0_49, %c9_50] : memref<1x1x32x90xbf16, #tpu.memory_space<vmem>>, vector<1x1x32x72xbf16>
    %39 = vector.shape_cast %38 : vector<1x1x32x72xbf16> to vector<32x72xbf16>
    %c7 = arith.constant 7 : index
    %c0_51 = arith.constant 0 : index
    %c0_52 = arith.constant 0 : index
    %40 = vector.load %arg2[%c7, %c0_51, %c0_52] : memref<9x3x32xbf16, #tpu.memory_space<vmem>>, vector<1x3x32xbf16>
    %41 = vector.shape_cast %40 : vector<1x3x32xbf16> to vector<3x32xbf16>
    %cst_53 = arith.constant dense<0.000000e+00> : vector<3x72xf32>
    %42 = tpu.matmul %41, %39, %cst_53 {dimension_numbers = #tpu.dot_dimension_numbers<[1], [0], [0], [1], [0, 0, 1, 1], [], []>} : vector<3x32xbf16>, vector<32x72xbf16>, vector<3x72xf32> -> vector<3x72xf32>
    %43 = arith.addf %37, %42 : vector<3x72xf32>
    %c0_54 = arith.constant 0 : index
    %c0_55 = arith.constant 0 : index
    %c0_56 = arith.constant 0 : index
    %c10 = arith.constant 10 : index
    %44 = vector.load %arg1[%c0_54, %c0_55, %c0_56, %c10] : memref<1x1x32x90xbf16, #tpu.memory_space<vmem>>, vector<1x1x32x72xbf16>
    %45 = vector.shape_cast %44 : vector<1x1x32x72xbf16> to vector<32x72xbf16>
    %c8 = arith.constant 8 : index
    %c0_57 = arith.constant 0 : index
    %c0_58 = arith.constant 0 : index
    %46 = vector.load %arg2[%c8, %c0_57, %c0_58] : memref<9x3x32xbf16, #tpu.memory_space<vmem>>, vector<1x3x32xbf16>
    %47 = vector.shape_cast %46 : vector<1x3x32xbf16> to vector<3x32xbf16>
    %cst_59 = arith.constant dense<0.000000e+00> : vector<3x72xf32>
    %48 = tpu.matmul %47, %45, %cst_59 {dimension_numbers = #tpu.dot_dimension_numbers<[1], [0], [0], [1], [0, 0, 1, 1], [], []>} : vector<3x32xbf16>, vector<32x72xbf16>, vector<3x72xf32> -> vector<3x72xf32>
    %49 = arith.addf %43, %48 : vector<3x72xf32>
    %c0_60 = arith.constant 0 : index
    %c0_61 = arith.constant 0 : index
    %c0_62 = arith.constant 0 : index
    %50 = vector.load %arg3[%c0_60, %c0_61, %c0_62] : memref<4x3x1xf32, #tpu.memory_space<vmem>>, vector<1x3x1xf32>
    %51 = vector.shape_cast %50 : vector<1x3x1xf32> to vector<3x1xf32>
    %52 = vector.broadcast %51 : vector<3x1xf32> to vector<3x72xf32>
    %53 = arith.addf %4, %52 : vector<3x72xf32>
    %c0_63 = arith.constant 0 : index
    %c0_64 = arith.constant 0 : index
    %c0_65 = arith.constant 0 : index
    %c0_66 = arith.constant 0 : index
    %54 = vector.load %arg4[%c0_63, %c0_64, %c0_65, %c0_66] : memref<1x4x3x72xf32, #tpu.memory_space<vmem>>, vector<1x1x3x72xf32>
    %55 = vector.shape_cast %54 : vector<1x1x3x72xf32> to vector<3x72xf32>
    %56 = vector.shape_cast %53 : vector<3x72xf32> to vector<1x1x3x72xf32>
    tpu.vector_store %arg4[%c0_63, %c0_64, %c0_65, %c0_66], %56 {strides = array<i32>} : memref<1x4x3x72xf32, #tpu.memory_space<vmem>>, vector<1x1x3x72xf32>,
    %c1_67 = arith.constant 1 : index
    %c0_68 = arith.constant 0 : index
    %c0_69 = arith.constant 0 : index
    %57 = vector.load %arg3[%c1_67, %c0_68, %c0_69] : memref<4x3x1xf32, #tpu.memory_space<vmem>>, vector<1x3x1xf32>
    %58 = vector.shape_cast %57 : vector<1x3x1xf32> to vector<3x1xf32>
    %59 = vector.broadcast %58 : vector<3x1xf32> to vector<3x72xf32>
    %60 = arith.addf %15, %59 : vector<3x72xf32>
    %c0_70 = arith.constant 0 : index
    %c1_71 = arith.constant 1 : index
    %c0_72 = arith.constant 0 : index
    %c0_73 = arith.constant 0 : index
    %61 = vector.load %arg4[%c0_70, %c1_71, %c0_72, %c0_73] : memref<1x4x3x72xf32, #tpu.memory_space<vmem>>, vector<1x1x3x72xf32>
    %62 = vector.shape_cast %61 : vector<1x1x3x72xf32> to vector<3x72xf32>
    %63 = vector.shape_cast %60 : vector<3x72xf32> to vector<1x1x3x72xf32>
    tpu.vector_store %arg4[%c0_70, %c1_71, %c0_72, %c0_73], %63 {strides = array<i32>} : memref<1x4x3x72xf32, #tpu.memory_space<vmem>>, vector<1x1x3x72xf32>,
    %c2_74 = arith.constant 2 : index
    %c0_75 = arith.constant 0 : index
    %c0_76 = arith.constant 0 : index
    %64 = vector.load %arg3[%c2_74, %c0_75, %c0_76] : memref<4x3x1xf32, #tpu.memory_space<vmem>>, vector<1x3x1xf32>
    %65 = vector.shape_cast %64 : vector<1x3x1xf32> to vector<3x1xf32>
    %66 = vector.broadcast %65 : vector<3x1xf32> to vector<3x72xf32>
    %67 = arith.addf %26, %66 : vector<3x72xf32>
    %c0_77 = arith.constant 0 : index
    %c2_78 = arith.constant 2 : index
    %c0_79 = arith.constant 0 : index
    %c0_80 = arith.constant 0 : index
    %68 = vector.load %arg4[%c0_77, %c2_78, %c0_79, %c0_80] : memref<1x4x3x72xf32, #tpu.memory_space<vmem>>, vector<1x1x3x72xf32>
    %69 = vector.shape_cast %68 : vector<1x1x3x72xf32> to vector<3x72xf32>
    %70 = vector.shape_cast %67 : vector<3x72xf32> to vector<1x1x3x72xf32>
    tpu.vector_store %arg4[%c0_77, %c2_78, %c0_79, %c0_80], %70 {strides = array<i32>} : memref<1x4x3x72xf32, #tpu.memory_space<vmem>>, vector<1x1x3x72xf32>,
    %c3_81 = arith.constant 3 : index
    %c0_82 = arith.constant 0 : index
    %c0_83 = arith.constant 0 : index
    %71 = vector.load %arg3[%c3_81, %c0_82, %c0_83] : memref<4x3x1xf32, #tpu.memory_space<vmem>>, vector<1x3x1xf32>
    %72 = vector.shape_cast %71 : vector<1x3x1xf32> to vector<3x1xf32>
    %73 = vector.broadcast %72 : vector<3x1xf32> to vector<3x72xf32>
    %74 = arith.addf %49, %73 : vector<3x72xf32>
    %c0_84 = arith.constant 0 : index
    %c3_85 = arith.constant 3 : index
    %c0_86 = arith.constant 0 : index
    %c0_87 = arith.constant 0 : index
    %75 = vector.load %arg4[%c0_84, %c3_85, %c0_86, %c0_87] : memref<1x4x3x72xf32, #tpu.memory_space<vmem>>, vector<1x1x3x72xf32>
    %76 = vector.shape_cast %75 : vector<1x1x3x72xf32> to vector<3x72xf32>
    %77 = vector.shape_cast %74 : vector<3x72xf32> to vector<1x1x3x72xf32>
    tpu.vector_store %arg4[%c0_84, %c3_85, %c0_86, %c0_87], %77 {strides = array<i32>} : memref<1x4x3x72xf32, #tpu.memory_space<vmem>>, vector<1x1x3x72xf32>,
    return
  }
  func.func @transform_0(%arg0: i32) -> (i32, i32, i32, i32) {
    %c0_i32 = arith.constant 0 : i32
    %c0_i32_0 = arith.constant 0 : i32
    %c0_i32_1 = arith.constant 0 : i32
    %c0_i32_2 = arith.constant 0 : i32
    return %arg0, %c0_i32, %c0_i32_0, %c0_i32_1 : i32, i32, i32, i32
  }
  func.func @transform_1(%arg0: i32) -> (i32, i32, i32) {
    %c0_i32 = arith.constant 0 : i32
    %c0_i32_0 = arith.constant 0 : i32
    %c0_i32_1 = arith.constant 0 : i32
    %c0_i32_2 = arith.constant 0 : i32
    return %c0_i32, %c0_i32_0, %c0_i32_1 : i32, i32, i32
  }
  func.func @transform_2(%arg0: i32) -> (i32, i32, i32) {
    %c0_i32 = arith.constant 0 : i32
    %c0_i32_0 = arith.constant 0 : i32
    %c0_i32_1 = arith.constant 0 : i32
    %c0_i32_2 = arith.constant 0 : i32
    return %c0_i32, %c0_i32_0, %c0_i32_1 : i32, i32, i32
  }
  func.func @transform_3(%arg0: i32) -> (i32, i32, i32, i32) {
    %c0_i32 = arith.constant 0 : i32
    %c0_i32_0 = arith.constant 0 : i32
    %c0_i32_1 = arith.constant 0 : i32
    %c0_i32_2 = arith.constant 0 : i32
    return %arg0, %c0_i32, %c0_i32_0, %c0_i32_1 : i32, i32, i32, i32
  }
}

</mosaic_0001>

<bundles_post_ra>
// kernel: cond_model_forward.11
= control target key start
LH: loop header
LB: loop body
LE: loop exit
PB: predicated region body
PF: predicated region fallthrough
CT: control target
= control target key end

     0   :  { %s762_s12 = smov 0   ;;  %s835_s0 = inlined_call_operand.vmem [shape: bf16[2,4,32,30], index: 0, kind: input, shape index: {}]   ;;  %s836_s1 = inlined_call_operand.vmem [shape: bf16[9,16,32], index: 1, kind: input, shape index: {}]   ;;  %s837_s2 = inlined_call_operand.vmem [shape: f32[1,16,1], index: 2, kind: input, shape index: {}]   ;;  %s838_s3 = inlined_call_operand.vmem [shape: f32[2,1,16,20], index: 3, kind: output, shape index: {}]  }
   0x1 LB: > { %s580_s13 = sadd.s32 4294967295, %s736_s12   ;;  %p584_p0 = scmp.ge.s32.totalorder %s736_s12, 1  ;;  %s736_s12 = sphi %s762_s12, %s13_s12  }
   0x2   : > { %p137_p1 = scmp.lt.s32.totalorder %s736_s12, 3 }
   0x4   : > { %p138_p2 = pnand %p584_p0, %p137_p1 }
   0x5   : > { %p161_p3 = scmp.lt.s32.totalorder (!%p138_p2), %s580_s13, 1  ;;  %s738_s18 = smov (!%p138_p2), 127  }
   0x6   : > { %141 = sbr.rel (%p138_p2) target bundleno = 306 (0x132), region = 32  ;;  %s739_s19 = smov (!%p138_p2), 123  }
   0x7   : > { %s740_s24 = smov (!%p138_p2), 122  }
   0xb   : > { %s840_s13 = smov (!%p161_p3, %s580_s13), 1  ;;  %v703_v6 = vld [vmem:[%s836_s1 + $0x8] sm:$0xff]  ;;  %vm203_vm0 = vcmask 261120   ;;  %v700_v7 = vld [vmem:[%s836_s1] sm:$0xff]  ;;  %v707_v8 = vld [vmem:[%s836_s1 + $0x18] sm:$0xff]  ;;  %v741_v17 = vmov 0  }
   0xc   : > { %s696_s14 = sshll.u32 %s840_s13, 6  ;;  %v710_v12 = vld [vmem:[%s836_s1 + $0x20] sm:$0xff]  ;;  %v509_v16 = vld [vmem:[%s837_s2 + $0x8] sm:$0xff]  ;;  %727 = vset.pattern.permute.xlu1 %v741_v17  ;;  %728 = vset.pattern.permute.xlu2 %v741_v17  ;;  %v704_v22 = vld [vmem:[%s836_s1 + $0x10] sm:$0xff]  ;;  %vm522_vm1 = vcmask 162816  }
   0xd   : > { %s776_s17 = scalar_lea.vmem %s835_s0, %s696_s14  ;;  %v508_v15 = vld [vmem:[%s837_s2] sm:$0xff]  ;;  %729 = vset.pattern.permute.xlu0 %v741_v17  ;;  %v713_v25 = vld [vmem:[%s836_s1 + $0x38] sm:$0xff]  ;;  %v711_v26 = vld [vmem:[%s836_s1 + $0x28] sm:$0xff] }
   0xe   : > { %v699_v0 = vld [vmem:[%s776_s17 + $0x8] sm:$0xff]  ;;  %v702_v1 = vld [vmem:[%s776_s17 + $0x18] sm:$0xff]  ;;  %v701_v3 = vld [vmem:[%s776_s17 + $0x10] sm:$0xff] }
   0xf   : > { %v706_v2 = vld [vmem:[%s776_s17 + $0x28] sm:$0xff]  ;;  %265 = vrot.lane.b32.xlu0 %v699_v0, %s738_s18  ;;  %419 = vrot.lane.b32.xlu1 %v699_v0, %s739_s19  ;;  %v698_v4 = vld [vmem:[%s776_s17] sm:$0xff] }
  0x10   : > { %386 = vrot.lane.b32.xlu2 %v706_v2, %s738_s18  ;;  %213 = vmatpush.bf16.msra.mxu0 %v702_v1  ;;  %v705_v5 = vld [vmem:[%s776_s17 + $0x20] sm:$0xff]  ;;  %v709_v9 = vld [vmem:[%s776_s17 + $0x38] sm:$0xff]  ;;  %v708_v11 = vld [vmem:[%s776_s17 + $0x30] sm:$0xff] }
  0x11   : > { %247 = vmatpush.bf16.msra.mxu1 %v699_v0  ;;  %322 = vmatpush.bf16.msra.mxu3 %v706_v2  ;;  %v712_v28 = vld [vmem:[%s836_s1 + $0x30] sm:$0xff]  ;;  %v714_v29 = vld [vmem:[%s836_s1 + $0x40] sm:$0xff] }
  0x14   : > { %214 = vmatpush.bf16.msra.mxu0 %v701_v3 }
  0x15   : > { %248 = vmatpush.bf16.msra.mxu1 %v698_v4  ;;  %323 = vmatpush.bf16.msra.mxu3 %v705_v5 }
  0x17   : > { %263 = vrot.lane.b32.xlu0 %v698_v4, %s738_s18  ;;  %452 = vrot.lane.b32.xlu1 %v702_v1, %s739_s19 }
  0x18   : > { %417 = vrot.lane.b32.xlu2 %v698_v4, %s739_s19  ;;  %607 = vmatmul.msk.bf16.vlgmr.msra.gmra.mxu0 %vm203_vm0, %v703_v6 }
  0x19   : > { %620 = vmatmul.msk.bf16.vlgmr.msra.gmra.mxu1 %vm203_vm0, %v700_v7  ;;  %646 = vmatmul.msk.bf16.vlgmr.msra.gmra.mxu3 %vm203_vm0, %v707_v8 }
  0x1a   : > { %366 = vmatpush.bf16.msrb.mxu0 %v709_v9 }
  0x1e   : > { %367 = vmatpush.bf16.msrb.mxu0 %v708_v11 }
  0x1f   : > { %450 = vrot.lane.b32.xlu0 %v701_v3, %s739_s19  ;;  %384 = vrot.lane.b32.xlu1 %v705_v5, %s738_s18  ;;  %s697_s18 = sshll.u32 %s840_s13, 4 }
  0x20   : > { %485 = vrot.lane.b32.xlu2 %v699_v0, %s740_s24  ;;  %s170_s21 = scalar_lea.vmem %s838_s3, %s697_s18 }
  0x27   : > { %483 = vrot.lane.b32.xlu0 %v698_v4, %s740_s24  ;;  %512 = vperm.xlu1 %727, %v508_v15  }
  0x28   : > { %665 = vmatmul.msk.bf16.vlgmr.msrb.gmra.mxu0 %vm203_vm0, %v710_v12  ;;  %517 = vperm.xlu2 %728, %v509_v16  }
  0x6a   : > { %v387_v10 = vpop.permute.xlu2 %386 }
  0x6b   : > { %399 = vmatpush.bf16.msrb.mxu1 %v387_v10 }
  0x72   : > { %v418_v13 = vpop.permute.xlu2 %417 }
  0x7a   : > { %v486_v14 = vpop.permute.xlu2 %485 }
  0x7b   : > { %498 = vmatpush.bf16.msra.mxu0 %v486_v14 }
  0x81   : > { %v266_v18 = vpop.permute.xlu0 %265  ;;  %v420_v19 = vpop.permute.xlu1 %419 }
  0x82   : > { %278 = vmatpush.bf16.msra.mxu2 %v266_v18  ;;  %v518_v1 = vpop.permute.xlu2 %517 }
  0x89   : > { %v264_v20 = vpop.permute.xlu0 %263  ;;  %v453_v21 = vpop.permute.xlu1 %452 }
  0x8a   : > { %279 = vmatpush.bf16.msra.mxu2 %v264_v20  ;;  %465 = vmatpush.bf16.msrb.mxu3 %v453_v21 }
  0x8d   : > { %627 = vmatmul.msk.bf16.vlgmr.msra.gmra.mxu2 %vm203_vm0, %v704_v22 }
  0x8e   : > { %432 = vmatpush.bf16.msrb.mxu2 %v420_v19 }
  0x91   : > { %v451_v23 = vpop.permute.xlu0 %450  ;;  %v385_v24 = vpop.permute.xlu1 %384 }
  0x92   : > { %433 = vmatpush.bf16.msrb.mxu2 %v418_v13  ;;  %466 = vmatpush.bf16.msrb.mxu3 %v451_v23 }
  0x93   : > { %400 = vmatpush.bf16.msrb.mxu1 %v385_v24 }
  0x95   : > { %686 = vmatmul.msk.bf16.vlgmr.msrb.gmra.mxu3 %vm203_vm0, %v713_v25  ;;  %v216_v30 = vpop.f32.mrf.mxu0 }
  0x96   : > { %672 = vmatmul.msk.bf16.vlgmr.msrb.gmra.mxu1 %vm203_vm0, %v711_v26  ;;  %v250_v32 = vpop.f32.mrf.mxu1 }
  0x97   : > { %v251_v36 = vadd.f32 %v250_v32, %v216_v30 }
  0x99   : > { %v484_v27 = vpop.permute.xlu0 %483  ;;  %v513_v56 = vpop.permute.xlu1 %512 }
  0x9a   : > { %499 = vmatpush.bf16.msra.mxu0 %v484_v27 }
  0x9c   : > { %v325_v33 = vpop.f32.mrf.mxu3 }
  0x9d   : > { %679 = vmatmul.msk.bf16.vlgmr.msrb.gmra.mxu2 %vm203_vm0, %v712_v28  ;;  %693 = vmatmul.msk.bf16.vlgmr.msra.gmra.mxu0 %vm203_vm0, %v714_v29  ;;  %v218_v31 = vpop.f32.mrf.mxu0 }
  0x9e   : > { %v252_v37 = vpop.f32.mrf.mxu1 }
  0x9f   : > { %v253_v43 = vadd.f32 %v252_v37, %v218_v31 }
  0xa4   : > { %v327_v39 = vpop.f32.mrf.mxu3 }
  0xa5   : > { %v369_v34 = vpop.f32.mrf.mxu0 }
  0xad   : > { %v371_v41 = vpop.f32.mrf.mxu0 }
 0x110   : > { %v281_v35 = vpop.f32.mrf.mxu2 }
 0x111   : > { %v286_v38 = vadd.f32 %v281_v35, %v251_v36 }
 0x113   : > { %v330_v40 = vadd.f32 %v325_v33, %v286_v38  ;;  %v402_v44 = vpop.f32.mrf.mxu1 }
 0x115   : > { %v374_v45 = vadd.f32 %v369_v34, %v330_v40 }
 0x117   : > { %v407_v47 = vadd.f32 %v402_v44, %v374_v45 }
 0x118   : > { %v283_v42 = vpop.f32.mrf.mxu2  ;;  %v468_v49 = vpop.f32.mrf.mxu3 }
 0x119   : > { %v287_v46 = vadd.f32 %v283_v42, %v253_v43 }
 0x11a   : > { %v501_v52 = vpop.f32.mrf.mxu0 }
 0x11b   : > { %v331_v48 = vadd.f32 %v327_v39, %v287_v46  ;;  %v404_v55 = vpop.f32.mrf.mxu1 }
 0x11d   : > { %v375_v53 = vadd.f32 %v371_v41, %v331_v48 }
 0x11f   : > { %v408_v58 = vadd.f32 %v404_v55, %v375_v53 }
 0x120   : > { %v435_v50 = vpop.f32.mrf.mxu2  ;;  %v470_v62 = vpop.f32.mrf.mxu3 }
 0x121   : > { %v440_v51 = vadd.f32 %v435_v50, %v407_v47 }
 0x122   : > { %v503_v0 = vpop.f32.mrf.mxu0 }
 0x123   : > { %v473_v54 = vadd.f32 %v468_v49, %v440_v51 }
 0x125   : > { %v506_v57 = vadd.f32 %v501_v52, %v473_v54 }
 0x127   : > { %v520_v59 = vadd.f32 %v513_v56, %v506_v57 }
 0x128   : > { %v437_v60 = vpop.f32.mrf.mxu2 }
 0x129   : > { %523 = vst.msk [vmem:[%s170_s21] sm:$0xff] %vm522_vm1, %v520_v59  ;;  %v441_v61 = vadd.f32 %v437_v60, %v408_v58 }
 0x12b   : > { %v474_v63 = vadd.f32 %v470_v62, %v441_v61 }
 0x12d   : > { %v507_v2 = vadd.f32 %v503_v0, %v474_v63 }
 0x12f   : > { %v521_v3 = vadd.f32 %v518_v1, %v507_v2 }
 0x131   : > { %524 = vst.msk [vmem:[%s170_s21 + $0x8] sm:$0xff] %vm522_vm1, %v521_v3 }
 0x132 PF: > { %s13_s12 = sadd.s32 1, %s736_s12  }
 0x133   : > { %p10_p4 = scmp.ge.s32.totalorder %s13_s12, 4  }
 0x135   :  { %12 = sbr.rel (!%p10_p4) target bundleno = 1 (0x1), region = 73 }

// kernel: cond_model_forward.10
= control target key start
LH: loop header
LB: loop body
LE: loop exit
PB: predicated region body
PF: predicated region fallthrough
CT: control target
= control target key end

     0   :  { %s932_s12 = smov 0   ;;  %s1069_s0 = inlined_call_operand.vmem [shape: bf16[2,4,3,90], index: 0, kind: input, shape index: {}]   ;;  %s1070_s1 = inlined_call_operand.vmem [shape: bf16[9,32,3], index: 1, kind: input, shape index: {}]   ;;  %s1071_s2 = inlined_call_operand.vmem [shape: f32[1,32,1], index: 2, kind: input, shape index: {}]   ;;  %s1072_s3 = inlined_call_operand.vmem [shape: bf16[2,1,32,72], index: 3, kind: output, shape index: {}]  }
   0x1 LB: > { %s725_s13 = sadd.s32 4294967295, %s905_s12   ;;  %p729_p0 = scmp.ge.s32.totalorder %s905_s12, 1  ;;  %s905_s12 = sphi %s932_s12, %s13_s12  }
   0x2   : > { %p137_p1 = scmp.lt.s32.totalorder %s905_s12, 3 }
   0x4   : > { %p138_p2 = pnand %p729_p0, %p137_p1 }
   0x5   : > { %p161_p3 = scmp.lt.s32.totalorder (!%p138_p2), %s725_s13, 1  ;;  %s907_s18 = smov (!%p138_p2), 127  }
   0x6   : > { %141 = sbr.rel (%p138_p2) target bundleno = 344 (0x158), region = 32  ;;  %s909_s23 = smov (!%p138_p2), 119  }
   0x7   : > { %s910_s26 = smov (!%p138_p2), 118  }
   0xb   : > { %s1074_s13 = smov (!%p161_p3, %s725_s13), 1  ;;  %vm201_vm0 = vcmask 1040384   ;;  %vm202_vm1 = vcmask 1041408   ;;  %v908_v4 = vmov 65535   ;;  %v867_v10 = vld [vmem:[%s1070_s1 + $0x18] sm:$0xff]  ;;  %v866_v11 = vld [vmem:[%s1070_s1 + $0x10] sm:$0xff] }
   0xc   : > { %s862_s14 = sshll.u32 %s1074_s13, 3  ;;  %v203_v5 = vsel %vm201_vm0, 4294967295, %v908_v4  ;;  %vm194_vm2 = vcmask 23552   ;;  %v864_v16 = vld [vmem:[%s1070_s1] sm:$0xff]  ;;  %v865_v19 = vld [vmem:[%s1070_s1 + $0x8] sm:$0xff]  ;;  %v870_v21 = vld [vmem:[%s1070_s1 + $0x30] sm:$0xff] }
   0xd   : > { %s946_s17 = scalar_lea.vmem %s1069_s0, %s862_s14  ;;  %v952_v6 = vsel %vm202_vm1, %v203_v5, 0  ;;  %v872_v24 = vld [vmem:[%s1070_s1 + $0x40] sm:$0xff]  ;;  %v871_v25 = vld [vmem:[%s1070_s1 + $0x38] sm:$0xff]  ;;  %v873_v26 = vld [vmem:[%s1070_s1 + $0x48] sm:$0xff]  ;;  %v911_v38 = vmov 0   ;;  %s863_s15 = sshll.u32 %s1074_s13, 4 }
   0xe   : > { %v172_v0 = vld [vmem:[%s946_s17] sm:$0x3]  ;;  %v773_v1 = vld [vmem:[%s946_s17 + $0x4] sm:$0x3]  ;;  %v734_v3 = vld [vmem:[%s946_s17 + $0x2] sm:$0x3]  ;;  %897 = vset.pattern.permute.xlu0 %v911_v38  ;;  %898 = vset.pattern.permute.xlu1 %v911_v38 }
   0xf   : > { %280 = vst [vmem:[#allocation1] ss:$4 sm:$0xff] %v172_v0  ;;  %v206_v7 = vand.u32 %v734_v3, %v952_v6  ;;  %v244_v8 = vand.u32 %v952_v6, %v172_v0  ;;  %v467_v9 = vld [vmem:[%s946_s17] sm:$0x3]  ;;  %v831_v13 = vld [vmem:[%s946_s17 + $0x2] sm:$0x3]  ;;  %v341_v20 = vand.u32 %v773_v1, %v952_v6  ;;  %896 = vset.pattern.permute.xlu2 %v911_v38 }
  0x10   : > { %v575_v15 = vld [vmem:[%s946_s17] sm:$0x3]  ;;  %v788_v22 = vld [vmem:[%s946_s17 + $0x6] sm:$0x3]  ;;  %v869_v35 = vld [vmem:[%s1070_s1 + $0x28] sm:$0xff]  ;;  %vm665_vm3 = vcmask 584704  }
  0x11   : > { %882 = vmatpush.bf16.msra.mxu1 %v206_v7  ;;  %215 = vmatpush.bf16.msra.mxu0 %v206_v7  ;;  %v390_v23 = vand.u32 %v788_v22, %v952_v6  ;;  %v868_v29 = vld [vmem:[%s1070_s1 + $0x20] sm:$0xff]  ;;  %v630_v36 = vld [vmem:[%s1071_s2 + $0x8] sm:$0xff]  ;;  %v631_v37 = vld [vmem:[%s1071_s2 + $0x10] sm:$0xff] }
  0x12   : > { %350 = vmatpush.bf16.msra.mxu3 %v341_v20  ;;  %v880_v32 = vld [vmem:[%s1070_s1 + $0x80] sm:$0xff]  ;;  %v878_v42 = vld [vmem:[%s1070_s1 + $0x70] sm:$0xff]  ;;  %v881_v43 = vld [vmem:[%s1070_s1 + $0x88] sm:$0xff] }
  0x13   : > { %v629_v39 = vld [vmem:[%s1071_s2] sm:$0xff]  ;;  %v632_v44 = vld [vmem:[%s1071_s2 + $0x18] sm:$0xff]  ;;  %v874_v48 = vld [vmem:[%s1070_s1 + $0x50] sm:$0xff] }
  0x14   : > { %748 = vmatmul.msk.bf16.vlgmr.msra.gmra.mxu1 %vm194_vm2, %v867_v10  ;;  %747 = vmatmul.msk.bf16.vlgmr.msra.gmra.mxu0 %vm194_vm2, %v866_v11  ;;  %v876_v47 = vld [vmem:[%s1070_s1 + $0x60] sm:$0xff]  ;;  %v879_v49 = vld [vmem:[%s1070_s1 + $0x78] sm:$0xff]  ;;  %v877_v51 = vld [vmem:[%s1070_s1 + $0x68] sm:$0xff] }
  0x15   : > { %253 = vmatpush.bf16.msrb.mxu1 %v244_v8  ;;  %786 = vmatmul.msk.bf16.vlgmr.msra.gmra.mxu3 %vm194_vm2, %v870_v21  ;;  %v875_v50 = vld [vmem:[%s1070_s1 + $0x58] sm:$0xff] }
  0x16   : > { %v281_v2 = vld.sshfl [vmem:[#allocation1] sm:$0xff pattern:$0x73625140]  ;;  %399 = vmatpush.bf16.msrb.mxu0 %v390_v23 }
  0x17   : > { %283 = vrot.lane.b32.xlu0 %v281_v2, %s907_s18  ;;  %430 = vst [vmem:[#allocation1] ss:$4 sm:$0xff] %v773_v1 }
  0x1e   : > { %v431_v12 = vld.sshfl [vmem:[#allocation1] sm:$0xff pattern:$0x73625140] }
  0x1f   : > { %484 = vst [vmem:[#allocation1] ss:$4 sm:$0xff] %v467_v9 }
  0x24   : > { %757 = vmatmul.msk.bf16.vlgmr.msrb.gmra.mxu1 %vm194_vm2, %v864_v16  ;;  %801 = vmatmul.msk.bf16.vlgmr.msrb.gmra.mxu0 %vm194_vm2, %v872_v24 }
  0x25   : > { %787 = vmatmul.msk.bf16.gmra.mxu3 %vm194_vm2, %v871_v25 }
  0x26   : > { %v485_v14 = vld.sshfl [vmem:[#allocation1] sm:$0xff pattern:$0x73625140] }
  0x27   : > { %538 = vst [vmem:[#allocation1] ss:$4 sm:$0xff] %v831_v13  ;;  %487 = vrot.lane.b32.xlu0 %v485_v14, %s909_s23 }
  0x2e   : > { %v539_v17 = vld.sshfl [vmem:[#allocation1] sm:$0xff pattern:$0x73625140] }
  0x2f   : > { %541 = vrot.lane.b32.xlu1 %v539_v17, %s909_s23  ;;  %592 = vst [vmem:[#allocation1] ss:$4 sm:$0xff] %v575_v15  ;;  %640 = vperm.xlu0 %897, %v630_v36  }
  0x34   : > { %758 = vmatmul.msk.bf16.gmra.mxu1 %vm194_vm2, %v865_v19  ;;  %802 = vmatmul.msk.bf16.gmra.mxu0 %vm194_vm2, %v873_v26 }
  0x36   : > { %v593_v18 = vld.sshfl [vmem:[#allocation1] sm:$0xff pattern:$0x73625140] }
  0x37   : > { %433 = vrot.lane.b32.xlu1 %v431_v12, %s907_s18  ;;  %595 = vrot.lane.b32.xlu2 %v593_v18, %s910_s26  ;;  %s1056_s18 = scalar_lea.vmem %s1072_s3, %s863_s15 }
  0x3f   : > { %645 = vperm.xlu1 %898, %v631_v37   ;;  %635 = vperm.xlu2 %896, %v629_v39  }
  0x47   : > { %650 = vperm.xlu2 %896, %v632_v44  }
  0x89   : > { %v284_v27 = vpop.permute.xlu0 %283 }
  0x8a   : > { %v292_v28 = vand.u32 %v284_v27, %v952_v6 }
  0x8c   : > { %301 = vmatpush.bf16.msra.mxu2 %v292_v28 }
  0x8f   : > { %771 = vmatmul.msk.bf16.vlgmr.msra.gmra.mxu2 %vm194_vm2, %v868_v29 }
  0x91   : > { %v596_v30 = vpop.permute.xlu2 %595  ;;  %v222_v52 = vpop.f32.mrf.mxu1 }
  0x92   : > { %v604_v31 = vand.u32 %v596_v30, %v952_v6  ;;  %v217_v53 = vpop.f32.mrf.mxu0 }
  0x94   : > { %613 = vmatpush.bf16.msra.mxu0 %v604_v31 }
  0x97   : > { %858 = vmatmul.msk.bf16.vlgmr.msra.gmra.mxu0 %vm194_vm2, %v880_v32 }
  0x98   : > { %v352_v57 = vpop.f32.mrf.mxu3 }
  0x99   : > { %v488_v33 = vpop.permute.xlu0 %487  ;;  %v224_v54 = vpop.f32.mrf.mxu1 }
  0x9a   : > { %v496_v34 = vand.u32 %v488_v33, %v952_v6  ;;  %v219_v55 = vpop.f32.mrf.mxu0  ;;  %v636_v24 = vpop.permute.xlu2 %635 }
  0x9c   : > { %505 = vmatpush.bf16.msrb.mxu2 %v496_v34 }
  0x9f   : > { %772 = vmatmul.msk.bf16.gmra.mxu2 %vm194_vm2, %v869_v35 }
  0xa0   : > { %v354_v60 = vpop.f32.mrf.mxu3 }
  0xa1   : > { %v542_v40 = vpop.permute.xlu1 %541  ;;  %v255_v56 = vpop.f32.mrf.mxu1 }
  0xa2   : > { %v550_v41 = vand.u32 %v542_v40, %v952_v6  ;;  %v401_v58 = vpop.f32.mrf.mxu0  ;;  %v641_v40 = vpop.permute.xlu0 %640 }
  0xa4   : > { %559 = vmatpush.bf16.msrb.mxu3 %v550_v41 }
  0xa7   : > { %844 = vmatmul.msk.bf16.vlgmr.msrb.gmra.mxu3 %vm194_vm2, %v878_v42  ;;  %859 = vmatmul.msk.bf16.gmra.mxu0 %vm194_vm2, %v881_v43 }
  0xa8   : > { %v357_v1 = vpop.f32.mrf.mxu3 }
  0xa9   : > { %v434_v45 = vpop.permute.xlu1 %433  ;;  %v257_v59 = vpop.f32.mrf.mxu1 }
  0xaa   : > { %v442_v46 = vand.u32 %v434_v45, %v952_v6  ;;  %v403_v62 = vpop.f32.mrf.mxu0  ;;  %v256_v6 = vadd.f32 %v255_v56, %v217_v53  ;;  %v258_v12 = vadd.f32 %v257_v59, %v219_v55 }
  0xac   : > { %451 = vmatpush.bf16.msra.mxu1 %v442_v46 }
  0xaf   : > { %829 = vmatmul.msk.bf16.vlgmr.msrb.gmra.mxu2 %vm194_vm2, %v876_v47  ;;  %815 = vmatmul.msk.bf16.vlgmr.msra.gmra.mxu1 %vm194_vm2, %v874_v48 }
  0xb0   : > { %v359_v5 = vpop.f32.mrf.mxu3 }
  0xb1   : > { %v260_v63 = vpop.f32.mrf.mxu1  ;;  %v646_v55 = vpop.permute.xlu1 %645 }
  0xb2   : > { %v406_v2 = vpop.f32.mrf.mxu0  ;;  %v261_v22 = vadd.f32 %v260_v63, %v222_v52 }
  0xb7   : > { %845 = vmatmul.msk.bf16.gmra.mxu3 %vm194_vm2, %v879_v49 }
  0xb9   : > { %v262_v4 = vpop.f32.mrf.mxu1 }
  0xba   : > { %v408_v7 = vpop.f32.mrf.mxu0  ;;  %v263_v37 = vadd.f32 %v262_v4, %v224_v54  ;;  %v651_v4 = vpop.permute.xlu2 %650 }
  0xbf   : > { %816 = vmatmul.msk.bf16.gmra.mxu1 %vm194_vm2, %v875_v50  ;;  %830 = vmatmul.msk.bf16.gmra.mxu2 %vm194_vm2, %v877_v51 }
 0x112   : > { %v303_v61 = vpop.f32.mrf.mxu2 }
 0x113   : > { %v313_v8 = vadd.f32 %v303_v61, %v256_v6 }
 0x114   : > { %v615_v16 = vpop.f32.mrf.mxu0 }
 0x115   : > { %v362_v10 = vadd.f32 %v352_v57, %v313_v8 }
 0x117   : > { %v411_v14 = vadd.f32 %v401_v58, %v362_v10 }
 0x11a   : > { %v305_v0 = vpop.f32.mrf.mxu2 }
 0x11b   : > { %v314_v15 = vadd.f32 %v305_v0, %v258_v12 }
 0x11c   : > { %v617_v32 = vpop.f32.mrf.mxu0 }
 0x11d   : > { %v363_v19 = vadd.f32 %v354_v60, %v314_v15 }
 0x11f   : > { %v412_v25 = vadd.f32 %v403_v62, %v363_v19 }
 0x122   : > { %v308_v3 = vpop.f32.mrf.mxu2 }
 0x123   : > { %v315_v26 = vadd.f32 %v308_v3, %v261_v22 }
 0x124   : > { %v620_v51 = vpop.f32.mrf.mxu0 }
 0x125   : > { %v364_v33 = vadd.f32 %v357_v1, %v315_v26 }
 0x127   : > { %v413_v41 = vadd.f32 %v406_v2, %v364_v33 }
 0x12a   : > { %v310_v9 = vpop.f32.mrf.mxu2  ;;  %v561_v13 = vpop.f32.mrf.mxu3 }
 0x12b   : > { %v316_v42 = vadd.f32 %v310_v9, %v263_v37 }
 0x12c   : > { %v453_v11 = vpop.f32.mrf.mxu1  ;;  %v622_v2 = vpop.f32.mrf.mxu0 }
 0x12d   : > { %v463_v17 = vadd.f32 %v453_v11, %v411_v14  ;;  %v365_v48 = vadd.f32 %v359_v5, %v316_v42 }
 0x12f   : > { %v414_v56 = vadd.f32 %v408_v7, %v365_v48 }
 0x132   : > { %v507_v18 = vpop.f32.mrf.mxu2  ;;  %v563_v28 = vpop.f32.mrf.mxu3 }
 0x133   : > { %v517_v20 = vadd.f32 %v507_v18, %v463_v17 }
 0x134   : > { %v455_v21 = vpop.f32.mrf.mxu1 }
 0x135   : > { %v571_v23 = vadd.f32 %v561_v13, %v517_v20  ;;  %v464_v29 = vadd.f32 %v455_v21, %v412_v25 }
 0x137   : > { %v625_v27 = vadd.f32 %v615_v16, %v571_v23 }
 0x139   : > { %v653_v30 = vadd.f32 %v636_v24, %v625_v27 }
 0x13a   : > { %v509_v31 = vpop.f32.mrf.mxu2  ;;  %v566_v47 = vpop.f32.mrf.mxu3 }
 0x13b   : > { %v657_v34 = vmax.f32 %v653_v30, 0.0  ;;  %v518_v35 = vadd.f32 %v509_v31, %v464_v29 }
 0x13c   : > { %v458_v36 = vpop.f32.mrf.mxu1 }
 0x13d   : > { %v661_v38 = vpack.c.bf16 %v657_v34, %v657_v34  ;;  %v572_v39 = vadd.f32 %v563_v28, %v518_v35  ;;  %v465_v44 = vadd.f32 %v458_v36, %v413_v41 }
 0x13f   : > { %666 = vst.msk [vmem:[%s1056_s18] sm:$0xf] %vm665_vm3, %v661_v38  ;;  %v626_v43 = vadd.f32 %v617_v32, %v572_v39 }
 0x141   : > { %v654_v45 = vadd.f32 %v641_v40, %v626_v43 }
 0x142   : > { %v512_v46 = vpop.f32.mrf.mxu2  ;;  %v568_v63 = vpop.f32.mrf.mxu3 }
 0x143   : > { %v658_v49 = vmax.f32 %v654_v45, 0.0  ;;  %v519_v50 = vadd.f32 %v512_v46, %v465_v44 }
 0x144   : > { %v460_v54 = vpop.f32.mrf.mxu1 }
 0x145   : > { %v662_v52 = vpack.c.bf16 %v658_v49, %v658_v49  ;;  %v573_v53 = vadd.f32 %v566_v47, %v519_v50  ;;  %v466_v58 = vadd.f32 %v460_v54, %v414_v56 }
 0x147   : > { %667 = vst.msk [vmem:[%s1056_s18 + $0x4] sm:$0xf] %vm665_vm3, %v662_v52  ;;  %v627_v57 = vadd.f32 %v620_v51, %v573_v53 }
 0x149   : > { %v655_v59 = vadd.f32 %v646_v55, %v627_v57 }
 0x14a   : > { %v514_v60 = vpop.f32.mrf.mxu2 }
 0x14b   : > { %v659_v61 = vmax.f32 %v655_v59, 0.0  ;;  %v520_v62 = vadd.f32 %v514_v60, %v466_v58 }
 0x14d   : > { %v663_v0 = vpack.c.bf16 %v659_v61, %v659_v61  ;;  %v574_v1 = vadd.f32 %v568_v63, %v520_v62 }
 0x14f   : > { %668 = vst.msk [vmem:[%s1056_s18 + $0x8] sm:$0xf] %vm665_vm3, %v663_v0  ;;  %v628_v3 = vadd.f32 %v622_v2, %v574_v1 }
 0x151   : > { %v656_v5 = vadd.f32 %v651_v4, %v628_v3 }
 0x153   : > { %v660_v6 = vmax.f32 %v656_v5, 0.0 }
 0x155   : > { %v664_v7 = vpack.c.bf16 %v660_v6, %v660_v6 }
 0x157   : > { %669 = vst.msk [vmem:[%s1056_s18 + $0xc] sm:$0xf] %vm665_vm3, %v664_v7 }
 0x158 PF: > { %s13_s12 = sadd.s32 1, %s905_s12  }
 0x159   : > { %p10_p4 = scmp.ge.s32.totalorder %s13_s12, 4  }
 0x15b   :  { %12 = sbr.rel (!%p10_p4) target bundleno = 1 (0x1), region = 73 }

// kernel: cond_model_forward.12
= control target key start
LH: loop header
LB: loop body
LE: loop exit
PB: predicated region body
PF: predicated region fallthrough
CT: control target
= control target key end

     0   :  { %s663_s12 = smov 0   ;;  %s729_s0 = inlined_call_operand.vmem [shape: bf16[2,1,16,42], index: 0, kind: input, shape index: {}]   ;;  %s730_s1 = inlined_call_operand.vmem [shape: bf16[9,16,16], index: 1, kind: input, shape index: {}]   ;;  %s731_s2 = inlined_call_operand.vmem [shape: f32[1,16,1], index: 2, kind: input, shape index: {}]   ;;  %s732_s3 = inlined_call_operand.vmem [shape: bf16[2,1,16,24], index: 3, kind: output, shape index: {}]  }
   0x1 LB: > { %s519_s13 = sadd.s32 4294967295, %s632_s12   ;;  %p523_p0 = scmp.ge.s32.totalorder %s632_s12, 1  ;;  %s632_s12 = sphi %s663_s12, %s13_s12  }
   0x2   : > { %p137_p1 = scmp.lt.s32.totalorder %s632_s12, 3 }
   0x4   : > { %p138_p2 = pnand %p523_p0, %p137_p1 }
   0x5   : > { %p161_p3 = scmp.lt.s32.totalorder (!%p138_p2), %s519_s13, 1  ;;  %s634_s18 = smov (!%p138_p2), 122  }
   0x6   : > { %141 = sbr.rel (%p138_p2) target bundleno = 310 (0x136), region = 32  ;;  %s635_s19 = smov (!%p138_p2), 127  }
   0x7   : > { %s636_s20 = smov (!%p138_p2), 116   ;;  %s637_s21 = smov (!%p138_p2), 121  }
   0x8   : > { %s638_s22 = smov (!%p138_p2), 126   ;;  %s639_s23 = smov (!%p138_p2), 115  }
   0x9   : > { %s640_s24 = smov (!%p138_p2), 120   ;;  %s641_s25 = smov (!%p138_p2), 114  }
   0xb   : > { %s734_s13 = smov (!%p161_p3, %s519_s13), 1  ;;  %vm192_vm0 = vcmask 130048   ;;  %v598_v1 = vld [vmem:[%s730_s1] sm:$0xff]  ;;  %v599_v6 = vld [vmem:[%s730_s1 + $0x8] sm:$0xff]  ;;  %v601_v7 = vld [vmem:[%s730_s1 + $0x18] sm:$0xff]  ;;  %v642_v10 = vmov 0  }
   0xc   : > { %s595_s14 = sshll.u32 %s734_s13, 3  ;;  %v444_v8 = vld [vmem:[%s731_s2 + $0x8] sm:$0xff]  ;;  %v443_v9 = vld [vmem:[%s731_s2] sm:$0xff]  ;;  %625 = vset.pattern.permute.xlu0 %v642_v10  ;;  %624 = vset.pattern.permute.xlu2 %v642_v10  ;;  %v600_v13 = vld [vmem:[%s730_s1 + $0x10] sm:$0xff]  ;;  %vm461_vm1 = vcmask 191488  }
   0xd   : > { %s165_s17 = scalar_lea.vmem %s729_s0, %s595_s14  ;;  %v602_v15 = vld [vmem:[%s730_s1 + $0x20] sm:$0xff]  ;;  %v603_v17 = vld [vmem:[%s730_s1 + $0x28] sm:$0xff]  ;;  %v605_v18 = vld [vmem:[%s730_s1 + $0x38] sm:$0xff]  ;;  %s170_s26 = scalar_lea.vmem %s732_s3, %s595_s14 }
   0xe   : > { %v597_v0 = vld [vmem:[%s165_s17] sm:$0xff]  ;;  %v604_v19 = vld [vmem:[%s730_s1 + $0x30] sm:$0xff] }
   0xf   : > { %271 = vrot.lane.b32.xlu1 %v597_v0, %s634_s18  ;;  %189 = vrot.lane.b32.xlu0 %v597_v0, %s635_s19  ;;  %v606_v20 = vld [vmem:[%s730_s1 + $0x40] sm:$0xff] }
  0x10   : > { %361 = vrot.lane.b32.xlu2 %v597_v0, %s636_s20  ;;  %226 = vmatpush.bf16.msra.mxu1 %v597_v0 }
  0x13   : > { %543 = vmatmul.msk.bf16.vlgmr.msra.gmra.mxu1 %vm192_vm0, %v598_v1 }
  0x17   : > { %301 = vrot.lane.b32.xlu1 %v597_v0, %s637_s21  ;;  %241 = vrot.lane.b32.xlu0 %v597_v0, %s638_s22 }
  0x18   : > { %391 = vrot.lane.b32.xlu2 %v597_v0, %s639_s23 }
  0x1f   : > { %331 = vrot.lane.b32.xlu0 %v597_v0, %s640_s24  ;;  %421 = vrot.lane.b32.xlu1 %v597_v0, %s641_s25 }
  0x20   : > { %447 = vperm.xlu2 %624, %v443_v9  }
  0x27   : > { %452 = vperm.xlu0 %625, %v444_v8  }
  0x6a   : > { %v362_v2 = vpop.permute.xlu2 %361 }
  0x72   : > { %v392_v3 = vpop.permute.xlu2 %391 }
  0x7a   : > { %v448_v47 = vpop.permute.xlu2 %447 }
  0x81   : > { %v272_v4 = vpop.permute.xlu1 %271  ;;  %v190_v5 = vpop.permute.xlu0 %189 }
  0x82   : > { %203 = vmatpush.bf16.msra.mxu0 %v190_v5  ;;  %284 = vmatpush.bf16.msra.mxu3 %v272_v4 }
  0x85   : > { %538 = vmatmul.msk.bf16.vlgmr.msra.gmra.mxu0 %vm192_vm0, %v599_v6  ;;  %557 = vmatmul.msk.bf16.vlgmr.msra.gmra.mxu3 %vm192_vm0, %v601_v7 }
  0x86   : > { %404 = vmatpush.bf16.msrb.mxu3 %v392_v3 }
  0x89   : > { %v302_v11 = vpop.permute.xlu1 %301  ;;  %v242_v12 = vpop.permute.xlu0 %241 }
  0x8a   : > { %254 = vmatpush.bf16.msra.mxu2 %v242_v12  ;;  %314 = vmatpush.bf16.msrb.mxu0 %v302_v11 }
  0x8d   : > { %550 = vmatmul.msk.bf16.vlgmr.msra.gmra.mxu2 %vm192_vm0, %v600_v13 }
  0x8e   : > { %374 = vmatpush.bf16.msrb.mxu2 %v362_v2 }
  0x90   : > { %v228_v22 = vpop.f32.mrf.mxu1 }
  0x91   : > { %v332_v14 = vpop.permute.xlu0 %331  ;;  %v422_v16 = vpop.permute.xlu1 %421 }
  0x92   : > { %344 = vmatpush.bf16.msrb.mxu1 %v332_v14  ;;  %434 = vmatpush.bf16.msra.mxu0 %v422_v16 }
  0x95   : > { %564 = vmatmul.msk.bf16.vlgmr.msrb.gmra.mxu0 %vm192_vm0, %v602_v15  ;;  %571 = vmatmul.msk.bf16.vlgmr.msrb.gmra.mxu1 %vm192_vm0, %v603_v17 }
  0x96   : > { %585 = vmatmul.msk.bf16.vlgmr.msrb.gmra.mxu3 %vm192_vm0, %v605_v18 }
  0x98   : > { %v230_v27 = vpop.f32.mrf.mxu1 }
  0x99   : > { %v453_v58 = vpop.permute.xlu0 %452 }
  0x9d   : > { %578 = vmatmul.msk.bf16.vlgmr.msrb.gmra.mxu2 %vm192_vm0, %v604_v19 }
  0xa5   : > { %592 = vmatmul.msk.bf16.vlgmr.msra.gmra.mxu0 %vm192_vm0, %v606_v20 }
 0x102   : > { %v205_v21 = vpop.f32.mrf.mxu0 }
 0x103   : > { %v229_v26 = vadd.f32 %v228_v22, %v205_v21 }
 0x108   : > { %v286_v24 = vpop.f32.mrf.mxu3 }
 0x10a   : > { %v207_v23 = vpop.f32.mrf.mxu0 }
 0x10b   : > { %v231_v33 = vadd.f32 %v230_v27, %v207_v23 }
 0x110   : > { %v256_v25 = vpop.f32.mrf.mxu2  ;;  %v288_v30 = vpop.f32.mrf.mxu3 }
 0x111   : > { %v261_v29 = vadd.f32 %v256_v25, %v229_v26 }
 0x112   : > { %v316_v28 = vpop.f32.mrf.mxu0  ;;  %v346_v34 = vpop.f32.mrf.mxu1 }
 0x113   : > { %v291_v31 = vadd.f32 %v286_v24, %v261_v29 }
 0x115   : > { %v321_v36 = vadd.f32 %v316_v28, %v291_v31 }
 0x117   : > { %v351_v38 = vadd.f32 %v346_v34, %v321_v36 }
 0x118   : > { %v258_v32 = vpop.f32.mrf.mxu2 }
 0x119   : > { %v262_v37 = vadd.f32 %v258_v32, %v231_v33  ;;  %v406_v40 = vpop.f32.mrf.mxu3 }
 0x11a   : > { %v318_v35 = vpop.f32.mrf.mxu0  ;;  %v348_v46 = vpop.f32.mrf.mxu1 }
 0x11b   : > { %v292_v39 = vadd.f32 %v288_v30, %v262_v37 }
 0x11d   : > { %v322_v44 = vadd.f32 %v318_v35, %v292_v39 }
 0x11f   : > { %v352_v49 = vadd.f32 %v348_v46, %v322_v44 }
 0x120   : > { %v376_v41 = vpop.f32.mrf.mxu2 }
 0x121   : > { %v381_v42 = vadd.f32 %v376_v41, %v351_v38  ;;  %v408_v54 = vpop.f32.mrf.mxu3 }
 0x122   : > { %v436_v43 = vpop.f32.mrf.mxu0 }
 0x123   : > { %v411_v45 = vadd.f32 %v406_v40, %v381_v42 }
 0x125   : > { %v441_v48 = vadd.f32 %v436_v43, %v411_v45 }
 0x127   : > { %v455_v50 = vadd.f32 %v448_v47, %v441_v48 }
 0x128   : > { %v378_v51 = vpop.f32.mrf.mxu2 }
 0x129   : > { %v457_v52 = vmax.f32 %v455_v50, 0.0  ;;  %v382_v53 = vadd.f32 %v378_v51, %v352_v49 }
 0x12a   : > { %v438_v57 = vpop.f32.mrf.mxu0 }
 0x12b   : > { %v459_v55 = vpack.c.bf16 %v457_v52, %v457_v52  ;;  %v412_v56 = vadd.f32 %v408_v54, %v382_v53 }
 0x12d   : > { %462 = vst.msk [vmem:[%s170_s26] sm:$0xf] %vm461_vm1, %v459_v55  ;;  %v442_v59 = vadd.f32 %v438_v57, %v412_v56 }
 0x12f   : > { %v456_v60 = vadd.f32 %v453_v58, %v442_v59 }
 0x131   : > { %v458_v61 = vmax.f32 %v456_v60, 0.0 }
 0x133   : > { %v460_v62 = vpack.c.bf16 %v458_v61, %v458_v61 }
 0x135   : > { %463 = vst.msk [vmem:[%s170_s26 + $0x4] sm:$0xf] %vm461_vm1, %v460_v62 }
 0x136 PF: > { %s13_s12 = sadd.s32 1, %s632_s12  }
 0x137   : > { %p10_p4 = scmp.ge.s32.totalorder %s13_s12, 4  }
 0x139   :  { %12 = sbr.rel (!%p10_p4) target bundleno = 1 (0x1), region = 70 }

// kernel: cond_model_forward.13
= control target key start
LH: loop header
LB: loop body
LE: loop exit
PB: predicated region body
PF: predicated region fallthrough
CT: control target
= control target key end

     0   :  { %s551_s12 = smov 0   ;;  %s611_s0 = inlined_call_operand.vmem [shape: bf16[2,4,16,12], index: 0, kind: input, shape index: {}]   ;;  %s612_s1 = inlined_call_operand.vmem [shape: bf16[9,8,16], index: 1, kind: input, shape index: {}]   ;;  %s613_s2 = inlined_call_operand.vmem [shape: f32[1,8,1], index: 2, kind: input, shape index: {}]   ;;  %s614_s3 = inlined_call_operand.vmem [shape: f32[2,1,8,6], index: 3, kind: output, shape index: {}]  }
   0x1 LB: > { %s451_s13 = sadd.s32 4294967295, %s525_s12   ;;  %p455_p0 = scmp.ge.s32.totalorder %s525_s12, 1  ;;  %s525_s12 = sphi %s551_s12, %s13_s12  }
   0x2   : > { %p137_p1 = scmp.lt.s32.totalorder %s525_s12, 3 }
   0x4   : > { %p138_p2 = pnand %p455_p0, %p137_p1 }
   0x5   : > { %p160_p3 = scmp.lt.s32.totalorder (!%p138_p2), %s451_s13, 1  ;;  %s527_s18 = smov (!%p138_p2), 127  }
   0x6   : > { %141 = sbr.rel (%p138_p2) target bundleno = 290 (0x122), region = 32  ;;  %s528_s19 = smov (!%p138_p2), 125  }
   0x7   : > { %s529_s20 = smov (!%p138_p2), 124  }
   0xb   : > { %s616_s13 = smov (!%p160_p3, %s451_s13), 1  ;;  %v461_v4 = vld [vmem:[%s612_s1 + $0x4] sm:$0xf]  ;;  %vm184_vm0 = vcmask 130048   ;;  %v172_v5 = vld [vmem:[%s612_s1] sm:$0xf] }
   0xc   : > { %s500_s14 = sshll.u32 %s616_s13, 5  ;;  %v476_v6 = vld [vmem:[%s612_s1 + $0xc] sm:$0xf]  ;;  %v484_v7 = vld [vmem:[%s612_s1 + $0x10] sm:$0xf]  ;;  %v389_v10 = vld [vmem:[%s613_s2] sm:$0xff] }
   0xd   : > { %s164_s17 = scalar_lea.vmem %s611_s0, %s500_s14  ;;  %v496_v9 = vld [vmem:[%s612_s1 + $0x20] sm:$0xf]  ;;  %v530_v11 = vmov 0   ;;  %v472_v14 = vld [vmem:[%s612_s1 + $0x8] sm:$0xf]  ;;  %s458_s16 = sshll.u32 %s616_s13, 3 }
   0xe   : > { %v501_v0 = vld [vmem:[%s164_s17] sm:$0xff]  ;;  %v502_v1 = vld [vmem:[%s164_s17 + $0x8] sm:$0xff]  ;;  %v504_v2 = vld [vmem:[%s164_s17 + $0x18] sm:$0xff]  ;;  %517 = vset.pattern.permute.xlu2 %v530_v11  ;;  %518 = vset.pattern.permute.xlu0 %v530_v11  ;;  %vm396_vm1 = vcmask 48128  }
   0xf   : > { %225 = vrot.lane.b32.xlu0 %v501_v0, %s527_s18  ;;  %347 = vrot.lane.b32.xlu1 %v502_v1, %s528_s19  ;;  %v503_v3 = vld [vmem:[%s164_s17 + $0x10] sm:$0xff]  ;;  %v494_v15 = vld [vmem:[%s612_s1 + $0x1c] sm:$0xf] }
  0x10   : > { %369 = vrot.lane.b32.xlu2 %v501_v0, %s529_s20  ;;  %195 = vmatpush.bf16.msra.mxu0 %v502_v1  ;;  %v490_v18 = vld [vmem:[%s612_s1 + $0x14] sm:$0xf]  ;;  %v492_v20 = vld [vmem:[%s612_s1 + $0x18] sm:$0xf] }
  0x11   : > { %217 = vmatpush.bf16.msra.mxu1 %v501_v0  ;;  %266 = vmatpush.bf16.msra.mxu3 %v503_v3 }
  0x13   : > { %466 = vmatmul.msk.bf16.vlgmr.msra.gmra.mxu0 %vm184_vm0, %v461_v4 }
  0x14   : > { %294 = vmatpush.bf16.msrb.mxu0 %v504_v2  ;;  %471 = vmatmul.msk.bf16.vlgmr.msra.gmra.mxu1 %vm184_vm0, %v172_v5 }
  0x15   : > { %481 = vmatmul.msk.bf16.vlgmr.msra.gmra.mxu3 %vm184_vm0, %v476_v6 }
  0x17   : > { %325 = vrot.lane.b32.xlu0 %v501_v0, %s528_s19  ;;  %303 = vrot.lane.b32.xlu1 %v503_v3, %s527_s18  ;;  %s168_s19 = scalar_lea.vmem %s614_s3, %s458_s16 }
  0x18   : > { %392 = vperm.xlu2 %517, %v389_v10  }
  0x23   : > { %489 = vmatmul.msk.bf16.vlgmr.msrb.gmra.mxu0 %vm184_vm0, %v484_v7 }
  0x6a   : > { %v370_v8 = vpop.permute.xlu2 %369 }
  0x6b   : > { %382 = vmatpush.bf16.msra.mxu0 %v370_v8 }
  0x6e   : > { %497 = vmatmul.msk.bf16.vlgmr.msra.gmra.mxu0 %vm184_vm0, %v496_v9 }
  0x72   : > { %v393_v44 = vpop.permute.xlu2 %392 }
  0x81   : > { %v226_v12 = vpop.permute.xlu0 %225  ;;  %v348_v13 = vpop.permute.xlu1 %347 }
  0x82   : > { %238 = vmatpush.bf16.msra.mxu2 %v226_v12  ;;  %360 = vmatpush.bf16.msrb.mxu3 %v348_v13 }
  0x85   : > { %473 = vmatmul.msk.bf16.vlgmr.msra.gmra.mxu2 %vm184_vm0, %v472_v14  ;;  %495 = vmatmul.msk.bf16.vlgmr.msrb.gmra.mxu3 %vm184_vm0, %v494_v15 }
  0x89   : > { %v326_v16 = vpop.permute.xlu0 %325  ;;  %v304_v17 = vpop.permute.xlu1 %303 }
  0x8a   : > { %338 = vmatpush.bf16.msrb.mxu2 %v326_v16  ;;  %316 = vmatpush.bf16.msrb.mxu1 %v304_v17 }
  0x8d   : > { %491 = vmatmul.msk.bf16.vlgmr.msrb.gmra.mxu1 %vm184_vm0, %v490_v18 }
  0x90   : > { %v197_v19 = vpop.f32.mrf.mxu0 }
  0x91   : > { %v219_v22 = vpop.f32.mrf.mxu1 }
  0x92   : > { %v220_v32 = vadd.f32 %v219_v22, %v197_v19 }
  0x95   : > { %493 = vmatmul.msk.bf16.vlgmr.msrb.gmra.mxu2 %vm184_vm0, %v492_v20 }
  0x98   : > { %v199_v21 = vpop.f32.mrf.mxu0  ;;  %v268_v24 = vpop.f32.mrf.mxu3 }
  0x99   : > { %v221_v23 = vpop.f32.mrf.mxu1 }
  0xa0   : > { %v296_v25 = vpop.f32.mrf.mxu0  ;;  %v270_v26 = vpop.f32.mrf.mxu3 }
  0xa8   : > { %v298_v27 = vpop.f32.mrf.mxu0 }
  0xeb   : > { %v384_v28 = vpop.f32.mrf.mxu0 }
  0xf3   : > { %v386_v29 = vpop.f32.mrf.mxu0 }
 0x108   : > { %v240_v30 = vpop.f32.mrf.mxu2  ;;  %v362_v31 = vpop.f32.mrf.mxu3 }
 0x109   : > { %v244_v34 = vadd.f32 %v240_v30, %v220_v32 }
 0x10a   : > { %v318_v33 = vpop.f32.mrf.mxu1 }
 0x10b   : > { %v272_v35 = vadd.f32 %v268_v24, %v244_v34 }
 0x10d   : > { %v300_v39 = vadd.f32 %v296_v25, %v272_v35 }
 0x10f   : > { %v322_v40 = vadd.f32 %v318_v33, %v300_v39 }
 0x110   : > { %v242_v36 = vpop.f32.mrf.mxu2  ;;  %v364_v37 = vpop.f32.mrf.mxu3 }
 0x112   : > { %v320_v38 = vpop.f32.mrf.mxu1 }
 0x118   : > { %v340_v41 = vpop.f32.mrf.mxu2 }
 0x119   : > { %v344_v42 = vadd.f32 %v340_v41, %v322_v40 }
 0x11b   : > { %v366_v43 = vadd.f32 %v362_v31, %v344_v42 }
 0x11d   : > { %v388_v45 = vadd.f32 %v384_v28, %v366_v43 }
 0x11f   : > { %v395_v46 = vadd.f32 %v393_v44, %v388_v45 }
 0x120   : > { %v342_v47 = vpop.f32.mrf.mxu2 }
 0x121   : > { %397 = vst.msk [vmem:[%s168_s19] sm:$0xff] %vm396_vm1, %v395_v46 }
 0x122 PF: > { %s13_s12 = sadd.s32 1, %s525_s12  }
 0x123   : > { %p10_p4 = scmp.ge.s32.totalorder %s13_s12, 4  }
 0x125   :  { %12 = sbr.rel (!%p10_p4) target bundleno = 1 (0x1), region = 73 }

// kernel: cond_model_forward.14
= control target key start
LH: loop header
LB: loop body
LE: loop exit
PB: predicated region body
PF: predicated region fallthrough
CT: control target
= control target key end

     0   :  { %s398_s15 = smov 0   ;;  %s431_s0 = inlined_call_operand.vmem [shape: f32[2,8,4], index: 0, kind: input, shape index: {}]   ;;  %s432_s1 = inlined_call_operand.vmem [shape: f32[8,1], index: 1, kind: input, shape index: {}]   ;;  %s433_s2 = inlined_call_operand.vmem [shape: f32[8,1], index: 2, kind: input, shape index: {}]   ;;  %s434_s3 = inlined_call_operand.vmem [shape: f32[2,8,4], index: 3, kind: output, shape index: {0}]   ;;  %s435_s4 = inlined_call_operand.vmem [shape: f32[2,8,4], index: 4, kind: output, shape index: {1}]  }
   0x1 LB: > { %s335_s16 = sadd.s32 4294967295, %s370_s15   ;;  %p339_p0 = scmp.ge.s32.totalorder %s370_s15, 1  ;;  %s370_s15 = sphi %s398_s15, %s15_s15  }
   0x2   : > { %p164_p1 = scmp.lt.s32.totalorder %s370_s15, 3 }
   0x4   : > { %p165_p2 = pnand %p339_p0, %p164_p1 }
   0x5   : > { %p192_p3 = scmp.lt.s32.totalorder (!%p165_p2), %s335_s16, 1 }
   0x6   : > { %168 = sbr.rel (%p165_p2) target bundleno = 178 (0xb2), region = 32 }
   0xb   : > { %v205_v0 = vld [vmem:[%s432_s1] sm:$0xff]  ;;  %v372_v2 = vmov 0   ;;  %s437_s16 = smov (!%p192_p3, %s335_s16), 1  ;;  %vm243_vm0 = vcmask 31744  }
   0xc   : > { %v206_v1 = vld [vmem:[%s433_s2] sm:$0xff]  ;;  %355 = vset.pattern.permute.xlu0 %v372_v2  ;;  %s412_s21 = sshll.u32 %s437_s16, 3 }
   0xd   : > { %356 = vrcp.f32 %v206_v1  ;;  %210 = vperm.xlu0 %355, %v205_v0   ;;  %s195_s24 = scalar_lea.vmem %s431_s0, %s412_s21  ;;  %s199_s27 = scalar_lea.vmem %s434_s3, %s412_s21 }
   0xe   : > { %v204_v4 = vld [vmem:[%s195_s24] sm:$0xff]  ;;  %s203_s30 = scalar_lea.vmem %s435_s4, %s412_s21 }
  0x13   : > { %v357_v3 = vpop.eup %356 }
  0x15   : > { %219 = vperm.xlu0 %355, %v357_v3  }
  0x7f   : > { %v211_v5 = vpop.permute.xlu0 %210 }
  0x80   : > { %v213_v6 = vsub.f32 %v204_v4, %v211_v5 }
  0x82   : > { %v214_v7 = vadd.f32 0.5, %v213_v6 }
  0x84   : > { %v215_v8 = vfloor.f32 %v214_v7 }
  0x86   : > { %v242_v9 = vadd.f32 %v215_v8, %v211_v5  ;;  %v216_v10 = vadd.f32 0.5, %v215_v8  ;;  %v343_v11 = vadd.f32 -0.5, %v215_v8 }
  0x87   : > { %v220_v12 = vpop.permute.xlu0 %219 }
  0x88   : > { %244 = vst.msk [vmem:[%s199_s27] sm:$0xff] %vm243_vm0, %v242_v9  ;;  %v222_v13 = vmul.f32 %v220_v12, %v216_v10  ;;  %v232_v14 = vmul.f32 %v343_v11, %v220_v12 }
  0x8a   : > { %v223_v15 = vmul.f32 0.044715, %v222_v13  ;;  %v233_v16 = vmul.f32 0.044715, %v232_v14 }
  0x8c   : > { %v224_v17 = vmul.f32 %v223_v15, %v222_v13  ;;  %v234_v18 = vmul.f32 %v233_v16, %v232_v14 }
  0x8e   : > { %v225_v19 = vmul.f32 %v224_v17, %v222_v13  ;;  %v235_v20 = vmul.f32 %v234_v18, %v232_v14 }
  0x90   : > { %v226_v21 = vadd.f32 %v225_v19, %v222_v13  ;;  %v236_v22 = vadd.f32 %v235_v20, %v232_v14 }
  0x92   : > { %v227_v23 = vmul.f32 0.7978846, %v226_v21  ;;  %v237_v24 = vmul.f32 0.7978846, %v236_v22 }
  0x94   : > { %358 = vtanh.f32 %v227_v23 }
  0x95   : > { %360 = vtanh.f32 %v237_v24 }
  0x9a   : > { %v359_v25 = vpop.eup %358 }
  0x9b   : > { %v361_v26 = vpop.eup %360  ;;  %v229_v27 = vadd.f32 1.0, %v359_v25 }
  0x9c   : > { %v239_v28 = vadd.f32 1.0, %v361_v26 }
  0x9d   : > { %v230_v29 = vmul.f32 0.5, %v229_v27 }
  0x9e   : > { %v240_v30 = vmul.f32 0.5, %v239_v28 }
  0xa0   : > { %v241_v31 = vsub.f32 %v230_v29, %v240_v30 }
  0xa2   : > { %v245_v32 = vmax.f32 %v241_v31, 1e-09 }
  0xa4   : > { %362 = vlog2.f32 %v245_v32 }
  0xaa   : > { %v363_v33 = vpop.eup %362 }
  0xab   : > { %v247_v34 = vmul.f32 0.6931472, %v363_v33 }
  0xad   : > { %v248_v35 = vsub.f32 0.0, %v247_v34 }
  0xaf   : > { %v249_v36 = vmul.f32 1.442695, %v248_v35 }
  0xb1   : > { %250 = vst.msk [vmem:[%s203_s30] sm:$0xff] %vm243_vm0, %v249_v36 }
  0xb2 PF: > { %s15_s15 = sadd.s32 1, %s370_s15  }
  0xb3   : > { %p12_p4 = scmp.ge.s32.totalorder %s15_s15, 4  }
  0xb5   :  { %14 = sbr.rel (!%p12_p4) target bundleno = 1 (0x1), region = 74 }

// kernel: cond_model_forward.15
= control target key start
LH: loop header
LB: loop body
LE: loop exit
PB: predicated region body
PF: predicated region fallthrough
CT: control target
= control target key end

     0   :  { %s1129_s18 = smov 0   ;;  %s1284_s0 = inlined_call_operand.vmem [shape: bf16[2,1,8,12], index: 0, kind: input, shape index: {}]   ;;  %s1285_s1 = inlined_call_operand.vmem [shape: bf16[2,1,8,12], index: 1, kind: input, shape index: {}]   ;;  %s1286_s2 = inlined_call_operand.vmem [shape: bf16[9,16,8], index: 2, kind: input, shape index: {}]   ;;  %s1287_s3 = inlined_call_operand.vmem [shape: bf16[9,16,8], index: 3, kind: input, shape index: {}]   ;;  %s1288_s4 = inlined_call_operand.vmem [shape: f32[4,16,1], index: 4, kind: input, shape index: {}]   ;;  %s1289_s5 = inlined_call_operand.vmem [shape: bf16[2,4,16,6], index: 5, kind: output, shape index: {}]  }
   0x1 LB: > { %s908_s19 = sadd.s32 4294967295, %s1093_s18   ;;  %p912_p0 = scmp.ge.s32.totalorder %s1093_s18, 1  ;;  %s1093_s18 = sphi %s1129_s18, %s15_s18  }
   0x2   : > { %p195_p1 = scmp.lt.s32.totalorder %s1093_s18, 3 }
   0x4   : > { %p196_p2 = pnand %p912_p0, %p195_p1 }
   0x5   : > { %p226_p3 = scmp.lt.s32.totalorder (!%p196_p2), %s908_s19, 1  ;;  %s1095_s27 = smov (!%p196_p2), 127  }
   0x6   : > { %199 = sbr.rel (%p196_p2) target bundleno = 349 (0x15d), region = 40  ;;  %s1096_s28 = smov (!%p196_p2), 124  }
   0x7   : > { %s1097_s29 = smov (!%p196_p2), 125  }
   0xb   : > { %s1291_s19 = smov (!%p226_p3, %s908_s19), 1  ;;  %vm263_vm0 = vcmask 1043456   ;;  %v1055_v7 = vld [vmem:[%s1286_s2 + $0x8] sm:$0xff]  ;;  %vm259_vm1 = vcmask 64512   ;;  %v1057_v8 = vld [vmem:[%s1286_s2 + $0x18] sm:$0xff]  ;;  %v1054_v10 = vld [vmem:[%s1286_s2] sm:$0xff] }
   0xc   : > { %s913_s20 = sshll.u32 %s1291_s19, 2  ;;  %v1059_v9 = vld [vmem:[%s1286_s2 + $0x28] sm:$0xff]  ;;  %v1056_v14 = vld [vmem:[%s1286_s2 + $0x10] sm:$0xff]  ;;  %v1062_v16 = vld [vmem:[%s1286_s2 + $0x40] sm:$0xff]  ;;  %v1098_v27 = vmov 0   ;;  %s1053_s11 = sshll.u32 %s1291_s19, 5 }
   0xd   : > { %s229_s23 = scalar_lea.vmem %s1284_s0, %s913_s20  ;;  %s233_s26 = scalar_lea.vmem %s1285_s1, %s913_s20  ;;  %v1058_v23 = vld [vmem:[%s1286_s2 + $0x20] sm:$0xff]  ;;  %1084 = vset.pattern.permute.xlu0 %v1098_v27  ;;  %1085 = vset.pattern.permute.xlu1 %v1098_v27  ;;  %v1060_v28 = vld [vmem:[%s1286_s2 + $0x30] sm:$0xff]  ;;  %v755_v31 = vld [vmem:[%s1288_s4 + $0x8] sm:$0xff]  ;;  %vm772_vm2 = vcmask 44032  }
   0xe   : > { %v240_v0 = vld [vmem:[%s229_s23] sm:$0xf]  ;;  %1086 = vset.pattern.permute.xlu2 %v1098_v27  ;;  %v1065_v29 = vld [vmem:[%s1287_s3 + $0x10] sm:$0xff]  ;;  %v1061_v33 = vld [vmem:[%s1286_s2 + $0x38] sm:$0xff]  ;;  %s1260_s14 = scalar_lea.vmem %s1289_s5, %s1053_s11 }
   0xf   : > { %v255_v1 = vunpack.c.l.b16 %v240_v0  ;;  %v470_v2 = vld [vmem:[%s233_s26] sm:$0xf]  ;;  %v290_v3 = vsel %vm263_vm0, %v240_v0, 0  ;;  %v1069_v36 = vld [vmem:[%s1287_s3 + $0x30] sm:$0xff]  ;;  %v1040_v37 = vld [vmem:[%s1288_s4 + $0x18] sm:$0xff] }
  0x10   : > { %v556_v4 = vunpack.c.l.b16 %v470_v2  ;;  %299 = vmatpush.bf16.msra.mxu1 %v290_v3  ;;  %354 = vmatpush.bf16.msra.mxu3 %v290_v3  ;;  %v482_v17 = vsel %vm263_vm0, %v470_v2, 0  ;;  %v1067_v25 = vld [vmem:[%s1287_s3 + $0x20] sm:$0xff]  ;;  %v1044_v38 = vld [vmem:[%s1288_s4 + $0x28] sm:$0xff]  ;;  %v1039_v39 = vld [vmem:[%s1288_s4 + $0x10] sm:$0xff] }
  0x11   : > { %v256_v5 = vpack.c.b16 %v255_v1, %v255_v1  ;;  %v754_v26 = vld [vmem:[%s1288_s4] sm:$0xff]  ;;  %v1064_v40 = vld [vmem:[%s1287_s3 + $0x8] sm:$0xff]  ;;  %v1047_v41 = vld [vmem:[%s1288_s4 + $0x30] sm:$0xff] }
  0x12   : > { %v557_v6 = vpack.c.b16 %v556_v4, %v556_v4  ;;  %v1071_v34 = vld [vmem:[%s1287_s3 + $0x40] sm:$0xff]  ;;  %v1066_v43 = vld [vmem:[%s1287_s3 + $0x18] sm:$0xff]  ;;  %v1068_v45 = vld [vmem:[%s1287_s3 + $0x28] sm:$0xff] }
  0x13   : > { %257 = vrot.lane.b32.xlu0 %v256_v5, %s1095_s27  ;;  %446 = vrot.lane.b32.xlu1 %v256_v5, %s1096_s28  ;;  %v1063_v35 = vld [vmem:[%s1287_s3] sm:$0xff]  ;;  %v1048_v44 = vld [vmem:[%s1288_s4 + $0x38] sm:$0xff] }
  0x14   : > { %404 = vmatpush.bf16.msrb.mxu1 %v290_v3  ;;  %617 = vrot.lane.b32.xlu2 %v557_v6, %s1097_s29  ;;  %v1043_v42 = vld [vmem:[%s1288_s4 + $0x20] sm:$0xff]  ;;  %v1070_v46 = vld [vmem:[%s1287_s3 + $0x38] sm:$0xff] }
  0x15   : > { %930 = vmatmul.msk.bf16.vlgmr.msra.gmra.mxu1 %vm259_vm1, %v1055_v7  ;;  %944 = vmatmul.msk.bf16.vlgmr.msra.gmra.mxu3 %vm259_vm1, %v1057_v8 }
  0x18   : > { %513 = vmatpush.bf16.msra.mxu1 %v290_v3 }
  0x1b   : > { %317 = vrot.lane.b32.xlu0 %v256_v5, %s1097_s29  ;;  %558 = vrot.lane.b32.xlu1 %v557_v6, %s1095_s27 }
  0x1c   : > { %730 = vrot.lane.b32.xlu2 %v557_v6, %s1096_s28 }
  0x23   : > { %758 = vperm.xlu0 %1084, %v754_v26   ;;  %763 = vperm.xlu1 %1085, %v755_v31  }
  0x24   : > { %780 = vperm.xlu2 %1086, %v1039_v39  }
  0x25   : > { %958 = vmatmul.msk.bf16.vlgmr.msrb.gmra.mxu1 %vm259_vm1, %v1059_v9 }
  0x2b   : > { %785 = vperm.xlu1 %1085, %v1040_v37   ;;  %807 = vperm.xlu0 %1084, %v1044_v38  }
  0x2c   : > { %802 = vperm.xlu2 %1086, %v1043_v42  }
  0x33   : > { %824 = vperm.xlu1 %1085, %v1047_v41  }
  0x34   : > { %829 = vperm.xlu2 %1086, %v1048_v44  }
  0x35   : > { %982 = vmatmul.msk.bf16.vlgmr.msra.gmra.mxu1 %vm259_vm1, %v1054_v10 }
  0x6e   : > { %v618_v18 = vpop.permute.xlu2 %617 }
  0x6f   : > { %v623_v19 = vsel %vm263_vm0, %v618_v18, 0 }
  0x70   : > { %632 = vmatpush.bf16.msrb.mxu1 %v623_v19 }
  0x73   : > { %1010 = vmatmul.msk.bf16.vlgmr.msrb.gmra.mxu1 %vm259_vm1, %v1067_v25 }
  0x76   : > { %v731_v30 = vpop.permute.xlu2 %730 }
  0x77   : > { %v736_v32 = vsel %vm263_vm0, %v731_v30, 0 }
  0x78   : > { %745 = vmatpush.bf16.msra.mxu1 %v736_v32 }
  0x7e   : > { %v781_v9 = vpop.permute.xlu2 %780 }
  0x83   : > { %1038 = vmatmul.msk.bf16.vlgmr.msra.gmra.mxu1 %vm259_vm1, %v1071_v34 }
  0x85   : > { %v258_v11 = vpop.permute.xlu0 %257  ;;  %v447_v12 = vpop.permute.xlu1 %446 }
  0x86   : > { %v265_v13 = vsel %vm263_vm0, %v258_v11, 0  ;;  %v452_v15 = vsel %vm263_vm0, %v447_v12, 0 }
  0x87   : > { %274 = vmatpush.bf16.msra.mxu0 %v265_v13  ;;  %461 = vmatpush.bf16.msrb.mxu3 %v452_v15 }
  0x8a   : > { %925 = vmatmul.msk.bf16.vlgmr.msra.gmra.mxu0 %vm259_vm1, %v1056_v14  ;;  %972 = vmatmul.msk.bf16.vlgmr.msrb.gmra.mxu3 %vm259_vm1, %v1062_v16 }
  0x8b   : > { %382 = vmatpush.bf16.msrb.mxu0 %v265_v13 }
  0x8d   : > { %v318_v20 = vpop.permute.xlu0 %317  ;;  %v559_v21 = vpop.permute.xlu1 %558 }
  0x8e   : > { %v323_v22 = vsel %vm263_vm0, %v318_v20, 0  ;;  %v564_v24 = vsel %vm263_vm0, %v559_v21, 0 }
  0x8f   : > { %491 = vmatpush.bf16.msra.mxu0 %v482_v17  ;;  %332 = vmatpush.bf16.msra.mxu2 %v323_v22 }
  0x90   : > { %573 = vmatpush.bf16.msra.mxu3 %v564_v24 }
  0x92   : > { %939 = vmatmul.msk.bf16.vlgmr.msra.gmra.mxu2 %vm259_vm1, %v1058_v23  ;;  %v301_v47 = vpop.f32.mrf.mxu1  ;;  %v803_v23 = vpop.permute.xlu2 %802 }
  0x93   : > { %429 = vmatpush.bf16.msrb.mxu2 %v323_v22 }
  0x94   : > { %686 = vmatpush.bf16.msrb.mxu3 %v564_v24 }
  0x95   : > { %v759_v62 = vpop.permute.xlu0 %758  ;;  %v764_v7 = vpop.permute.xlu1 %763 }
  0x97   : > { %538 = vmatpush.bf16.msra.mxu2 %v482_v17 }
  0x98   : > { %v356_v50 = vpop.f32.mrf.mxu3 }
  0x9a   : > { %953 = vmatmul.msk.bf16.vlgmr.msrb.gmra.mxu0 %vm259_vm1, %v1060_v28  ;;  %996 = vmatmul.msk.bf16.vlgmr.msra.gmra.mxu3 %vm259_vm1, %v1065_v29  ;;  %v303_v48 = vpop.f32.mrf.mxu1 }
  0x9b   : > { %600 = vmatpush.bf16.msrb.mxu0 %v482_v17 }
  0x9d   : > { %v786_v42 = vpop.permute.xlu1 %785 }
  0xa0   : > { %v358_v53 = vpop.f32.mrf.mxu3 }
  0xa2   : > { %965 = vmatmul.msk.bf16.vlgmr.msrb.gmra.mxu2 %vm259_vm1, %v1061_v33  ;;  %v406_v51 = vpop.f32.mrf.mxu1 }
  0xa3   : > { %659 = vmatpush.bf16.msrb.mxu2 %v482_v17 }
  0xaa   : > { %977 = vmatmul.msk.bf16.vlgmr.msra.gmra.mxu0 %vm259_vm1, %v1063_v35  ;;  %1024 = vmatmul.msk.bf16.vlgmr.msrb.gmra.mxu3 %vm259_vm1, %v1069_v36  ;;  %v1250_v56 = vpop.f32.mrf.mxu1 }
  0xab   : > { %713 = vmatpush.bf16.msra.mxu0 %v623_v19 }
  0xb2   : > { %989 = vmatmul.msk.bf16.vlgmr.msra.gmra.mxu2 %vm259_vm1, %v1064_v40  ;;  %v515_v60 = vpop.f32.mrf.mxu1 }
  0xba   : > { %1003 = vmatmul.msk.bf16.vlgmr.msrb.gmra.mxu0 %vm259_vm1, %v1066_v43  ;;  %v517_v3 = vpop.f32.mrf.mxu1  ;;  %v808_v43 = vpop.permute.xlu0 %807 }
  0xc2   : > { %1017 = vmatmul.msk.bf16.vlgmr.msrb.gmra.mxu2 %vm259_vm1, %v1068_v45 }
  0xca   : > { %1031 = vmatmul.msk.bf16.vlgmr.msra.gmra.mxu0 %vm259_vm1, %v1070_v46 }
  0xf0   : > { %v634_v15 = vpop.f32.mrf.mxu1 }
  0xf8   : > { %v636_v36 = vpop.f32.mrf.mxu1 }
 0x107   : > { %v276_v49 = vpop.f32.mrf.mxu0 }
 0x108   : > { %v302_v13 = vadd.f32 %v301_v47, %v276_v49 }
 0x10d   : > { %v463_v58 = vpop.f32.mrf.mxu3 }
 0x10f   : > { %v278_v52 = vpop.f32.mrf.mxu0 }
 0x110   : > { %v304_v27 = vadd.f32 %v303_v48, %v278_v52 }
 0x115   : > { %v334_v54 = vpop.f32.mrf.mxu2  ;;  %v1254_v63 = vpop.f32.mrf.mxu3 }
 0x116   : > { %v357_v17 = vadd.f32 %v356_v50, %v334_v54 }
 0x117   : > { %v384_v55 = vpop.f32.mrf.mxu0 }
 0x118   : > { %v407_v30 = vadd.f32 %v406_v51, %v384_v55 }
 0x11d   : > { %v336_v57 = vpop.f32.mrf.mxu2  ;;  %v575_v11 = vpop.f32.mrf.mxu3 }
 0x11e   : > { %v359_v32 = vadd.f32 %v358_v53, %v336_v57 }
 0x11f   : > { %v1252_v59 = vpop.f32.mrf.mxu0 }
 0x120   : > { %v409_v51 = vadd.f32 %v1250_v56, %v1252_v59 }
 0x125   : > { %v431_v61 = vpop.f32.mrf.mxu2  ;;  %v577_v26 = vpop.f32.mrf.mxu3 }
 0x126   : > { %v436_v38 = vadd.f32 %v431_v61, %v407_v30 }
 0x127   : > { %v493_v0 = vpop.f32.mrf.mxu0 }
 0x128   : > { %v516_v1 = vadd.f32 %v515_v60, %v493_v0  ;;  %v468_v48 = vadd.f32 %v463_v58, %v436_v38 }
 0x12a   : > { %v766_v2 = vadd.f32 %v759_v62, %v516_v1  ;;  %v747_v62 = vpop.f32.mrf.mxu1 }
 0x12c   : > { %v768_v4 = vmax.f32 %v766_v2, 0.0  ;;  %v825_v2 = vpop.permute.xlu1 %824 }
 0x12d   : > { %v433_v5 = vpop.f32.mrf.mxu2  ;;  %v688_v49 = vpop.f32.mrf.mxu3 }
 0x12e   : > { %v770_v6 = vpack.c.bf16 %v768_v4, %v768_v4  ;;  %v437_v57 = vadd.f32 %v433_v5, %v409_v51 }
 0x12f   : > { %v495_v8 = vpop.f32.mrf.mxu0 }
 0x130   : > { %773 = vst.msk [vmem:[%s1260_s14] sm:$0xf] %vm772_vm2, %v770_v6  ;;  %v518_v10 = vadd.f32 %v517_v3, %v495_v8  ;;  %v469_v1 = vadd.f32 %v1254_v63, %v437_v57 }
 0x132   : > { %v767_v12 = vadd.f32 %v764_v7, %v518_v10  ;;  %v749_v10 = vpop.f32.mrf.mxu1 }
 0x134   : > { %v769_v14 = vmax.f32 %v767_v12, 0.0  ;;  %v830_v12 = vpop.permute.xlu2 %829 }
 0x135   : > { %v540_v16 = vpop.f32.mrf.mxu2  ;;  %v690_v4 = vpop.f32.mrf.mxu3 }
 0x136   : > { %v771_v18 = vpack.c.bf16 %v769_v14, %v769_v14  ;;  %v545_v19 = vadd.f32 %v540_v16, %v302_v13 }
 0x137   : > { %v602_v20 = vpop.f32.mrf.mxu0 }
 0x138   : > { %774 = vst.msk [vmem:[%s1260_s14 + $0x4] sm:$0xf] %vm772_vm2, %v771_v18  ;;  %v580_v21 = vadd.f32 %v575_v11, %v545_v19  ;;  %v607_v22 = vadd.f32 %v602_v20, %v357_v17 }
 0x13a   : > { %v788_v24 = vadd.f32 %v781_v9, %v580_v21  ;;  %v639_v25 = vadd.f32 %v634_v15, %v607_v22 }
 0x13c   : > { %v790_v28 = vmax.f32 %v788_v24, 0.0  ;;  %v810_v29 = vadd.f32 %v803_v23, %v639_v25 }
 0x13d   : > { %v542_v31 = vpop.f32.mrf.mxu2 }
 0x13e   : > { %v792_v33 = vpack.c.bf16 %v790_v28, %v790_v28  ;;  %v812_v34 = vmax.f32 %v810_v29, 0.0  ;;  %v546_v35 = vadd.f32 %v542_v31, %v304_v27 }
 0x13f   : > { %v604_v37 = vpop.f32.mrf.mxu0 }
 0x140   : > { %1041 = vst.msk [vmem:[%s1260_s14 + $0x8] sm:$0xf] %vm772_vm2, %v792_v33  ;;  %v814_v39 = vpack.c.bf16 %v812_v34, %v812_v34  ;;  %v581_v40 = vadd.f32 %v577_v26, %v546_v35  ;;  %v608_v41 = vadd.f32 %v604_v37, %v359_v32 }
 0x142   : > { %1045 = vst.msk [vmem:[%s1260_s14 + $0x10] sm:$0xf] %vm772_vm2, %v814_v39  ;;  %v789_v44 = vadd.f32 %v786_v42, %v581_v40  ;;  %v640_v45 = vadd.f32 %v636_v36, %v608_v41 }
 0x144   : > { %v791_v46 = vmax.f32 %v789_v44, 0.0  ;;  %v811_v47 = vadd.f32 %v808_v43, %v640_v45 }
 0x145   : > { %v661_v50 = vpop.f32.mrf.mxu2 }
 0x146   : > { %v793_v52 = vpack.c.bf16 %v791_v46, %v791_v46  ;;  %v813_v53 = vmax.f32 %v811_v47, 0.0  ;;  %v666_v54 = vadd.f32 %v661_v50, %v468_v48 }
 0x147   : > { %v715_v55 = vpop.f32.mrf.mxu0 }
 0x148   : > { %1042 = vst.msk [vmem:[%s1260_s14 + $0xc] sm:$0xf] %vm772_vm2, %v793_v52  ;;  %v815_v60 = vpack.c.bf16 %v813_v53, %v813_v53  ;;  %v693_v61 = vadd.f32 %v688_v49, %v666_v54 }
 0x14a   : > { %1046 = vst.msk [vmem:[%s1260_s14 + $0x14] sm:$0xf] %vm772_vm2, %v815_v60  ;;  %v720_v0 = vadd.f32 %v715_v55, %v693_v61 }
 0x14c   : > { %v752_v58 = vadd.f32 %v747_v62, %v720_v0 }
 0x14d   : > { %v663_v3 = vpop.f32.mrf.mxu2 }
 0x14e   : > { %v832_v56 = vadd.f32 %v825_v2, %v752_v58  ;;  %v667_v59 = vadd.f32 %v663_v3, %v469_v1 }
 0x14f   : > { %v717_v7 = vpop.f32.mrf.mxu0 }
 0x150   : > { %v834_v6 = vmax.f32 %v832_v56, 0.0  ;;  %v694_v5 = vadd.f32 %v690_v4, %v667_v59 }
 0x152   : > { %v836_v8 = vpack.c.bf16 %v834_v6, %v834_v6  ;;  %v721_v9 = vadd.f32 %v717_v7, %v694_v5 }
 0x154   : > { %1049 = vst.msk [vmem:[%s1260_s14 + $0x18] sm:$0xf] %vm772_vm2, %v836_v8  ;;  %v753_v11 = vadd.f32 %v749_v10, %v721_v9 }
 0x156   : > { %v833_v13 = vadd.f32 %v830_v12, %v753_v11 }
 0x158   : > { %v835_v14 = vmax.f32 %v833_v13, 0.0 }
 0x15a   : > { %v837_v15 = vpack.c.bf16 %v835_v14, %v835_v14 }
 0x15c   : > { %1050 = vst.msk [vmem:[%s1260_s14 + $0x1c] sm:$0xf] %vm772_vm2, %v837_v15 }
 0x15d PF: > { %s15_s18 = sadd.s32 1, %s1093_s18  }
 0x15e   : > { %p12_p4 = scmp.ge.s32.totalorder %s15_s18, 4  }
 0x160   :  { %14 = sbr.rel (!%p12_p4) target bundleno = 1 (0x1), region = 95 }

// kernel: cond_model_forward.17
= control target key start
LH: loop header
LB: loop body
LE: loop exit
PB: predicated region body
PF: predicated region fallthrough
CT: control target
= control target key end

     0   :  { %s478_s12 = smov 0   ;;  %s510_s0 = inlined_call_operand.vmem [shape: f32[2,16,16], index: 0, kind: input, shape index: {}]   ;;  %s511_s1 = inlined_call_operand.vmem [shape: f32[2,32,16], index: 1, kind: input, shape index: {}]   ;;  %s512_s2 = inlined_call_operand.vmem [shape: f32[2,16,16], index: 2, kind: output, shape index: {0}]   ;;  %s513_s3 = inlined_call_operand.vmem [shape: f32[2,16,16], index: 3, kind: output, shape index: {1}]  }
   0x1 LB: > { %s397_s13 = sadd.s32 4294967295, %s456_s12   ;;  %p401_p0 = scmp.ge.s32.totalorder %s456_s12, 1  ;;  %s456_s12 = sphi %s478_s12, %s14_s12  }
   0x2   : > { %p150_p1 = scmp.lt.s32.totalorder %s456_s12, 3 }
   0x4   : > { %p151_p2 = pnand %p401_p0, %p150_p1 }
   0x5   : > { %p184_p3 = scmp.lt.s32.totalorder (!%p151_p2), %s397_s13, 1 }
   0x6   : > { %154 = sbr.rel (%p151_p2) target bundleno = 94 (0x5e), region = 28 }
   0xb   : > { %s515_s13 = smov (!%p184_p3, %s397_s13), 1  ;;  %vm282_vm0 = vcmask 130048  }
   0xc   : > { %s486_s14 = sshll.u32 %s515_s13, 4  ;;  %s415_s15 = sshll.u32 %s515_s13, 5 }
   0xd   : > { %s188_s18 = scalar_lea.vmem %s510_s0, %s486_s14  ;;  %s193_s21 = scalar_lea.vmem %s511_s1, %s415_s15 }
   0xe   : > { %v204_v0 = vld [vmem:[%s188_s18] sm:$0xff]  ;;  %v208_v2 = vld [vmem:[%s193_s21 + $0x10] sm:$0xff]  ;;  %v209_v3 = vld [vmem:[%s193_s21 + $0x18] sm:$0xff]  ;;  %s198_s24 = scalar_lea.vmem %s512_s2, %s486_s14  ;;  %s203_s27 = scalar_lea.vmem %s513_s3, %s486_s14 }
   0xf   : > { %v206_v1 = vld [vmem:[%s193_s21] sm:$0xff]  ;;  %v212_v4 = vand.u32 2147483647, %v208_v2  ;;  %v205_v6 = vld [vmem:[%s188_s18 + $0x8] sm:$0xff]  ;;  %v213_v8 = vand.u32 2147483647, %v209_v3 }
  0x10   : > { %v232_v5 = vsub.f32 %v204_v0, %v206_v1  ;;  %v207_v7 = vld [vmem:[%s193_s21 + $0x8] sm:$0xff]  ;;  %v210_v24 = vmax.f32 %v208_v2, 0.0  ;;  %v211_v26 = vmax.f32 %v209_v3, 0.0 }
  0x11   : > { %v233_v9 = vsub.f32 %v205_v6, %v207_v7  ;;  %v214_v10 = vsub.f32 0.0, %v212_v4  ;;  %v215_v12 = vsub.f32 0.0, %v213_v8 }
  0x12   : > { %v234_v11 = vadd.f32 0.5, %v232_v5 }
  0x13   : > { %v235_v13 = vadd.f32 0.5, %v233_v9  ;;  %v216_v14 = vmul.f32 1.442695, %v214_v10  ;;  %v218_v16 = vmul.f32 1.442695, %v215_v12 }
  0x14   : > { %v236_v15 = vfloor.f32 %v234_v11 }
  0x15   : > { %v237_v17 = vfloor.f32 %v235_v13  ;;  %426 = vpow2.f32 %v216_v14 }
  0x16   : > { %v280_v18 = vadd.f32 %v236_v15, %v206_v1  ;;  %428 = vpow2.f32 %v218_v16  ;;  %v238_v34 = vadd.f32 0.5, %v236_v15  ;;  %v410_v35 = vadd.f32 -0.5, %v236_v15 }
  0x17   : > { %v281_v19 = vadd.f32 %v237_v17, %v207_v7  ;;  %v239_v36 = vadd.f32 0.5, %v237_v17  ;;  %v411_v37 = vadd.f32 -0.5, %v237_v17 }
  0x18   : > { %283 = vst.msk [vmem:[%s198_s24] sm:$0xff] %vm282_vm0, %v280_v18 }
  0x19   : > { %284 = vst.msk [vmem:[%s198_s24 + $0x8] sm:$0xff] %vm282_vm0, %v281_v19 }
  0x1b   : > { %v427_v20 = vpop.eup %426 }
  0x1c   : > { %v429_v21 = vpop.eup %428  ;;  %v220_v22 = vadd.f32 1.0, %v427_v20 }
  0x1d   : > { %v221_v23 = vadd.f32 1.0, %v429_v21 }
  0x1e   : > { %430 = vlog2.f32 %v220_v22 }
  0x1f   : > { %432 = vlog2.f32 %v221_v23 }
  0x24   : > { %v431_v25 = vpop.eup %430 }
  0x25   : > { %v433_v27 = vpop.eup %432  ;;  %v223_v28 = vmul.f32 0.6931472, %v431_v25 }
  0x26   : > { %v225_v29 = vmul.f32 0.6931472, %v433_v27 }
  0x27   : > { %v226_v30 = vadd.f32 %v223_v28, %v210_v24 }
  0x28   : > { %v227_v31 = vadd.f32 %v225_v29, %v211_v26 }
  0x29   : > { %v228_v32 = vadd.f32 1e-06, %v226_v30 }
  0x2a   : > { %v229_v33 = vadd.f32 1e-06, %v227_v31 }
  0x2b   : > { %434 = vrcp.f32 %v228_v32 }
  0x2c   : > { %436 = vrcp.f32 %v229_v33 }
  0x31   : > { %v435_v38 = vpop.eup %434 }
  0x32   : > { %v437_v39 = vpop.eup %436  ;;  %v240_v40 = vmul.f32 %v435_v38, %v238_v34  ;;  %v260_v41 = vmul.f32 %v435_v38, %v410_v35 }
  0x33   : > { %v241_v42 = vmul.f32 %v437_v39, %v239_v36  ;;  %v261_v43 = vmul.f32 %v437_v39, %v411_v37 }
  0x34   : > { %v242_v44 = vmul.f32 0.044715, %v240_v40  ;;  %v262_v45 = vmul.f32 0.044715, %v260_v41 }
  0x35   : > { %v243_v46 = vmul.f32 0.044715, %v241_v42  ;;  %v263_v47 = vmul.f32 0.044715, %v261_v43 }
  0x36   : > { %v244_v48 = vmul.f32 %v242_v44, %v240_v40  ;;  %v264_v49 = vmul.f32 %v262_v45, %v260_v41 }
  0x37   : > { %v245_v50 = vmul.f32 %v243_v46, %v241_v42  ;;  %v265_v51 = vmul.f32 %v263_v47, %v261_v43 }
  0x38   : > { %v246_v52 = vmul.f32 %v244_v48, %v240_v40  ;;  %v266_v53 = vmul.f32 %v264_v49, %v260_v41 }
  0x39   : > { %v247_v54 = vmul.f32 %v245_v50, %v241_v42  ;;  %v267_v55 = vmul.f32 %v265_v51, %v261_v43 }
  0x3a   : > { %v248_v56 = vadd.f32 %v246_v52, %v240_v40  ;;  %v268_v57 = vadd.f32 %v266_v53, %v260_v41 }
  0x3b   : > { %v249_v58 = vadd.f32 %v247_v54, %v241_v42  ;;  %v269_v59 = vadd.f32 %v267_v55, %v261_v43 }
  0x3c   : > { %v250_v60 = vmul.f32 0.7978846, %v248_v56  ;;  %v270_v61 = vmul.f32 0.7978846, %v268_v57 }
  0x3d   : > { %v251_v62 = vmul.f32 0.7978846, %v249_v58  ;;  %v271_v63 = vmul.f32 0.7978846, %v269_v59 }
  0x3e   : > { %438 = vtanh.f32 %v250_v60 }
  0x3f   : > { %440 = vtanh.f32 %v270_v61 }
  0x40   : > { %442 = vtanh.f32 %v251_v62 }
  0x41   : > { %444 = vtanh.f32 %v271_v63 }
  0x44   : > { %v439_v0 = vpop.eup %438 }
  0x45   : > { %v441_v1 = vpop.eup %440  ;;  %v254_v2 = vadd.f32 1.0, %v439_v0 }
  0x46   : > { %v443_v3 = vpop.eup %442  ;;  %v274_v4 = vadd.f32 1.0, %v441_v1 }
  0x47   : > { %v445_v5 = vpop.eup %444  ;;  %v256_v6 = vmul.f32 0.5, %v254_v2  ;;  %v255_v7 = vadd.f32 1.0, %v443_v3 }
  0x48   : > { %v276_v8 = vmul.f32 0.5, %v274_v4  ;;  %v275_v9 = vadd.f32 1.0, %v445_v5 }
  0x49   : > { %v257_v10 = vmul.f32 0.5, %v255_v7 }
  0x4a   : > { %v278_v11 = vsub.f32 %v256_v6, %v276_v8  ;;  %v277_v12 = vmul.f32 0.5, %v275_v9 }
  0x4c   : > { %v285_v13 = vmax.f32 %v278_v11, 1e-09  ;;  %v279_v14 = vsub.f32 %v257_v10, %v277_v12 }
  0x4e   : > { %446 = vlog2.f32 %v285_v13  ;;  %v286_v15 = vmax.f32 %v279_v14, 1e-09 }
  0x50   : > { %448 = vlog2.f32 %v286_v15 }
  0x54   : > { %v447_v16 = vpop.eup %446 }
  0x55   : > { %v288_v17 = vmul.f32 0.6931472, %v447_v16 }
  0x56   : > { %v449_v18 = vpop.eup %448 }
  0x57   : > { %v291_v19 = vsub.f32 0.0, %v288_v17  ;;  %v290_v20 = vmul.f32 0.6931472, %v449_v18 }
  0x59   : > { %v293_v21 = vmul.f32 1.442695, %v291_v19  ;;  %v292_v22 = vsub.f32 0.0, %v290_v20 }
  0x5b   : > { %295 = vst.msk [vmem:[%s203_s27] sm:$0xff] %vm282_vm0, %v293_v21  ;;  %v294_v23 = vmul.f32 1.442695, %v292_v22 }
  0x5d   : > { %296 = vst.msk [vmem:[%s203_s27 + $0x8] sm:$0xff] %vm282_vm0, %v294_v23 }
  0x5e PF: > { %s14_s12 = sadd.s32 1, %s456_s12  }
  0x5f   : > { %p11_p4 = scmp.ge.s32.totalorder %s14_s12, 4  }
  0x61   :  { %13 = sbr.rel (!%p11_p4) target bundleno = 1 (0x1), region = 73 }

// kernel: cond_model_forward.16
= control target key start
LH: loop header
LB: loop body
LE: loop exit
PB: predicated region body
PF: predicated region fallthrough
CT: control target
= control target key end

     0   :  { %s1568_s18 = smov 0   ;;  %s1758_s0 = inlined_call_operand.vmem [shape: bf16[2,1,16,42], index: 0, kind: input, shape index: {}]   ;;  %s1759_s1 = inlined_call_operand.vmem [shape: bf16[2,1,16,42], index: 1, kind: input, shape index: {}]   ;;  %s1760_s2 = inlined_call_operand.vmem [shape: bf16[9,32,16], index: 2, kind: input, shape index: {}]   ;;  %s1761_s3 = inlined_call_operand.vmem [shape: bf16[9,32,16], index: 3, kind: input, shape index: {}]   ;;  %s1762_s4 = inlined_call_operand.vmem [shape: f32[1,32,1], index: 4, kind: input, shape index: {}]   ;;  %s1763_s5 = inlined_call_operand.vmem [shape: f32[2,1,32,24], index: 5, kind: output, shape index: {}]  }
   0x1 LB: > { %s1193_s19 = sadd.s32 4294967295, %s1527_s18   ;;  %p1197_p0 = scmp.ge.s32.totalorder %s1527_s18, 1  ;;  %s1527_s18 = sphi %s1568_s18, %s15_s18  }
   0x2   : > { %p197_p1 = scmp.lt.s32.totalorder %s1527_s18, 3 }
   0x4   : > { %p198_p2 = pnand %p1197_p0, %p197_p1 }
   0x5   : > { %p230_p3 = scmp.lt.s32.totalorder (!%p198_p2), %s1193_s19, 1  ;;  %s1529_s24 = smov (!%p198_p2), 127  }
   0x6   : > { %201 = sbr.rel (%p198_p2) target bundleno = 412 (0x19c), region = 40  ;;  %s1530_s25 = smov (!%p198_p2), 122  }
   0x7   : > { %s1531_s26 = smov (!%p198_p2), 120   ;;  %s1532_s27 = smov (!%p198_p2), 126  }
   0x8   : > { %s1533_s28 = smov (!%p198_p2), 121   ;;  %s1534_s29 = smov (!%p198_p2), 116  }
   0x9   : > { %s1535_s8 = smov (!%p198_p2), 115   ;;  %s1536_s9 = smov (!%p198_p2), 114  }
   0xb   : > { %s1765_s19 = smov (!%p230_p3, %s1193_s19), 1  ;;  %v1463_v2 = vld [vmem:[%s1760_s2 + $0x8] sm:$0xff]  ;;  %vm275_vm0 = vcmask 130048   ;;  %v1462_v3 = vld [vmem:[%s1760_s2] sm:$0xff]  ;;  %v1472_v5 = vld [vmem:[%s1760_s2 + $0x50] sm:$0xff]  ;;  %v1537_v50 = vmov 0  }
   0xc   : > { %s1458_s20 = sshll.u32 %s1765_s19, 3  ;;  %v1465_v7 = vld [vmem:[%s1760_s2 + $0x18] sm:$0xff]  ;;  %v1464_v9 = vld [vmem:[%s1760_s2 + $0x10] sm:$0xff]  ;;  %v1466_v15 = vld [vmem:[%s1760_s2 + $0x20] sm:$0xff]  ;;  %1518 = vset.pattern.permute.xlu1 %v1537_v50  ;;  %1520 = vset.pattern.permute.xlu0 %v1537_v50  ;;  %vm1121_vm1 = vcmask 195584  }
   0xd   : > { %s234_s23 = scalar_lea.vmem %s1758_s0, %s1458_s20  ;;  %s239_s7 = scalar_lea.vmem %s1759_s1, %s1458_s20  ;;  %v1468_v10 = vld [vmem:[%s1760_s2 + $0x30] sm:$0xff]  ;;  %v1473_v11 = vld [vmem:[%s1760_s2 + $0x58] sm:$0xff]  ;;  %v1470_v17 = vld [vmem:[%s1760_s2 + $0x40] sm:$0xff]  ;;  %1519 = vset.pattern.permute.xlu2 %v1537_v50 }
   0xe   : > { %v1461_v0 = vld [vmem:[%s234_s23] sm:$0xff]  ;;  %v1469_v19 = vld [vmem:[%s1760_s2 + $0x38] sm:$0xff]  ;;  %v1467_v25 = vld [vmem:[%s1760_s2 + $0x28] sm:$0xff]  ;;  %s1460_s23 = sshll.u32 %s1765_s19, 5 }
   0xf   : > { %272 = vrot.lane.b32.xlu0 %v1461_v0, %s1529_s24  ;;  %399 = vrot.lane.b32.xlu1 %v1461_v0, %s1530_s25  ;;  %v1480_v1 = vld [vmem:[%s239_s7] sm:$0xff]  ;;  %v1471_v26 = vld [vmem:[%s1760_s2 + $0x48] sm:$0xff] }
  0x10   : > { %493 = vrot.lane.b32.xlu2 %v1461_v0, %s1531_s26  ;;  %1500 = vmatpush.bf16.msra.mxu3 %v1461_v0  ;;  %v1481_v21 = vld [vmem:[%s1761_s3] sm:$0xff]  ;;  %v1476_v27 = vld [vmem:[%s1760_s2 + $0x70] sm:$0xff]  ;;  %v1482_v28 = vld [vmem:[%s1761_s3 + $0x8] sm:$0xff] }
  0x11   : > { %325 = vmatpush.bf16.msra.mxu1 %v1461_v0  ;;  %v1474_v29 = vld [vmem:[%s1760_s2 + $0x60] sm:$0xff]  ;;  %v1477_v31 = vld [vmem:[%s1760_s2 + $0x78] sm:$0xff]  ;;  %v1475_v36 = vld [vmem:[%s1760_s2 + $0x68] sm:$0xff] }
  0x12   : > { %v1478_v30 = vld [vmem:[%s1760_s2 + $0x80] sm:$0xff]  ;;  %v1479_v37 = vld [vmem:[%s1760_s2 + $0x88] sm:$0xff]  ;;  %v1483_v41 = vld [vmem:[%s1761_s3 + $0x10] sm:$0xff] }
  0x13   : > { %1231 = vmatmul.msk.bf16.vlgmr.msra.gmra.mxu3 %vm275_vm0, %v1463_v2  ;;  %v1489_v34 = vld [vmem:[%s1761_s3 + $0x40] sm:$0xff]  ;;  %v1490_v40 = vld [vmem:[%s1761_s3 + $0x48] sm:$0xff]  ;;  %v1487_v42 = vld [vmem:[%s1761_s3 + $0x30] sm:$0xff] }
  0x14   : > { %1230 = vmatmul.msk.bf16.vlgmr.msra.gmra.mxu1 %vm275_vm0, %v1462_v3  ;;  %v1485_v38 = vld [vmem:[%s1761_s3 + $0x20] sm:$0xff]  ;;  %v1486_v43 = vld [vmem:[%s1761_s3 + $0x28] sm:$0xff]  ;;  %v1484_v45 = vld [vmem:[%s1761_s3 + $0x18] sm:$0xff] }
  0x15   : > { %v1497_v44 = vld [vmem:[%s1761_s3 + $0x80] sm:$0xff]  ;;  %v1488_v46 = vld [vmem:[%s1761_s3 + $0x38] sm:$0xff]  ;;  %v1498_v48 = vld [vmem:[%s1761_s3 + $0x88] sm:$0xff] }
  0x16   : > { %v1493_v47 = vld [vmem:[%s1761_s3 + $0x60] sm:$0xff]  ;;  %v1491_v52 = vld [vmem:[%s1761_s3 + $0x50] sm:$0xff]  ;;  %v1494_v54 = vld [vmem:[%s1761_s3 + $0x68] sm:$0xff] }
  0x17   : > { %352 = vrot.lane.b32.xlu0 %v1461_v0, %s1532_s27  ;;  %446 = vrot.lane.b32.xlu1 %v1461_v0, %s1533_s28  ;;  %v1093_v49 = vld [vmem:[%s1762_s4] sm:$0xff]  ;;  %v1495_v53 = vld [vmem:[%s1761_s3 + $0x70] sm:$0xff] }
  0x18   : > { %540 = vrot.lane.b32.xlu2 %v1461_v0, %s1534_s29  ;;  %v1095_v57 = vld [vmem:[%s1762_s4 + $0x10] sm:$0xff]  ;;  %v1096_v58 = vld [vmem:[%s1762_s4 + $0x18] sm:$0xff] }
  0x19   : > { %v1492_v61 = vld [vmem:[%s1761_s3 + $0x58] sm:$0xff] }
  0x1a   : > { %v1496_v62 = vld [vmem:[%s1761_s3 + $0x78] sm:$0xff] }
  0x1f   : > { %587 = vrot.lane.b32.xlu0 %v1461_v0, %s1535_s8  ;;  %634 = vrot.lane.b32.xlu1 %v1461_v0, %s1536_s9 }
  0x20   : > { %732 = vrot.lane.b32.xlu2 %v1480_v1, %s1529_s24 }
  0x27   : > { %779 = vrot.lane.b32.xlu0 %v1480_v1, %s1532_s27  ;;  %826 = vrot.lane.b32.xlu1 %v1480_v1, %s1530_s25 }
  0x28   : > { %873 = vrot.lane.b32.xlu2 %v1480_v1, %s1533_s28 }
  0x2f   : > { %920 = vrot.lane.b32.xlu0 %v1480_v1, %s1531_s26  ;;  %967 = vrot.lane.b32.xlu1 %v1480_v1, %s1534_s29  ;;  %s1745_s26 = scalar_lea.vmem %s1763_s5, %s1460_s23 }
  0x30   : > { %1014 = vrot.lane.b32.xlu2 %v1480_v1, %s1535_s8 }
  0x37   : > { %1061 = vrot.lane.b32.xlu0 %v1480_v1, %s1536_s9  ;;  %1099 = vperm.xlu1 %1518, %v1093_v49  }
  0x3f   : > { %1109 = vperm.xlu0 %1520, %v1095_v57   ;;  %1114 = vperm.xlu1 %1518, %v1096_v58  }
  0x6a   : > { %v494_v4 = vpop.permute.xlu2 %493 }
  0x6b   : > { %509 = vmatpush.bf16.msrb.mxu1 %v494_v4 }
  0x6e   : > { %1286 = vmatmul.msk.bf16.vlgmr.msrb.gmra.mxu1 %vm275_vm0, %v1472_v5 }
  0x6f   : > { %701 = vmatpush.bf16.msra.mxu1 %v1480_v1 }
  0x72   : > { %v541_v12 = vpop.permute.xlu2 %540 }
  0x7a   : > { %v733_v20 = vpop.permute.xlu2 %732 }
  0x7e   : > { %1287 = vmatmul.msk.bf16.gmra.mxu1 %vm275_vm0, %v1473_v11 }
  0x81   : > { %v273_v6 = vpop.permute.xlu0 %272  ;;  %v400_v8 = vpop.permute.xlu1 %399 }
  0x82   : > { %289 = vmatpush.bf16.msra.mxu0 %v273_v6  ;;  %1499 = vmatpush.bf16.msra.mxu2 %v273_v6  ;;  %v874_v24 = vpop.permute.xlu2 %873 }
  0x83   : > { %415 = vmatpush.bf16.msrb.mxu3 %v400_v8  ;;  %889 = vmatpush.bf16.msrb.mxu1 %v874_v24 }
  0x85   : > { %1221 = vmatmul.msk.bf16.vlgmr.msra.gmra.mxu2 %vm275_vm0, %v1465_v7  ;;  %1220 = vmatmul.msk.bf16.vlgmr.msra.gmra.mxu0 %vm275_vm0, %v1464_v9  ;;  %v1094_v7 = vld [vmem:[%s1762_s4 + $0x8] sm:$0xff] }
  0x86   : > { %1258 = vmatmul.msk.bf16.vlgmr.msrb.gmra.mxu3 %vm275_vm0, %v1468_v10  ;;  %1104 = vperm.xlu2 %1519, %v1094_v7  }
  0x89   : > { %v353_v13 = vpop.permute.xlu0 %352  ;;  %v447_v14 = vpop.permute.xlu1 %446 }
  0x8a   : > { %368 = vmatpush.bf16.msrb.mxu2 %v353_v13  ;;  %462 = vmatpush.bf16.msrb.mxu0 %v447_v14  ;;  %v1015_v35 = vpop.permute.xlu2 %1014 }
  0x8e   : > { %556 = vmatpush.bf16.msra.mxu2 %v541_v12  ;;  %1342 = vmatmul.msk.bf16.vlgmr.msra.gmra.mxu1 %vm275_vm0, %v1481_v21 }
  0x91   : > { %v588_v16 = vpop.permute.xlu0 %587  ;;  %v635_v18 = vpop.permute.xlu1 %634 }
  0x92   : > { %603 = vmatpush.bf16.msra.mxu3 %v588_v16  ;;  %650 = vmatpush.bf16.msra.mxu0 %v635_v18  ;;  %v327_v51 = vpop.f32.mrf.mxu1 }
  0x95   : > { %1244 = vmatmul.msk.bf16.vlgmr.msrb.gmra.mxu2 %vm275_vm0, %v1466_v15  ;;  %1272 = vmatmul.msk.bf16.vlgmr.msrb.gmra.mxu0 %vm275_vm0, %v1470_v17 }
  0x96   : > { %1259 = vmatmul.msk.bf16.gmra.mxu3 %vm275_vm0, %v1469_v19  ;;  %748 = vmatpush.bf16.msrb.mxu2 %v733_v20  ;;  %v332_v55 = vpop.f32.mrf.mxu3 }
  0x99   : > { %v780_v22 = vpop.permute.xlu0 %779  ;;  %v827_v23 = vpop.permute.xlu1 %826 }
  0x9a   : > { %795 = vmatpush.bf16.msrb.mxu3 %v780_v22  ;;  %842 = vmatpush.bf16.msrb.mxu0 %v827_v23  ;;  %v329_v56 = vpop.f32.mrf.mxu1 }
  0x9e   : > { %1343 = vmatmul.msk.bf16.gmra.mxu1 %vm275_vm0, %v1482_v28  ;;  %v334_v59 = vpop.f32.mrf.mxu3 }
  0xa1   : > { %v921_v32 = vpop.permute.xlu0 %920  ;;  %v968_v33 = vpop.permute.xlu1 %967 }
  0xa5   : > { %1245 = vmatmul.msk.bf16.gmra.mxu2 %vm275_vm0, %v1467_v25  ;;  %1273 = vmatmul.msk.bf16.gmra.mxu0 %vm275_vm0, %v1471_v26 }
  0xa6   : > { %1314 = vmatmul.msk.bf16.vlgmr.msra.gmra.mxu3 %vm275_vm0, %v1476_v27 }
  0xa7   : > { %983 = vmatpush.bf16.msra.mxu3 %v968_v33 }
  0xa9   : > { %v1062_v39 = vpop.permute.xlu0 %1061 }
  0xaa   : > { %1077 = vmatpush.bf16.msra.mxu1 %v1062_v39 }
  0xae   : > { %1398 = vmatmul.msk.bf16.vlgmr.msrb.gmra.mxu1 %vm275_vm0, %v1489_v34 }
  0xb5   : > { %1300 = vmatmul.msk.bf16.vlgmr.msra.gmra.mxu2 %vm275_vm0, %v1474_v29  ;;  %1328 = vmatmul.msk.bf16.vlgmr.msra.gmra.mxu0 %vm275_vm0, %v1478_v30 }
  0xb6   : > { %1315 = vmatmul.msk.bf16.gmra.mxu3 %vm275_vm0, %v1477_v31  ;;  %936 = vmatpush.bf16.msra.mxu2 %v921_v32 }
  0xb7   : > { %1030 = vmatpush.bf16.msra.mxu0 %v1015_v35 }
  0xbe   : > { %1399 = vmatmul.msk.bf16.gmra.mxu1 %vm275_vm0, %v1490_v40 }
  0xc5   : > { %1301 = vmatmul.msk.bf16.gmra.mxu2 %vm275_vm0, %v1475_v36  ;;  %1329 = vmatmul.msk.bf16.gmra.mxu0 %vm275_vm0, %v1479_v37 }
  0xc6   : > { %1370 = vmatmul.msk.bf16.vlgmr.msrb.gmra.mxu3 %vm275_vm0, %v1485_v38 }
  0xce   : > { %1454 = vmatmul.msk.bf16.vlgmr.msra.gmra.mxu1 %vm275_vm0, %v1497_v44 }
  0xd5   : > { %1356 = vmatmul.msk.bf16.vlgmr.msrb.gmra.mxu2 %vm275_vm0, %v1483_v41  ;;  %1384 = vmatmul.msk.bf16.vlgmr.msrb.gmra.mxu0 %vm275_vm0, %v1487_v42 }
  0xd6   : > { %1371 = vmatmul.msk.bf16.gmra.mxu3 %vm275_vm0, %v1486_v43 }
  0xde   : > { %1455 = vmatmul.msk.bf16.gmra.mxu1 %vm275_vm0, %v1498_v48 }
  0xe5   : > { %1357 = vmatmul.msk.bf16.gmra.mxu2 %vm275_vm0, %v1484_v45  ;;  %1385 = vmatmul.msk.bf16.gmra.mxu0 %vm275_vm0, %v1488_v46 }
  0xe6   : > { %1426 = vmatmul.msk.bf16.vlgmr.msra.gmra.mxu3 %vm275_vm0, %v1493_v47 }
  0xeb   : > { %v511_v60 = vpop.f32.mrf.mxu1 }
  0xf3   : > { %v513_v5 = vpop.f32.mrf.mxu1 }
  0xf5   : > { %1412 = vmatmul.msk.bf16.vlgmr.msra.gmra.mxu2 %vm275_vm0, %v1491_v52  ;;  %1440 = vmatmul.msk.bf16.vlgmr.msra.gmra.mxu0 %vm275_vm0, %v1495_v53 }
  0xf6   : > { %1427 = vmatmul.msk.bf16.gmra.mxu3 %vm275_vm0, %v1494_v54 }
  0xfb   : > { %v516_v12 = vpop.f32.mrf.mxu1 }
 0x102   : > { %v291_v63 = vpop.f32.mrf.mxu0 }
 0x103   : > { %v328_v0 = vadd.f32 %v327_v51, %v291_v63  ;;  %v518_v19 = vpop.f32.mrf.mxu1 }
 0x105   : > { %1413 = vmatmul.msk.bf16.gmra.mxu2 %vm275_vm0, %v1492_v61  ;;  %1441 = vmatmul.msk.bf16.gmra.mxu0 %vm275_vm0, %v1496_v62 }
 0x108   : > { %v296_v1 = vpop.f32.mrf.mxu2 }
 0x109   : > { %v333_v2 = vadd.f32 %v332_v55, %v296_v1  ;;  %v417_v3 = vpop.f32.mrf.mxu3 }
 0x10a   : > { %v293_v4 = vpop.f32.mrf.mxu0 }
 0x10b   : > { %v330_v6 = vadd.f32 %v329_v56, %v293_v4  ;;  %v703_v29 = vpop.f32.mrf.mxu1 }
 0x110   : > { %v298_v8 = vpop.f32.mrf.mxu2 }
 0x111   : > { %v335_v9 = vadd.f32 %v334_v59, %v298_v8  ;;  %v419_v10 = vpop.f32.mrf.mxu3 }
 0x112   : > { %v464_v11 = vpop.f32.mrf.mxu0 }
 0x113   : > { %v705_v40 = vpop.f32.mrf.mxu1 }
 0x118   : > { %v370_v13 = vpop.f32.mrf.mxu2 }
 0x119   : > { %v380_v14 = vadd.f32 %v370_v13, %v328_v0  ;;  %v422_v15 = vpop.f32.mrf.mxu3 }
 0x11a   : > { %v466_v16 = vpop.f32.mrf.mxu0 }
 0x11b   : > { %v427_v17 = vadd.f32 %v417_v3, %v380_v14  ;;  %v708_v47 = vpop.f32.mrf.mxu1 }
 0x11d   : > { %v474_v18 = vadd.f32 %v464_v11, %v427_v17 }
 0x11f   : > { %v521_v20 = vadd.f32 %v511_v60, %v474_v18 }
 0x120   : > { %v372_v21 = vpop.f32.mrf.mxu2 }
 0x121   : > { %v381_v22 = vadd.f32 %v372_v21, %v330_v6  ;;  %v424_v23 = vpop.f32.mrf.mxu3 }
 0x122   : > { %v469_v24 = vpop.f32.mrf.mxu0 }
 0x123   : > { %v428_v25 = vadd.f32 %v419_v10, %v381_v22  ;;  %v710_v51 = vpop.f32.mrf.mxu1 }
 0x125   : > { %v475_v26 = vadd.f32 %v466_v16, %v428_v25 }
 0x127   : > { %v522_v27 = vadd.f32 %v513_v5, %v475_v26 }
 0x128   : > { %v375_v28 = vpop.f32.mrf.mxu2 }
 0x129   : > { %v382_v30 = vadd.f32 %v375_v28, %v333_v2  ;;  %v605_v31 = vpop.f32.mrf.mxu3 }
 0x12a   : > { %v471_v32 = vpop.f32.mrf.mxu0 }
 0x12b   : > { %v429_v33 = vadd.f32 %v422_v15, %v382_v30  ;;  %v891_v56 = vpop.f32.mrf.mxu1 }
 0x12d   : > { %v476_v34 = vadd.f32 %v469_v24, %v429_v33 }
 0x12f   : > { %v523_v35 = vadd.f32 %v516_v12, %v476_v34 }
 0x130   : > { %v377_v36 = vpop.f32.mrf.mxu2 }
 0x131   : > { %v383_v37 = vadd.f32 %v377_v36, %v335_v9  ;;  %v607_v38 = vpop.f32.mrf.mxu3 }
 0x132   : > { %v652_v39 = vpop.f32.mrf.mxu0 }
 0x133   : > { %v430_v41 = vadd.f32 %v424_v23, %v383_v37  ;;  %v893_v61 = vpop.f32.mrf.mxu1 }
 0x135   : > { %v477_v42 = vadd.f32 %v471_v32, %v430_v41 }
 0x137   : > { %v524_v43 = vadd.f32 %v518_v19, %v477_v42 }
 0x138   : > { %v558_v44 = vpop.f32.mrf.mxu2 }
 0x139   : > { %v610_v45 = vpop.f32.mrf.mxu3  ;;  %v568_v62 = vadd.f32 %v558_v44, %v521_v20 }
 0x13a   : > { %v654_v46 = vpop.f32.mrf.mxu0 }
 0x13b   : > { %v615_v1 = vadd.f32 %v605_v31, %v568_v62  ;;  %v896_v3 = vpop.f32.mrf.mxu1 }
 0x13d   : > { %v662_v4 = vadd.f32 %v652_v39, %v615_v1  ;;  %v1110_v1 = vpop.permute.xlu0 %1109 }
 0x13f   : > { %v713_v7 = vadd.f32 %v703_v29, %v662_v4 }
 0x140   : > { %v560_v48 = vpop.f32.mrf.mxu2 }
 0x141   : > { %v612_v50 = vpop.f32.mrf.mxu3  ;;  %v569_v5 = vadd.f32 %v560_v48, %v522_v27 }
 0x142   : > { %v657_v49 = vpop.f32.mrf.mxu0 }
 0x143   : > { %v616_v8 = vadd.f32 %v607_v38, %v569_v5  ;;  %v898_v14 = vpop.f32.mrf.mxu1  ;;  %v1100_v38 = vpop.permute.xlu1 %1099 }
 0x145   : > { %v663_v12 = vadd.f32 %v654_v46, %v616_v8 }
 0x147   : > { %v714_v17 = vadd.f32 %v705_v40, %v663_v12 }
 0x148   : > { %v563_v52 = vpop.f32.mrf.mxu2 }
 0x149   : > { %v797_v54 = vpop.f32.mrf.mxu3  ;;  %v570_v13 = vadd.f32 %v563_v52, %v523_v35 }
 0x14a   : > { %v659_v53 = vpop.f32.mrf.mxu0 }
 0x14b   : > { %v617_v18 = vadd.f32 %v610_v45, %v570_v13  ;;  %v1079_v28 = vpop.f32.mrf.mxu1  ;;  %v1115_v13 = vpop.permute.xlu1 %1114 }
 0x14d   : > { %v664_v22 = vadd.f32 %v657_v49, %v617_v18 }
 0x14f   : > { %v715_v29 = vadd.f32 %v708_v47, %v664_v22 }
 0x150   : > { %v565_v55 = vpop.f32.mrf.mxu2 }
 0x151   : > { %v799_v58 = vpop.f32.mrf.mxu3  ;;  %v571_v23 = vadd.f32 %v565_v55, %v524_v43 }
 0x152   : > { %v844_v57 = vpop.f32.mrf.mxu0 }
 0x153   : > { %v618_v30 = vadd.f32 %v612_v50, %v571_v23  ;;  %v1081_v47 = vpop.f32.mrf.mxu1 }
 0x155   : > { %v665_v35 = vadd.f32 %v659_v53, %v618_v30  ;;  %v1105_v53 = vpop.permute.xlu2 %1104 }
 0x157   : > { %v716_v44 = vadd.f32 %v710_v51, %v665_v35 }
 0x158   : > { %v750_v59 = vpop.f32.mrf.mxu2 }
 0x159   : > { %v802_v0 = vpop.f32.mrf.mxu3  ;;  %v760_v10 = vadd.f32 %v750_v59, %v713_v7 }
 0x15a   : > { %v846_v60 = vpop.f32.mrf.mxu0 }
 0x15b   : > { %v807_v15 = vadd.f32 %v797_v54, %v760_v10 }
 0x15d   : > { %v854_v19 = vadd.f32 %v844_v57, %v807_v15 }
 0x15f   : > { %v901_v25 = vadd.f32 %v891_v56, %v854_v19 }
 0x160   : > { %v752_v63 = vpop.f32.mrf.mxu2 }
 0x161   : > { %v804_v9 = vpop.f32.mrf.mxu3  ;;  %v761_v20 = vadd.f32 %v752_v63, %v714_v17  ;;  %v1084_v63 = vpop.f32.mrf.mxu1 }
 0x162   : > { %v849_v2 = vpop.f32.mrf.mxu0 }
 0x163   : > { %v808_v26 = vadd.f32 %v799_v58, %v761_v20 }
 0x165   : > { %v855_v32 = vadd.f32 %v846_v60, %v808_v26 }
 0x167   : > { %v902_v39 = vadd.f32 %v893_v61, %v855_v32 }
 0x168   : > { %v755_v6 = vpop.f32.mrf.mxu2 }
 0x169   : > { %v985_v21 = vpop.f32.mrf.mxu3  ;;  %v762_v33 = vadd.f32 %v755_v6, %v715_v29  ;;  %v1086_v12 = vpop.f32.mrf.mxu1 }
 0x16a   : > { %v851_v11 = vpop.f32.mrf.mxu0 }
 0x16b   : > { %v809_v40 = vadd.f32 %v802_v0, %v762_v33 }
 0x16d   : > { %v856_v48 = vadd.f32 %v849_v2, %v809_v40 }
 0x16f   : > { %v903_v54 = vadd.f32 %v896_v3, %v856_v48 }
 0x170   : > { %v757_v16 = vpop.f32.mrf.mxu2 }
 0x171   : > { %v987_v37 = vpop.f32.mrf.mxu3  ;;  %v763_v49 = vadd.f32 %v757_v16, %v716_v44 }
 0x172   : > { %v1032_v24 = vpop.f32.mrf.mxu0 }
 0x173   : > { %v810_v55 = vadd.f32 %v804_v9, %v763_v49 }
 0x175   : > { %v857_v61 = vadd.f32 %v851_v11, %v810_v55 }
 0x177   : > { %v904_v2 = vadd.f32 %v898_v14, %v857_v61 }
 0x178   : > { %v938_v27 = vpop.f32.mrf.mxu2 }
 0x179   : > { %v948_v31 = vadd.f32 %v938_v27, %v901_v25  ;;  %v990_v57 = vpop.f32.mrf.mxu3 }
 0x17a   : > { %v1034_v43 = vpop.f32.mrf.mxu0 }
 0x17b   : > { %v995_v34 = vadd.f32 %v985_v21, %v948_v31 }
 0x17d   : > { %v1042_v36 = vadd.f32 %v1032_v24, %v995_v34 }
 0x17f   : > { %v1089_v41 = vadd.f32 %v1079_v28, %v1042_v36 }
 0x180   : > { %v940_v42 = vpop.f32.mrf.mxu2 }
 0x181   : > { %v1117_v45 = vadd.f32 %v1100_v38, %v1089_v41  ;;  %v949_v46 = vadd.f32 %v940_v42, %v902_v39  ;;  %v992_v7 = vpop.f32.mrf.mxu3 }
 0x182   : > { %v1037_v51 = vpop.f32.mrf.mxu0 }
 0x183   : > { %1122 = vst.msk [vmem:[%s1745_s26] sm:$0xff] %vm1121_vm1, %v1117_v45  ;;  %v996_v50 = vadd.f32 %v987_v37, %v949_v46 }
 0x185   : > { %v1043_v52 = vadd.f32 %v1034_v43, %v996_v50 }
 0x187   : > { %v1090_v56 = vadd.f32 %v1081_v47, %v1043_v52 }
 0x188   : > { %v943_v58 = vpop.f32.mrf.mxu2 }
 0x189   : > { %v1118_v59 = vadd.f32 %v1105_v53, %v1090_v56  ;;  %v950_v60 = vadd.f32 %v943_v58, %v903_v54 }
 0x18a   : > { %v1039_v9 = vpop.f32.mrf.mxu0 }
 0x18b   : > { %1123 = vst.msk [vmem:[%s1745_s26 + $0x8] sm:$0xff] %vm1121_vm1, %v1118_v59  ;;  %v997_v62 = vadd.f32 %v990_v57, %v950_v60 }
 0x18d   : > { %v1044_v0 = vadd.f32 %v1037_v51, %v997_v62 }
 0x18f   : > { %v1091_v4 = vadd.f32 %v1084_v63, %v1044_v0 }
 0x190   : > { %v945_v5 = vpop.f32.mrf.mxu2 }
 0x191   : > { %v951_v3 = vadd.f32 %v945_v5, %v904_v2  ;;  %v1119_v6 = vadd.f32 %v1110_v1, %v1091_v4 }
 0x193   : > { %1124 = vst.msk [vmem:[%s1745_s26 + $0x10] sm:$0xff] %vm1121_vm1, %v1119_v6  ;;  %v998_v8 = vadd.f32 %v992_v7, %v951_v3 }
 0x195   : > { %v1045_v10 = vadd.f32 %v1039_v9, %v998_v8 }
 0x197   : > { %v1092_v11 = vadd.f32 %v1086_v12, %v1045_v10 }
 0x199   : > { %v1120_v15 = vadd.f32 %v1115_v13, %v1092_v11 }
 0x19b   : > { %1125 = vst.msk [vmem:[%s1745_s26 + $0x18] sm:$0xff] %vm1121_vm1, %v1120_v15 }
 0x19c PF: > { %s15_s18 = sadd.s32 1, %s1527_s18  }
 0x19d   : > { %p12_p4 = scmp.ge.s32.totalorder %s15_s18, 4  }
 0x19f   :  { %14 = sbr.rel (!%p12_p4) target bundleno = 1 (0x1), region = 89 }

// kernel: cond_model_forward.18
= control target key start
LH: loop header
LB: loop body
LE: loop exit
PB: predicated region body
PF: predicated region fallthrough
CT: control target
= control target key end

     0   :  { %s1662_s18 = smov 0   ;;  %s1990_s0 = inlined_call_operand.vmem [shape: bf16[2,1,16,30], index: 0, kind: input, shape index: {}]   ;;  %s1991_s1 = inlined_call_operand.vmem [shape: bf16[2,1,16,30], index: 1, kind: input, shape index: {}]   ;;  %s1992_s2 = inlined_call_operand.vmem [shape: bf16[9,32,16], index: 2, kind: input, shape index: {}]   ;;  %s1993_s3 = inlined_call_operand.vmem [shape: bf16[9,32,16], index: 3, kind: input, shape index: {}]   ;;  %s1994_s4 = inlined_call_operand.vmem [shape: f32[4,32,1], index: 4, kind: input, shape index: {}]   ;;  %s1995_s5 = inlined_call_operand.vmem [shape: bf16[2,4,32,20], index: 5, kind: output, shape index: {}]  }
   0x1 LB: > { %s1273_s19 = sadd.s32 4294967295, %s1626_s18   ;;  %p1277_p0 = scmp.ge.s32.totalorder %s1626_s18, 1  ;;  %s1626_s18 = sphi %s1662_s18, %s15_s18  }
   0x2   : > { %p197_p1 = scmp.lt.s32.totalorder %s1626_s18, 3 }
   0x4   : > { %p198_p2 = pnand %p1277_p0, %p197_p1 }
   0x5   : > { %p230_p3 = scmp.lt.s32.totalorder (!%p198_p2), %s1273_s19, 1  ;;  %s1628_s27 = smov (!%p198_p2), 127  }
   0x6   : > { %201 = sbr.rel (%p198_p2) target bundleno = 416 (0x1a0), region = 40  ;;  %s1629_s28 = smov (!%p198_p2), 122  }
   0x7   : > { %s1630_s29 = smov (!%p198_p2), 123  }
   0xb   : > { %s1997_s19 = smov (!%p230_p3, %s1273_s19), 1  ;;  %v1569_v2 = vld [vmem:[%s1992_s2 + $0x18] sm:$0xff]  ;;  %vm280_vm0 = vcmask 130048   ;;  %v1568_v3 = vld [vmem:[%s1992_s2 + $0x10] sm:$0xff]  ;;  %v1570_v8 = vld [vmem:[%s1992_s2 + $0x20] sm:$0xff]  ;;  %v1631_v25 = vmov 0  }
   0xc   : > { %s1562_s20 = sshll.u32 %s1997_s19, 3  ;;  %v1572_v4 = vld [vmem:[%s1992_s2 + $0x30] sm:$0xff]  ;;  %v1573_v6 = vld [vmem:[%s1992_s2 + $0x38] sm:$0xff]  ;;  %v1571_v9 = vld [vmem:[%s1992_s2 + $0x28] sm:$0xff]  ;;  %1618 = vset.pattern.permute.xlu1 %v1631_v25  ;;  %1617 = vset.pattern.permute.xlu0 %v1631_v25  ;;  %s1564_s17 = sshll.u32 %s1997_s19, 6  ;;  %vm1075_vm1 = vcmask 158720  }
   0xd   : > { %s234_s23 = scalar_lea.vmem %s1990_s0, %s1562_s20  ;;  %s239_s26 = scalar_lea.vmem %s1991_s1, %s1562_s20  ;;  %v1576_v5 = vld [vmem:[%s1992_s2 + $0x50] sm:$0xff]  ;;  %v1577_v11 = vld [vmem:[%s1992_s2 + $0x58] sm:$0xff]  ;;  %v1582_v13 = vld [vmem:[%s1992_s2 + $0x80] sm:$0xff]  ;;  %1619 = vset.pattern.permute.xlu2 %v1631_v25 }
   0xe   : > { %v1565_v0 = vld [vmem:[%s234_s23] sm:$0xff]  ;;  %v1583_v19 = vld [vmem:[%s1992_s2 + $0x88] sm:$0xff]  ;;  %v1580_v27 = vld [vmem:[%s1992_s2 + $0x70] sm:$0xff]  ;;  %s1920_s22 = scalar_lea.vmem %s1995_s5, %s1564_s17 }
   0xf   : > { %v1679_v1 = vld [vmem:[%s239_s26] sm:$0xff]  ;;  %277 = vrot.lane.b32.xlu0 %v1565_v0, %s1628_s27  ;;  %564 = vrot.lane.b32.xlu1 %v1565_v0, %s1629_s28  ;;  %v1575_v20 = vld [vmem:[%s1992_s2 + $0x48] sm:$0xff] }
  0x10   : > { %828 = vrot.lane.b32.xlu2 %v1679_v1, %s1630_s29  ;;  %1604 = vmatpush.bf16.msra.mxu3 %v1565_v0  ;;  %v1574_v14 = vld [vmem:[%s1992_s2 + $0x40] sm:$0xff]  ;;  %v1579_v21 = vld [vmem:[%s1992_s2 + $0x68] sm:$0xff]  ;;  %v1042_v30 = vld [vmem:[%s1994_s4 + $0x18] sm:$0xff] }
  0x11   : > { %330 = vmatpush.bf16.msra.mxu1 %v1565_v0  ;;  %v1578_v15 = vld [vmem:[%s1992_s2 + $0x60] sm:$0xff]  ;;  %v1567_v22 = vld [vmem:[%s1992_s2 + $0x8] sm:$0xff]  ;;  %v1538_v34 = vld [vmem:[%s1994_s4 + $0x30] sm:$0xff] }
  0x12   : > { %v1566_v16 = vld [vmem:[%s1992_s2] sm:$0xff]  ;;  %v1040_v23 = vld [vmem:[%s1994_s4 + $0x8] sm:$0xff]  ;;  %v1581_v36 = vld [vmem:[%s1992_s2 + $0x78] sm:$0xff] }
  0x13   : > { %1315 = vmatmul.msk.bf16.vlgmr.msra.gmra.mxu3 %vm280_vm0, %v1569_v2  ;;  %v1039_v24 = vld [vmem:[%s1994_s4] sm:$0xff]  ;;  %v1537_v31 = vld [vmem:[%s1994_s4 + $0x28] sm:$0xff]  ;;  %v1041_v40 = vld [vmem:[%s1994_s4 + $0x10] sm:$0xff] }
  0x14   : > { %413 = vmatpush.bf16.msrb.mxu3 %v1565_v0  ;;  %1314 = vmatmul.msk.bf16.vlgmr.msra.gmra.mxu1 %vm280_vm0, %v1568_v3  ;;  %v1589_v26 = vld [vmem:[%s1993_s3 + $0x20] sm:$0xff]  ;;  %v1590_v33 = vld [vmem:[%s1993_s3 + $0x28] sm:$0xff]  ;;  %v1587_v42 = vld [vmem:[%s1993_s3 + $0x10] sm:$0xff] }
  0x15   : > { %493 = vmatpush.bf16.msrb.mxu1 %v1565_v0  ;;  %v1585_v28 = vld [vmem:[%s1993_s3] sm:$0xff]  ;;  %v1586_v37 = vld [vmem:[%s1993_s3 + $0x8] sm:$0xff]  ;;  %v1591_v43 = vld [vmem:[%s1993_s3 + $0x30] sm:$0xff] }
  0x16   : > { %v1593_v29 = vld [vmem:[%s1993_s3 + $0x40] sm:$0xff]  ;;  %v1594_v38 = vld [vmem:[%s1993_s3 + $0x48] sm:$0xff]  ;;  %v1547_v46 = vld [vmem:[%s1994_s4 + $0x58] sm:$0xff] }
  0x17   : > { %362 = vrot.lane.b32.xlu0 %v1565_v0, %s1630_s29  ;;  %737 = vrot.lane.b32.xlu1 %v1679_v1, %s1628_s27  ;;  %v1544_v35 = vld [vmem:[%s1994_s4 + $0x40] sm:$0xff]  ;;  %v1545_v39 = vld [vmem:[%s1994_s4 + $0x48] sm:$0xff] }
  0x18   : > { %1007 = vrot.lane.b32.xlu2 %v1679_v1, %s1629_s28  ;;  %v1597_v41 = vld [vmem:[%s1993_s3 + $0x60] sm:$0xff]  ;;  %v1555_v48 = vld [vmem:[%s1994_s4 + $0x78] sm:$0xff]  ;;  %v1598_v49 = vld [vmem:[%s1993_s3 + $0x68] sm:$0xff] }
  0x19   : > { %666 = vmatpush.bf16.msra.mxu1 %v1565_v0  ;;  %v1552_v44 = vld [vmem:[%s1994_s4 + $0x60] sm:$0xff]  ;;  %v1588_v50 = vld [vmem:[%s1993_s3 + $0x18] sm:$0xff]  ;;  %v1554_v53 = vld [vmem:[%s1994_s4 + $0x70] sm:$0xff] }
  0x1a   : > { %v1536_v45 = vld [vmem:[%s1994_s4 + $0x20] sm:$0xff]  ;;  %v1592_v51 = vld [vmem:[%s1993_s3 + $0x38] sm:$0xff]  ;;  %v1602_v55 = vld [vmem:[%s1993_s3 + $0x88] sm:$0xff] }
  0x1b   : > { %v1601_v47 = vld [vmem:[%s1993_s3 + $0x80] sm:$0xff]  ;;  %v1539_v52 = vld [vmem:[%s1994_s4 + $0x38] sm:$0xff]  ;;  %v1546_v57 = vld [vmem:[%s1994_s4 + $0x50] sm:$0xff] }
  0x1c   : > { %v1595_v58 = vld [vmem:[%s1993_s3 + $0x50] sm:$0xff]  ;;  %v1553_v0 = vld [vmem:[%s1994_s4 + $0x68] sm:$0xff]  ;;  %v1600_v2 = vld [vmem:[%s1993_s3 + $0x78] sm:$0xff] }
  0x1d   : > { %v1599_v59 = vld [vmem:[%s1993_s3 + $0x70] sm:$0xff] }
  0x1f   : > { %1050 = vperm.xlu1 %1618, %v1040_v23   ;;  %1045 = vperm.xlu0 %1617, %v1039_v24  }
  0x20   : > { %1055 = vperm.xlu2 %1619, %v1041_v40  }
  0x23   : > { %1342 = vmatmul.msk.bf16.vlgmr.msrb.gmra.mxu3 %vm280_vm0, %v1572_v4 }
  0x24   : > { %1370 = vmatmul.msk.bf16.vlgmr.msrb.gmra.mxu1 %vm280_vm0, %v1576_v5 }
  0x27   : > { %1060 = vperm.xlu1 %1618, %v1042_v30   ;;  %1092 = vperm.xlu0 %1617, %v1537_v31  }
  0x28   : > { %1087 = vperm.xlu2 %1619, %v1536_v45  }
  0x2f   : > { %1097 = vperm.xlu1 %1618, %v1538_v34   ;;  %1129 = vperm.xlu0 %1617, %v1544_v35  }
  0x30   : > { %1102 = vperm.xlu2 %1619, %v1539_v52  }
  0x33   : > { %1343 = vmatmul.msk.bf16.gmra.mxu3 %vm280_vm0, %v1573_v6 }
  0x34   : > { %1371 = vmatmul.msk.bf16.gmra.mxu1 %vm280_vm0, %v1577_v11 }
  0x37   : > { %1134 = vperm.xlu1 %1618, %v1545_v39   ;;  %1144 = vperm.xlu0 %1617, %v1547_v46  }
  0x38   : > { %1139 = vperm.xlu2 %1619, %v1546_v57  }
  0x3f   : > { %1171 = vperm.xlu1 %1618, %v1552_v44   ;;  %1181 = vperm.xlu0 %1617, %v1554_v53  }
  0x40   : > { %1176 = vperm.xlu2 %1619, %v1553_v0  }
  0x44   : > { %1422 = vmatmul.msk.bf16.vlgmr.msra.gmra.mxu1 %vm280_vm0, %v1566_v16 }
  0x47   : > { %1186 = vperm.xlu1 %1618, %v1555_v48  }
  0x54   : > { %1423 = vmatmul.msk.bf16.gmra.mxu1 %vm280_vm0, %v1567_v22 }
  0x6a   : > { %v829_v18 = vpop.permute.xlu2 %828 }
  0x6b   : > { %844 = vmatpush.bf16.msrb.mxu1 %v829_v18 }
  0x6e   : > { %1478 = vmatmul.msk.bf16.vlgmr.msrb.gmra.mxu1 %vm280_vm0, %v1593_v29 }
  0x72   : > { %v1008_v32 = vpop.permute.xlu2 %1007 }
  0x73   : > { %1023 = vmatpush.bf16.msra.mxu1 %v1008_v32 }
  0x7e   : > { %1479 = vmatmul.msk.bf16.gmra.mxu1 %vm280_vm0, %v1594_v38 }
  0x81   : > { %v278_v7 = vpop.permute.xlu0 %277  ;;  %v565_v10 = vpop.permute.xlu1 %564 }
  0x82   : > { %294 = vmatpush.bf16.msra.mxu0 %v278_v7  ;;  %1603 = vmatpush.bf16.msra.mxu2 %v278_v7 }
  0x83   : > { %580 = vmatpush.bf16.msra.mxu3 %v565_v10 }
  0x85   : > { %1304 = vmatmul.msk.bf16.vlgmr.msra.gmra.mxu0 %vm280_vm0, %v1570_v8  ;;  %1305 = vmatmul.msk.bf16.vlgmr.msra.gmra.mxu2 %vm280_vm0, %v1571_v9 }
  0x86   : > { %458 = vmatpush.bf16.msrb.mxu0 %v278_v7  ;;  %1398 = vmatmul.msk.bf16.vlgmr.msra.gmra.mxu3 %vm280_vm0, %v1582_v13 }
  0x89   : > { %v363_v12 = vpop.permute.xlu0 %362  ;;  %v738_v17 = vpop.permute.xlu1 %737 }
  0x8a   : > { %631 = vmatpush.bf16.msra.mxu0 %v1679_v1  ;;  %378 = vmatpush.bf16.msrb.mxu2 %v363_v12 }
  0x8b   : > { %753 = vmatpush.bf16.msrb.mxu3 %v738_v17 }
  0x8e   : > { %533 = vmatpush.bf16.msra.mxu2 %v363_v12  ;;  %1534 = vmatmul.msk.bf16.vlgmr.msra.gmra.mxu1 %vm280_vm0, %v1601_v47 }
  0x8f   : > { %932 = vmatpush.bf16.msra.mxu3 %v738_v17 }
  0x91   : > { %v332_v56 = vpop.f32.mrf.mxu1  ;;  %v1046_v34 = vpop.permute.xlu0 %1045 }
  0x95   : > { %1332 = vmatmul.msk.bf16.vlgmr.msrb.gmra.mxu2 %vm280_vm0, %v1574_v14  ;;  %1360 = vmatmul.msk.bf16.vlgmr.msrb.gmra.mxu0 %vm280_vm0, %v1578_v15 }
  0x96   : > { %706 = vmatpush.bf16.msrb.mxu2 %v1679_v1  ;;  %797 = vmatpush.bf16.msrb.mxu0 %v1679_v1  ;;  %v337_v54 = vpop.f32.mrf.mxu3 }
  0x97   : > { %1399 = vmatmul.msk.bf16.gmra.mxu3 %vm280_vm0, %v1583_v19 }
  0x99   : > { %v334_v61 = vpop.f32.mrf.mxu1 }
  0x9e   : > { %1535 = vmatmul.msk.bf16.gmra.mxu1 %vm280_vm0, %v1602_v55  ;;  %v339_v60 = vpop.f32.mrf.mxu3 }
  0xa1   : > { %v495_v63 = vpop.f32.mrf.mxu1 }
  0xa5   : > { %1333 = vmatmul.msk.bf16.gmra.mxu2 %vm280_vm0, %v1575_v20  ;;  %1361 = vmatmul.msk.bf16.gmra.mxu0 %vm280_vm0, %v1579_v21 }
  0xa6   : > { %v1869_v62 = vpop.f32.mrf.mxu3 }
  0xa7   : > { %1450 = vmatmul.msk.bf16.vlgmr.msrb.gmra.mxu3 %vm280_vm0, %v1589_v26 }
  0xa9   : > { %v497_v6 = vpop.f32.mrf.mxu1 }
  0xae   : > { %v1884_v5 = vpop.f32.mrf.mxu3 }
  0xb1   : > { %v500_v13 = vpop.f32.mrf.mxu1 }
  0xb5   : > { %1384 = vmatmul.msk.bf16.vlgmr.msra.gmra.mxu2 %vm280_vm0, %v1580_v27  ;;  %1412 = vmatmul.msk.bf16.vlgmr.msra.gmra.mxu0 %vm280_vm0, %v1585_v28 }
  0xb6   : > { %976 = vmatpush.bf16.msra.mxu0 %v829_v18  ;;  %888 = vmatpush.bf16.msra.mxu2 %v1679_v1  ;;  %v1596_v1 = vld [vmem:[%s1993_s3 + $0x58] sm:$0xff]  ;;  %v1890_v11 = vpop.f32.mrf.mxu3 }
  0xb7   : > { %1451 = vmatmul.msk.bf16.gmra.mxu3 %vm280_vm0, %v1590_v33 }
  0xb9   : > { %v502_v20 = vpop.f32.mrf.mxu1 }
  0xbe   : > { %v1896_v18 = vpop.f32.mrf.mxu3 }
  0xc1   : > { %v668_v26 = vpop.f32.mrf.mxu1 }
  0xc5   : > { %1385 = vmatmul.msk.bf16.gmra.mxu2 %vm280_vm0, %v1581_v36  ;;  %1413 = vmatmul.msk.bf16.gmra.mxu0 %vm280_vm0, %v1586_v37 }
  0xc7   : > { %1506 = vmatmul.msk.bf16.vlgmr.msra.gmra.mxu3 %vm280_vm0, %v1597_v41 }
  0xc9   : > { %v670_v31 = vpop.f32.mrf.mxu1 }
  0xd1   : > { %v673_v40 = vpop.f32.mrf.mxu1 }
  0xd5   : > { %1436 = vmatmul.msk.bf16.vlgmr.msrb.gmra.mxu2 %vm280_vm0, %v1587_v42  ;;  %1464 = vmatmul.msk.bf16.vlgmr.msrb.gmra.mxu0 %vm280_vm0, %v1591_v43  ;;  %v1051_v43 = vpop.permute.xlu1 %1050 }
  0xd7   : > { %1507 = vmatmul.msk.bf16.gmra.mxu3 %vm280_vm0, %v1598_v49  ;;  %v1056_v49 = vpop.permute.xlu2 %1055 }
  0xd9   : > { %v675_v52 = vpop.f32.mrf.mxu1 }
  0xdd   : > { %v1061_v57 = vpop.permute.xlu1 %1060 }
  0xe5   : > { %1437 = vmatmul.msk.bf16.gmra.mxu2 %vm280_vm0, %v1588_v50  ;;  %1465 = vmatmul.msk.bf16.gmra.mxu0 %vm280_vm0, %v1592_v51 }
  0xeb   : > { %v846_v0 = vpop.f32.mrf.mxu1 }
  0xf5   : > { %1492 = vmatmul.msk.bf16.vlgmr.msra.gmra.mxu2 %vm280_vm0, %v1595_v58  ;;  %1520 = vmatmul.msk.bf16.vlgmr.msra.gmra.mxu0 %vm280_vm0, %v1599_v59 }
 0x102   : > { %v296_v3 = vpop.f32.mrf.mxu0 }
 0x103   : > { %v1880_v4 = vadd.f32 %v332_v56, %v296_v3 }
 0x105   : > { %1493 = vmatmul.msk.bf16.gmra.mxu2 %vm280_vm0, %v1596_v1  ;;  %1521 = vmatmul.msk.bf16.gmra.mxu0 %vm280_vm0, %v1600_v2 }
 0x108   : > { %v301_v7 = vpop.f32.mrf.mxu2 }
 0x109   : > { %v1886_v8 = vadd.f32 %v337_v54, %v301_v7  ;;  %v1904_v25 = vpop.f32.mrf.mxu3 }
 0x10a   : > { %v298_v9 = vpop.f32.mrf.mxu0 }
 0x10b   : > { %v1888_v10 = vadd.f32 %v334_v61, %v298_v9 }
 0x110   : > { %v303_v12 = vpop.f32.mrf.mxu2 }
 0x111   : > { %v1892_v14 = vadd.f32 %v339_v60, %v303_v12  ;;  %v1910_v30 = vpop.f32.mrf.mxu3  ;;  %v1093_v60 = vpop.permute.xlu0 %1092 }
 0x112   : > { %v460_v15 = vpop.f32.mrf.mxu0 }
 0x113   : > { %v1894_v16 = vadd.f32 %v495_v63, %v460_v15 }
 0x118   : > { %v380_v17 = vpop.f32.mrf.mxu2 }
 0x119   : > { %v416_v7 = vadd.f32 %v1869_v62, %v380_v17 }
 0x11a   : > { %v462_v19 = vpop.f32.mrf.mxu0  ;;  %v1915_v38 = vpop.f32.mrf.mxu3 }
 0x11b   : > { %v1898_v21 = vadd.f32 %v497_v6, %v462_v19  ;;  %v1088_v6 = vpop.permute.xlu2 %1087  ;;  %v1130_v19 = vpop.permute.xlu0 %1129 }
 0x120   : > { %v1900_v22 = vpop.f32.mrf.mxu2 }
 0x122   : > { %v465_v23 = vpop.f32.mrf.mxu0  ;;  %v1928_v50 = vpop.f32.mrf.mxu3 }
 0x123   : > { %v1902_v24 = vadd.f32 %v500_v13, %v465_v23  ;;  %v1098_v13 = vpop.permute.xlu1 %1097  ;;  %v1103_v17 = vpop.permute.xlu2 %1102 }
 0x128   : > { %v1906_v27 = vpop.f32.mrf.mxu2 }
 0x12a   : > { %v467_v28 = vpop.f32.mrf.mxu0  ;;  %v755_v63 = vpop.f32.mrf.mxu3 }
 0x12b   : > { %v1908_v29 = vadd.f32 %v502_v20, %v467_v28 }
 0x130   : > { %v1912_v32 = vpop.f32.mrf.mxu2 }
 0x132   : > { %v633_v33 = vpop.f32.mrf.mxu0  ;;  %v757_v23 = vpop.f32.mrf.mxu3 }
 0x133   : > { %v669_v35 = vadd.f32 %v668_v26, %v633_v33  ;;  %v848_v26 = vpop.f32.mrf.mxu1  ;;  %v418_v33 = vadd.f32 %v1884_v5, %v1900_v22 }
 0x135   : > { %v1063_v36 = vadd.f32 %v1046_v34, %v669_v35 }
 0x137   : > { %v1067_v37 = vmax.f32 %v1063_v36, 0.0 }
 0x138   : > { %v1922_v39 = vpop.f32.mrf.mxu2 }
 0x139   : > { %v1071_v41 = vpack.c.bf16 %v1067_v37, %v1067_v37 }
 0x13a   : > { %v635_v42 = vpop.f32.mrf.mxu0 }
 0x13b   : > { %v671_v44 = vadd.f32 %v670_v31, %v635_v42  ;;  %1076 = vst.msk [vmem:[%s1920_s22] sm:$0xf] %vm1075_vm1, %v1071_v41  ;;  %v1135_v41 = vpop.permute.xlu1 %1134  ;;  %v851_v5 = vpop.f32.mrf.mxu1 }
 0x13d   : > { %v1064_v45 = vadd.f32 %v1051_v43, %v671_v44 }
 0x13f   : > { %v1068_v46 = vmax.f32 %v1064_v45, 0.0 }
 0x140   : > { %v1926_v47 = vpop.f32.mrf.mxu2 }
 0x141   : > { %v1072_v48 = vpack.c.bf16 %v1068_v46, %v1068_v46  ;;  %v760_v46 = vpop.f32.mrf.mxu3 }
 0x142   : > { %v638_v51 = vpop.f32.mrf.mxu0 }
 0x143   : > { %1077 = vst.msk [vmem:[%s1920_s22 + $0x4] sm:$0xf] %vm1075_vm1, %v1072_v48  ;;  %v674_v53 = vadd.f32 %v673_v40, %v638_v51 }
 0x145   : > { %v1065_v54 = vadd.f32 %v1056_v49, %v674_v53 }
 0x147   : > { %v1069_v55 = vmax.f32 %v1065_v54, 0.0 }
 0x148   : > { %v1932_v56 = vpop.f32.mrf.mxu2 }
 0x149   : > { %v1073_v58 = vpack.c.bf16 %v1069_v55, %v1069_v55 }
 0x14a   : > { %v640_v59 = vpop.f32.mrf.mxu0 }
 0x14b   : > { %v676_v61 = vadd.f32 %v675_v52, %v640_v59  ;;  %1078 = vst.msk [vmem:[%s1920_s22 + $0x8] sm:$0xf] %vm1075_vm1, %v1073_v58 }
 0x14d   : > { %v1066_v1 = vadd.f32 %v1061_v57, %v676_v61  ;;  %v1140_v57 = vpop.permute.xlu2 %1139 }
 0x14f   : > { %v1070_v2 = vmax.f32 %v1066_v1, 0.0 }
 0x150   : > { %v1936_v3 = vpop.f32.mrf.mxu2 }
 0x151   : > { %v1074_v9 = vpack.c.bf16 %v1070_v2, %v1070_v2  ;;  %v762_v2 = vpop.f32.mrf.mxu3 }
 0x152   : > { %v799_v12 = vpop.f32.mrf.mxu0 }
 0x153   : > { %1079 = vst.msk [vmem:[%s1920_s22 + $0xc] sm:$0xf] %vm1075_vm1, %v1074_v9  ;;  %v809_v15 = vadd.f32 %v799_v12, %v416_v7  ;;  %v853_v7 = vpop.f32.mrf.mxu1 }
 0x155   : > { %v856_v20 = vadd.f32 %v846_v0, %v809_v15  ;;  %v1145_v15 = vpop.permute.xlu0 %1144 }
 0x157   : > { %v1147_v28 = vadd.f32 %v1130_v19, %v856_v20 }
 0x158   : > { %v708_v31 = vpop.f32.mrf.mxu2 }
 0x159   : > { %v1151_v34 = vmax.f32 %v1147_v28, 0.0  ;;  %v718_v35 = vadd.f32 %v708_v31, %v1880_v4  ;;  %v421_v4 = vadd.f32 %v1890_v11, %v1906_v27  ;;  %v423_v27 = vadd.f32 %v1896_v18, %v1912_v32 }
 0x15a   : > { %v801_v62 = vpop.f32.mrf.mxu0  ;;  %v545_v31 = vadd.f32 %v1922_v39, %v1894_v16 }
 0x15b   : > { %v1155_v36 = vpack.c.bf16 %v1151_v34, %v1151_v34  ;;  %v765_v37 = vadd.f32 %v755_v63, %v718_v35  ;;  %v810_v40 = vadd.f32 %v801_v62, %v418_v33  ;;  %v934_v35 = vpop.f32.mrf.mxu3 }
 0x15d   : > { %1548 = vst.msk [vmem:[%s1920_s22 + $0x20] sm:$0xf] %vm1075_vm1, %v1155_v36  ;;  %v1105_v42 = vadd.f32 %v1088_v6, %v765_v37  ;;  %v857_v43 = vadd.f32 %v848_v26, %v810_v40  ;;  %v592_v37 = vadd.f32 %v1904_v25, %v545_v31 }
 0x15f   : > { %v1109_v44 = vmax.f32 %v1105_v42, 0.0  ;;  %v1148_v45 = vadd.f32 %v1135_v41, %v857_v43  ;;  %v1025_v41 = vpop.f32.mrf.mxu1  ;;  %v546_v43 = vadd.f32 %v1926_v47, %v1898_v21 }
 0x160   : > { %v710_v48 = vpop.f32.mrf.mxu2 }
 0x161   : > { %v1113_v22 = vpack.c.bf16 %v1109_v44, %v1109_v44  ;;  %v1152_v49 = vmax.f32 %v1148_v45, 0.0  ;;  %v719_v51 = vadd.f32 %v710_v48, %v1888_v10  ;;  %v1172_v45 = vpop.permute.xlu1 %1171 }
 0x162   : > { %v804_v52 = vpop.f32.mrf.mxu0 }
 0x163   : > { %1540 = vst.msk [vmem:[%s1920_s22 + $0x10] sm:$0xf] %vm1075_vm1, %v1113_v22  ;;  %v1156_v53 = vpack.c.bf16 %v1152_v49, %v1152_v49  ;;  %v766_v54 = vadd.f32 %v757_v23, %v719_v51  ;;  %v811_v55 = vadd.f32 %v804_v52, %v421_v4  ;;  %v936_v44 = vpop.f32.mrf.mxu3  ;;  %v547_v49 = vadd.f32 %v1932_v56, %v1902_v24 }
 0x165   : > { %1549 = vst.msk [vmem:[%s1920_s22 + $0x24] sm:$0xf] %vm1075_vm1, %v1156_v53  ;;  %v1106_v58 = vadd.f32 %v1093_v60, %v766_v54  ;;  %v858_v59 = vadd.f32 %v851_v5, %v811_v55  ;;  %v1177_v53 = vpop.permute.xlu2 %1176  ;;  %v594_v55 = vadd.f32 %v1915_v38, %v547_v49  ;;  %v1182_v38 = vpop.permute.xlu0 %1181 }
 0x167   : > { %v1110_v61 = vmax.f32 %v1106_v58, 0.0  ;;  %v1149_v63 = vadd.f32 %v1140_v57, %v858_v59  ;;  %v1027_v22 = vpop.f32.mrf.mxu1 }
 0x168   : > { %v713_v11 = vpop.f32.mrf.mxu2 }
 0x169   : > { %v1114_v10 = vpack.c.bf16 %v1110_v61, %v1110_v61  ;;  %v1153_v0 = vmax.f32 %v1149_v63, 0.0  ;;  %v720_v1 = vadd.f32 %v713_v11, %v1886_v8  ;;  %v548_v63 = vadd.f32 %v1936_v3, %v1908_v29 }
 0x16a   : > { %v806_v6 = vpop.f32.mrf.mxu0 }
 0x16b   : > { %1541 = vst.msk [vmem:[%s1920_s22 + $0x14] sm:$0xf] %vm1075_vm1, %v1114_v10  ;;  %v1157_v9 = vpack.c.bf16 %v1153_v0, %v1153_v0  ;;  %v767_v60 = vadd.f32 %v760_v46, %v720_v1  ;;  %v812_v12 = vadd.f32 %v806_v6, %v423_v27  ;;  %v595_v1 = vadd.f32 %v1928_v50, %v548_v63 }
 0x16d   : > { %1550 = vst.msk [vmem:[%s1920_s22 + $0x28] sm:$0xf] %vm1075_vm1, %v1157_v9  ;;  %v1107_v19 = vadd.f32 %v1098_v13, %v767_v60  ;;  %v859_v20 = vadd.f32 %v853_v7, %v812_v12 }
 0x16f   : > { %v1111_v18 = vmax.f32 %v1107_v19, 0.0  ;;  %v1150_v32 = vadd.f32 %v1145_v15, %v859_v20  ;;  %v1030_v11 = vpop.f32.mrf.mxu1 }
 0x170   : > { %v715_v23 = vpop.f32.mrf.mxu2 }
 0x171   : > { %v1115_v26 = vpack.c.bf16 %v1111_v18, %v1111_v18  ;;  %v1154_v8 = vmax.f32 %v1150_v32, 0.0  ;;  %v721_v28 = vadd.f32 %v715_v23, %v1892_v14  ;;  %v1187_v18 = vpop.permute.xlu1 %1186 }
 0x172   : > { %v978_v62 = vpop.f32.mrf.mxu0 }
 0x173   : > { %1542 = vst.msk [vmem:[%s1920_s22 + $0x18] sm:$0xf] %vm1075_vm1, %v1115_v26  ;;  %v1158_v33 = vpack.c.bf16 %v1154_v8, %v1154_v8  ;;  %v768_v34 = vadd.f32 %v762_v2, %v721_v28 }
 0x175   : > { %1551 = vst.msk [vmem:[%s1920_s22 + $0x2c] sm:$0xf] %vm1075_vm1, %v1158_v33  ;;  %v1108_v13 = vadd.f32 %v1103_v17, %v768_v34  ;;  %v593_v17 = vadd.f32 %v1910_v30, %v546_v43  ;;  %v939_v30 = vpop.f32.mrf.mxu3 }
 0x177   : > { %v1112_v36 = vmax.f32 %v1108_v13, 0.0  ;;  %v1032_v19 = vpop.f32.mrf.mxu1 }
 0x178   : > { %v890_v40 = vpop.f32.mrf.mxu2 }
 0x179   : > { %v1116_v42 = vpack.c.bf16 %v1112_v36, %v1112_v36  ;;  %v900_v14 = vadd.f32 %v890_v40, %v592_v37 }
 0x17a   : > { %v980_v5 = vpop.f32.mrf.mxu0 }
 0x17b   : > { %1543 = vst.msk [vmem:[%s1920_s22 + $0x1c] sm:$0xf] %vm1075_vm1, %v1116_v42  ;;  %v944_v16 = vadd.f32 %v934_v35, %v900_v14 }
 0x17d   : > { %v988_v39 = vadd.f32 %v978_v62, %v944_v16  ;;  %v941_v9 = vpop.f32.mrf.mxu3 }
 0x17f   : > { %v1035_v46 = vadd.f32 %v1025_v41, %v988_v39 }
 0x180   : > { %v892_v48 = vpop.f32.mrf.mxu2 }
 0x181   : > { %v1189_v25 = vadd.f32 %v1172_v45, %v1035_v46  ;;  %v901_v4 = vadd.f32 %v892_v48, %v593_v17 }
 0x182   : > { %v983_v61 = vpop.f32.mrf.mxu0 }
 0x183   : > { %v1193_v51 = vmax.f32 %v1189_v25, 0.0  ;;  %v945_v21 = vadd.f32 %v936_v44, %v901_v4 }
 0x185   : > { %v1197_v47 = vpack.c.bf16 %v1193_v51, %v1193_v51  ;;  %v989_v52 = vadd.f32 %v980_v5, %v945_v21 }
 0x187   : > { %1556 = vst.msk [vmem:[%s1920_s22 + $0x30] sm:$0xf] %vm1075_vm1, %v1197_v47  ;;  %v1036_v54 = vadd.f32 %v1027_v22, %v989_v52 }
 0x188   : > { %v895_v57 = vpop.f32.mrf.mxu2 }
 0x189   : > { %v1190_v58 = vadd.f32 %v1177_v53, %v1036_v54  ;;  %v902_v59 = vadd.f32 %v895_v57, %v594_v55 }
 0x18a   : > { %v985_v29 = vpop.f32.mrf.mxu0 }
 0x18b   : > { %v1194_v24 = vmax.f32 %v1190_v58, 0.0  ;;  %v946_v56 = vadd.f32 %v939_v30, %v902_v59 }
 0x18d   : > { %v1198_v27 = vpack.c.bf16 %v1194_v24, %v1194_v24  ;;  %v990_v10 = vadd.f32 %v983_v61, %v946_v56 }
 0x18f   : > { %1557 = vst.msk [vmem:[%s1920_s22 + $0x34] sm:$0xf] %vm1075_vm1, %v1198_v27  ;;  %v1037_v0 = vadd.f32 %v1030_v11, %v990_v10 }
 0x190   : > { %v897_v2 = vpop.f32.mrf.mxu2 }
 0x191   : > { %v1191_v6 = vadd.f32 %v1182_v38, %v1037_v0  ;;  %v903_v7 = vadd.f32 %v897_v2, %v595_v1 }
 0x193   : > { %v1195_v60 = vmax.f32 %v1191_v6, 0.0  ;;  %v947_v12 = vadd.f32 %v941_v9, %v903_v7 }
 0x195   : > { %v1199_v3 = vpack.c.bf16 %v1195_v60, %v1195_v60  ;;  %v991_v15 = vadd.f32 %v985_v29, %v947_v12 }
 0x197   : > { %1558 = vst.msk [vmem:[%s1920_s22 + $0x38] sm:$0xf] %vm1075_vm1, %v1199_v3  ;;  %v1038_v20 = vadd.f32 %v1032_v19, %v991_v15 }
 0x199   : > { %v1192_v32 = vadd.f32 %v1187_v18, %v1038_v20 }
 0x19b   : > { %v1196_v23 = vmax.f32 %v1192_v32, 0.0 }
 0x19d   : > { %v1200_v26 = vpack.c.bf16 %v1196_v23, %v1196_v23 }
 0x19f   : > { %1559 = vst.msk [vmem:[%s1920_s22 + $0x3c] sm:$0xf] %vm1075_vm1, %v1200_v26 }
 0x1a0 PF: > { %s15_s18 = sadd.s32 1, %s1626_s18  }
 0x1a1   : > { %p12_p4 = scmp.ge.s32.totalorder %s15_s18, 4  }
 0x1a3   :  { %14 = sbr.rel (!%p12_p4) target bundleno = 1 (0x1), region = 95 }

// kernel: cond_model_forward.19
= control target key start
LH: loop header
LB: loop body
LE: loop exit
PB: predicated region body
PF: predicated region fallthrough
CT: control target
= control target key end

     0   :  { %s556_s12 = smov 0   ;;  %s632_s0 = inlined_call_operand.vmem [shape: bf16[2,1,32,90], index: 0, kind: input, shape index: {}]   ;;  %s633_s1 = inlined_call_operand.vmem [shape: bf16[9,3,32], index: 1, kind: input, shape index: {}]   ;;  %s634_s2 = inlined_call_operand.vmem [shape: f32[4,3,1], index: 2, kind: input, shape index: {}]   ;;  %s635_s3 = inlined_call_operand.vmem [shape: f32[2,4,3,72], index: 3, kind: output, shape index: {}]  }
   0x1 LB: > { %s463_s13 = sadd.s32 4294967295, %s530_s12   ;;  %p467_p0 = scmp.ge.s32.totalorder %s530_s12, 1  ;;  %s530_s12 = sphi %s556_s12, %s13_s12  }
   0x2   : > { %p137_p1 = scmp.lt.s32.totalorder %s530_s12, 3 }
   0x4   : > { %p138_p2 = pnand %p467_p0, %p137_p1 }
   0x5   : > { %p161_p3 = scmp.lt.s32.totalorder (!%p138_p2), %s463_s13, 1  ;;  %s532_s18 = smov (!%p138_p2), 119  }
   0x6   : > { %141 = sbr.rel (%p138_p2) target bundleno = 307 (0x133), region = 32  ;;  %s533_s19 = smov (!%p138_p2), 127  }
   0x7   : > { %s534_s20 = smov (!%p138_p2), 118  }
   0xb   : > { %s637_s13 = smov (!%p161_p3, %s463_s13), 1  ;;  %vm197_vm0 = vcmask 261120   ;;  %v472_v2 = vld [vmem:[%s633_s1 + $0x2] sm:$0x3]  ;;  %v484_v3 = vld [vmem:[%s633_s1 + $0x6] sm:$0x3] }
   0xc   : > { %s505_s14 = sshll.u32 %s637_s13, 4  ;;  %v497_v5 = vld [vmem:[%s634_s2 + $0x4] sm:$0x7]  ;;  %v535_v6 = vmov 0   ;;  %v488_v8 = vld [vmem:[%s633_s1 + $0xa] sm:$0x3] }
   0xd   : > { %s165_s17 = scalar_lea.vmem %s632_s0, %s505_s14  ;;  %522 = vset.pattern.permute.xlu1 %v535_v6  ;;  %521 = vset.pattern.permute.xlu0 %v535_v6  ;;  %v494_v9 = vld [vmem:[%s633_s1 + $0x10] sm:$0x3]  ;;  %v473_v14 = vld [vmem:[%s633_s1 + $0x4] sm:$0x3]  ;;  %v485_v15 = vld [vmem:[%s633_s1 + $0x8] sm:$0x3]  ;;  %s170_s25 = scalar_lea.vmem %s635_s3, %s505_s14 }
   0xe   : > { %v508_v0 = vld [vmem:[%s165_s17 + $0x8] sm:$0xff]  ;;  %v507_v1 = vld [vmem:[%s165_s17] sm:$0xff]  ;;  %523 = vset.pattern.permute.xlu2 %v535_v6  ;;  %vm376_vm1 = vcmask 583680  }
   0xf   : > { %238 = vrot.lane.b32.xlu1 %v508_v0, %s532_s18  ;;  %193 = vrot.lane.b32.xlu0 %v508_v0, %s533_s19  ;;  %v501_v16 = vld [vmem:[%s634_s2 + $0xc] sm:$0x7]  ;;  %v354_v17 = vld [vmem:[%s634_s2] sm:$0x7] }
  0x10   : > { %333 = vrot.lane.b32.xlu2 %v508_v0, %s534_s20  ;;  %225 = vmatpush.bf16.msra.mxu1 %v508_v0  ;;  %v499_v18 = vld [vmem:[%s634_s2 + $0x8] sm:$0x7]  ;;  %v489_v19 = vld [vmem:[%s633_s1 + $0xc] sm:$0x3]  ;;  %v492_v20 = vld [vmem:[%s633_s1 + $0xe] sm:$0x3] }
  0x11   : > { %267 = vmatpush.bf16.msra.mxu3 %v508_v0  ;;  %v176_v21 = vld [vmem:[%s633_s1] sm:$0x3] }
  0x14   : > { %226 = vmatpush.bf16.msra.mxu1 %v507_v1 }
  0x15   : > { %268 = vmatpush.bf16.msra.mxu3 %v507_v1 }
  0x17   : > { %236 = vrot.lane.b32.xlu1 %v507_v1, %s532_s18  ;;  %191 = vrot.lane.b32.xlu0 %v507_v1, %s533_s19 }
  0x18   : > { %303 = vmatpush.bf16.msrb.mxu1 %v508_v0  ;;  %331 = vrot.lane.b32.xlu2 %v507_v1, %s534_s20 }
  0x19   : > { %483 = vmatmul.msk.bf16.vlgmr.msra.gmra.mxu1 %vm197_vm0, %v472_v2  ;;  %487 = vmatmul.msk.bf16.vlgmr.msra.gmra.mxu3 %vm197_vm0, %v484_v3 }
  0x1c   : > { %304 = vmatpush.bf16.msrb.mxu1 %v507_v1 }
  0x1f   : > { %382 = vperm.xlu1 %522, %v497_v5   ;;  %357 = vperm.xlu0 %521, %v354_v17  }
  0x20   : > { %392 = vperm.xlu2 %523, %v499_v18  }
  0x27   : > { %402 = vperm.xlu1 %522, %v501_v16  }
  0x29   : > { %491 = vmatmul.msk.bf16.vlgmr.msrb.gmra.mxu1 %vm197_vm0, %v488_v8 }
  0x6a   : > { %v334_v4 = vpop.permute.xlu2 %333 }
  0x6b   : > { %346 = vmatpush.bf16.msrb.mxu3 %v334_v4 }
  0x72   : > { %v332_v7 = vpop.permute.xlu2 %331 }
  0x73   : > { %347 = vmatpush.bf16.msrb.mxu3 %v332_v7 }
  0x76   : > { %495 = vmatmul.msk.bf16.vlgmr.msrb.gmra.mxu3 %vm197_vm0, %v494_v9 }
  0x7a   : > { %v393_v35 = vpop.permute.xlu2 %392 }
  0x81   : > { %v239_v10 = vpop.permute.xlu1 %238  ;;  %v194_v11 = vpop.permute.xlu0 %193 }
  0x82   : > { %207 = vmatpush.bf16.msra.mxu0 %v194_v11  ;;  %251 = vmatpush.bf16.msra.mxu2 %v239_v10 }
  0x89   : > { %v237_v12 = vpop.permute.xlu1 %236  ;;  %v192_v13 = vpop.permute.xlu0 %191 }
  0x8a   : > { %208 = vmatpush.bf16.msra.mxu0 %v192_v13  ;;  %252 = vmatpush.bf16.msra.mxu2 %v237_v12 }
  0x8d   : > { %482 = vmatmul.msk.bf16.vlgmr.msra.gmra.mxu0 %vm197_vm0, %v473_v14  ;;  %486 = vmatmul.msk.bf16.vlgmr.msra.gmra.mxu2 %vm197_vm0, %v485_v15 }
  0x8e   : > { %287 = vmatpush.bf16.msrb.mxu0 %v194_v11  ;;  %321 = vmatpush.bf16.msrb.mxu2 %v239_v10 }
  0x91   : > { %v383_v30 = vpop.permute.xlu1 %382  ;;  %v358_v49 = vpop.permute.xlu0 %357 }
  0x92   : > { %288 = vmatpush.bf16.msrb.mxu0 %v192_v13  ;;  %322 = vmatpush.bf16.msrb.mxu2 %v237_v12 }
  0x96   : > { %369 = vmatpush.bf16.msra.mxu0 %v508_v0  ;;  %v228_v22 = vpop.f32.mrf.mxu1 }
  0x99   : > { %v403_v45 = vpop.permute.xlu1 %402 }
  0x9a   : > { %370 = vmatpush.bf16.msra.mxu0 %v507_v1 }
  0x9c   : > { %v270_v24 = vpop.f32.mrf.mxu3 }
  0x9d   : > { %490 = vmatmul.msk.bf16.vlgmr.msrb.gmra.mxu0 %vm197_vm0, %v489_v19  ;;  %493 = vmatmul.msk.bf16.vlgmr.msrb.gmra.mxu2 %vm197_vm0, %v492_v20 }
  0x9e   : > { %v230_v23 = vpop.f32.mrf.mxu1 }
  0xa4   : > { %v272_v25 = vpop.f32.mrf.mxu3 }
  0xa6   : > { %v306_v26 = vpop.f32.mrf.mxu1 }
  0xad   : > { %496 = vmatmul.msk.bf16.vlgmr.msra.gmra.mxu0 %vm197_vm0, %v176_v21 }
  0xae   : > { %v308_v28 = vpop.f32.mrf.mxu1 }
  0xf9   : > { %v349_v27 = vpop.f32.mrf.mxu3 }
 0x101   : > { %v351_v32 = vpop.f32.mrf.mxu3 }
 0x10a   : > { %v210_v29 = vpop.f32.mrf.mxu0 }
 0x10b   : > { %v229_v31 = vadd.f32 %v228_v22, %v210_v29 }
 0x10d   : > { %v385_v33 = vadd.f32 %v383_v30, %v229_v31 }
 0x10f   : > { %498 = vst.msk [vmem:[%s170_s25 + $0x4] sm:$0x7] %vm376_vm1, %v385_v33 }
 0x110   : > { %v254_v34 = vpop.f32.mrf.mxu2 }
 0x111   : > { %v271_v36 = vadd.f32 %v270_v24, %v254_v34 }
 0x112   : > { %v212_v37 = vpop.f32.mrf.mxu0 }
 0x113   : > { %v395_v38 = vadd.f32 %v393_v35, %v271_v36 }
 0x115   : > { %500 = vst.msk [vmem:[%s170_s25 + $0x8] sm:$0x7] %vm376_vm1, %v395_v38 }
 0x118   : > { %v256_v39 = vpop.f32.mrf.mxu2 }
 0x11a   : > { %v290_v40 = vpop.f32.mrf.mxu0 }
 0x11b   : > { %v307_v41 = vadd.f32 %v306_v26, %v290_v40 }
 0x120   : > { %v324_v42 = vpop.f32.mrf.mxu2 }
 0x121   : > { %v328_v43 = vadd.f32 %v324_v42, %v307_v41 }
 0x122   : > { %v292_v44 = vpop.f32.mrf.mxu0 }
 0x123   : > { %v353_v46 = vadd.f32 %v349_v27, %v328_v43 }
 0x125   : > { %v405_v47 = vadd.f32 %v403_v45, %v353_v46 }
 0x127   : > { %502 = vst.msk [vmem:[%s170_s25 + $0xc] sm:$0x7] %vm376_vm1, %v405_v47 }
 0x128   : > { %v326_v48 = vpop.f32.mrf.mxu2 }
 0x12a   : > { %v372_v50 = vpop.f32.mrf.mxu0 }
 0x12b   : > { %v373_v51 = vadd.f32 %v372_v50, %v358_v49 }
 0x12d   : > { %377 = vst.msk [vmem:[%s170_s25] sm:$0x7] %vm376_vm1, %v373_v51 }
 0x132   : > { %v374_v52 = vpop.f32.mrf.mxu0 }
 0x133 PF: > { %s13_s12 = sadd.s32 1, %s530_s12  }
 0x134   : > { %p10_p4 = scmp.ge.s32.totalorder %s13_s12, 4  }
 0x136   :  { %12 = sbr.rel (!%p10_p4) target bundleno = 1 (0x1), region = 76 }

</bundles_post_ra>
